<compile_context>
chip_gen: v7x
topology: tpu7x:2x2x1
jax: 0.10.0
libtpu: 0.0.40
codegen_flags: <defaults>
</compile_context>

<pallas_src>
import jax
import jax.numpy as jnp
from jax import lax
from jax.experimental import pallas as pl
from jax.experimental.pallas import tpu as pltpu


def projection_head_kernel(x_ref, w1_ref, b1_ref, w2_ref, b2_ref, o_ref):
    x = x_ref[...]
    if x.dtype != jnp.bfloat16:
        # Producer ideally streams bf16 already; cast only if it didn't.
        x = x.astype(jnp.bfloat16)
    # Linear 1: [tb, in] @ [in, mid] + [1, mid]  (bf16 MXU inputs, f32 accumulation).
    h = jnp.dot(x, w1_ref[...], preferred_element_type=jnp.float32) + b1_ref[...]
    # ReLU on the VPU (f32). Dropout(p=0.1) in eval mode == identity.
    # TODO(synk): training-mode dropout would need pltpu.prng_seed/prng_random_bits masking.
    h = jnp.maximum(h, 0.0)
    # Linear 2: keep the hidden in f32 (mem-bound kernel -> the f32 matmul cost hides under DMA).
    y = jnp.dot(h, w2_ref[...].astype(jnp.float32),
                preferred_element_type=jnp.float32) + b2_ref[...]
    # F.normalize(p=2, dim=-1): y / max(||y||, 1e-12) == y * rsqrt(max(||y||^2, 1e-24)).
    # (f32 sum-of-squares only under/overflows for |y| < ~1e-19 or > ~1e19 -- fine here.)
    sq = jnp.sum(y * y, axis=-1, keepdims=True)
    o_ref[...] = (y * lax.rsqrt(jnp.maximum(sq, 1e-24))).astype(o_ref.dtype)


def prepare_params(w1, b1, w2, b2):
    """One-time setup (do NOT call per step): bf16 weights for the MXU, f32 lane-dense biases.

    w1: [in_dim, mid_dim], w2: [mid_dim, out_dim] (transposed vs nn.Linear's [out, in]).
    """
    return (w1.astype(jnp.bfloat16),
            b1.astype(jnp.float32).reshape(1, -1),
            w2.astype(jnp.bfloat16),
            b2.astype(jnp.float32).reshape(1, -1))


def _choose_tb(B, tb_max=1024):
    # Small batch: one full-batch tile (block == full array dim, so any B is legal).
    if B <= 512:
        return B
    # Large batch: biggest tile <= tb_max, but keep >= 2 grid steps so v7x's two
    # TensorCores can each take a share of the "parallel" batch axis.
    tb = min(tb_max, (B // 2) // 8 * 8)
    return max(tb, 8)


def _vmem_limit(est_working_set_bytes):
    default_scoped = 32 * 1024 * 1024
    if est_working_set_bytes <= default_scoped:
        return None
    try:
        phys = pltpu.get_tpu_info().vmem_capacity_bytes
    except Exception:
        phys = 64 * 1024 * 1024            # conservative: v7x per-TC physical VMEM
    headroom = 12 * 1024 * 1024            # compiler scratch / temps / spill headroom
    return max(default_scoped, min(int(est_working_set_bytes * 1.25), phys - headroom))


def projection_head(x, w1, b1, w2, b2, *, out_dtype=None, tb_max=1024):
    """x: [B, in_dim]; w1: [in_dim, mid_dim] bf16; b1: [1, mid_dim] f32;
    w2: [mid_dim, out_dim] bf16; b2: [1, out_dim] f32 (use prepare_params()).
    Returns [B, out_dim] in out_dtype (defaults to x.dtype)."""
    B, in_dim = x.shape
    mid_dim = w1.shape[1]
    out_dim = w2.shape[1]
    out_dtype = x.dtype if out_dtype is None else out_dtype
    out_itemsize = jnp.dtype(out_dtype).itemsize

    tb = _choose_tb(B, tb_max)
    grid = (pl.cdiv(B, tb),)     # ragged final block handled by Pallas masking

    flops = 2 * B * (in_dim * mid_dim + mid_dim * out_dim)
    bytes_accessed = (B * in_dim * x.dtype.itemsize
                      + w1.size * w1.dtype.itemsize + w2.size * w2.dtype.itemsize
                      + b1.size * 4 + b2.size * 4
                      + B * out_dim * out_itemsize)
    cost = pl.CostEstimate(flops=flops, transcendentals=B, bytes_accessed=bytes_accessed)

    # Working set: weights/biases (worst case double-buffered), double-buffered x/out tiles,
    # plus f32 hidden/y temporaries.
    est_vmem = (2 * (w1.size * w1.dtype.itemsize + w2.size * w2.dtype.itemsize
                     + b1.size * 4 + b2.size * 4)
                + 2 * tb * in_dim * x.dtype.itemsize
                + 2 * tb * out_dim * out_itemsize
                + tb * mid_dim * 4 + tb * out_dim * 4)
    vmem_limit = _vmem_limit(est_vmem)

    def _call(single_buffer_weights):
        resident_kw = ({"pipeline_mode": pl.Buffered(1)} if single_buffer_weights else {})
        in_specs = [
            pl.BlockSpec((tb, in_dim), lambda i: (i, 0)),                       # x: streamed
            pl.BlockSpec((in_dim, mid_dim), lambda i: (0, 0), **resident_kw),   # w1: resident
            pl.BlockSpec((1, mid_dim), lambda i: (0, 0), **resident_kw),        # b1: resident
            pl.BlockSpec((mid_dim, out_dim), lambda i: (0, 0), **resident_kw),  # w2: resident
            pl.BlockSpec((1, out_dim), lambda i: (0, 0), **resident_kw),        # b2: resident
        ]
        return pl.pallas_call(
            projection_head_kernel,
            out_shape=jax.ShapeDtypeStruct((B, out_dim), out_dtype),
            grid_spec=pltpu.PrefetchScalarGridSpec(
                num_scalar_prefetch=0,
                grid=grid,
                in_specs=in_specs,
                out_specs=pl.BlockSpec((tb, out_dim), lambda i: (i, 0)),
            ),
            compiler_params=pltpu.CompilerParams(
                dimension_semantics=("parallel",),   # independent batch tiles (v7x 2 TCs)
                vmem_limit_bytes=vmem_limit,
            ),
            cost_estimate=cost,
        )(x, w1, b1, w2, b2)

    # TODO(synk): at production sizes (in_dim >= 2048 on v7x) add K-tiling of the first matmul
    # (extra "arbitrary" grid axis + f32 VMEM accumulator) instead of shrinking the batch tile.
    try:
        return _call(single_buffer_weights=True)
    except Exception:
        # pipeline_mode=pl.Buffered(1) not supported on this jax version: fall back to the
        # default double-buffered resident weights (harmless at these feature sizes).
        return _call(single_buffer_weights=False)


def reference(x, w1, b1, w2, b2):
    h = jnp.maximum(x @ w1 + b1[None, :], 0.0)
    y = h @ w2 + b2[None, :]
    n = jnp.sqrt(jnp.sum(y * y, axis=-1, keepdims=True))
    return y / jnp.maximum(n, 1e-12)


if __name__ == "__main__":
    # Shapes chosen to exercise both multi-tile batching and a ragged final block
    # (520 = 2 * 256 + 8) while staying small.
    B, in_dim, mid_dim, out_dim = 520, 256, 256, 256

    key = jax.random.PRNGKey(0)
    kx, kw1, kb1, kw2, kb2 = jax.random.split(key, 5)

    # Producer emits bf16 activations (halves the dominant x DMA stream); output follows.
    x = jax.random.normal(kx, (B, in_dim), dtype=jnp.float32).astype(jnp.bfloat16)

    # Deterministic "init" mimicking nn.Linear default scale (~1/sqrt(fan_in)).
    w1 = jax.random.uniform(kw1, (in_dim, mid_dim), minval=-1.0, maxval=1.0,
                            dtype=jnp.float32) / jnp.sqrt(in_dim)
    b1 = jax.random.uniform(kb1, (mid_dim,), minval=-1.0, maxval=1.0,
                            dtype=jnp.float32) / jnp.sqrt(in_dim)
    w2 = jax.random.uniform(kw2, (mid_dim, out_dim), minval=-1.0, maxval=1.0,
                            dtype=jnp.float32) / jnp.sqrt(mid_dim)
    b2 = jax.random.uniform(kb2, (out_dim,), minval=-1.0, maxval=1.0,
                            dtype=jnp.float32) / jnp.sqrt(mid_dim)

    params = prepare_params(w1, b1, w2, b2)   # one-time: bf16 weights, 2-D f32 biases

    out = projection_head(x, *params)
    out = jax.block_until_ready(out)

    ref = reference(x.astype(jnp.float32), w1, b1, w2, b2)
    assert out.shape == (B, out_dim)
    out_f32 = out.astype(jnp.float32)
    # bf16 activations/weights on the MXU vs f32 reference: relaxed tolerance
    # (rows are unit-norm, so absolute error per component is small).
    assert jnp.allclose(out_f32, ref, atol=3e-2, rtol=3e-2), "mismatch vs reference"
    # Row norms must be ~1 (L2 normalize semantics), incl. the ragged last batch tile.
    assert jnp.allclose(jnp.linalg.norm(out_f32, axis=-1), 1.0, atol=1e-2)

    print("KERNEL_OK")
</pallas_src>

<mosaic_0001>
module attributes {stable_mosaic.version = 11 : i64} {
  func.func @projection_head_kernel(%arg0: i32, %arg1: memref<256x256xbf16, #tpu.memory_space<vmem>>, %arg2: memref<256x256xbf16, #tpu.memory_space<vmem>>, %arg3: memref<1x256xf32, #tpu.memory_space<vmem>>, %arg4: memref<256x256xbf16, #tpu.memory_space<vmem>>, %arg5: memref<1x256xf32, #tpu.memory_space<vmem>>, %arg6: memref<256x256xbf16, #tpu.memory_space<vmem>>) attributes {dimension_semantics = [#tpu.dimension_semantics<parallel>], iteration_bounds = array<i64: 3>, scalar_prefetch = 0 : i64, scratch_operands = 0 : i64, tpu.core_type = #tpu.core_type<tc>, window_params = [{transform_indices = @transform_0, window_bounds = array<i64: 256, 256>}, {pipeline_mode = #tpu.pipeline_mode<synchronous>, transform_indices = @transform_1, window_bounds = array<i64: 256, 256>}, {pipeline_mode = #tpu.pipeline_mode<synchronous>, transform_indices = @transform_2, window_bounds = array<i64: 1, 256>}, {pipeline_mode = #tpu.pipeline_mode<synchronous>, transform_indices = @transform_3, window_bounds = array<i64: 256, 256>}, {pipeline_mode = #tpu.pipeline_mode<synchronous>, transform_indices = @transform_4, window_bounds = array<i64: 1, 256>}, {transform_indices = @transform_5, window_bounds = array<i64: 256, 256>}]} {
    %c0 = arith.constant 0 : index
    %c0_0 = arith.constant 0 : index
    %0 = vector.load %arg1[%c0, %c0_0] : memref<256x256xbf16, #tpu.memory_space<vmem>>, vector<256x256xbf16>
    %c0_1 = arith.constant 0 : index
    %c0_2 = arith.constant 0 : index
    %1 = vector.load %arg2[%c0_1, %c0_2] : memref<256x256xbf16, #tpu.memory_space<vmem>>, vector<256x256xbf16>
    %cst = arith.constant dense<0.000000e+00> : vector<256x256xf32>
    %2 = tpu.matmul %0, %1, %cst {dimension_numbers = #tpu.dot_dimension_numbers<[1], [0], [0], [1], [0, 0, 1, 1], [], []>} : vector<256x256xbf16>, vector<256x256xbf16>, vector<256x256xf32> -> vector<256x256xf32>
    %c0_3 = arith.constant 0 : index
    %c0_4 = arith.constant 0 : index
    %3 = vector.load %arg3[%c0_3, %c0_4] : memref<1x256xf32, #tpu.memory_space<vmem>>, vector<1x256xf32>
    %4 = vector.broadcast %3 : vector<1x256xf32> to vector<256x256xf32>
    %5 = arith.addf %2, %4 : vector<256x256xf32>
    %cst_5 = arith.constant 0.000000e+00 : f32
    %6 = vector.broadcast %cst_5 : f32 to vector<256x256xf32>
    %7 = arith.maximumf %5, %6 : vector<256x256xf32>
    %c0_6 = arith.constant 0 : index
    %c0_7 = arith.constant 0 : index
    %8 = vector.load %arg4[%c0_6, %c0_7] : memref<256x256xbf16, #tpu.memory_space<vmem>>, vector<256x256xbf16>
    %9 = arith.extf %8 : vector<256x256xbf16> to vector<256x256xf32>
    %cst_8 = arith.constant dense<0.000000e+00> : vector<256x256xf32>
    %10 = tpu.matmul %7, %9, %cst_8 {dimension_numbers = #tpu.dot_dimension_numbers<[1], [0], [0], [1], [0, 0, 1, 1], [], []>} : vector<256x256xf32>, vector<256x256xf32>, vector<256x256xf32> -> vector<256x256xf32>
    %c0_9 = arith.constant 0 : index
    %c0_10 = arith.constant 0 : index
    %11 = vector.load %arg5[%c0_9, %c0_10] : memref<1x256xf32, #tpu.memory_space<vmem>>, vector<1x256xf32>
    %12 = vector.broadcast %11 : vector<1x256xf32> to vector<256x256xf32>
    %13 = arith.addf %10, %12 : vector<256x256xf32>
    %14 = arith.mulf %13, %13 : vector<256x256xf32>
    %cst_11 = arith.constant dense<0.000000e+00> : vector<256xf32>
    %15 = vector.multi_reduction <add>, %14, %cst_11 [1] : vector<256x256xf32> to vector<256xf32>
    %16 = vector.shape_cast %15 : vector<256xf32> to vector<256x1xf32>
    %cst_12 = arith.constant 1.000000e-24 : f32
    %17 = vector.broadcast %cst_12 : f32 to vector<256x1xf32>
    %18 = arith.maximumf %16, %17 : vector<256x1xf32>
    %19 = math.rsqrt %18 : vector<256x1xf32>
    %20 = vector.broadcast %19 : vector<256x1xf32> to vector<256x256xf32>
    %21 = arith.mulf %13, %20 : vector<256x256xf32>
    %22 = arith.truncf %21 : vector<256x256xf32> to vector<256x256xbf16>
    %c0_13 = arith.constant 0 : index
    %c0_14 = arith.constant 0 : index
    %23 = vector.load %arg6[%c0_13, %c0_14] : memref<256x256xbf16, #tpu.memory_space<vmem>>, vector<256x256xbf16>
    tpu.vector_store %arg6[%c0_13, %c0_14], %22 {strides = array<i32>} : memref<256x256xbf16, #tpu.memory_space<vmem>>, vector<256x256xbf16>,
    return
  }
  func.func @transform_0(%arg0: i32) -> (i32, i32) {
    %c0_i32 = arith.constant 0 : i32
    %c0_i32_0 = arith.constant 0 : i32
    return %arg0, %c0_i32 : i32, i32
  }
  func.func @transform_1(%arg0: i32) -> (i32, i32) {
    %c0_i32 = arith.constant 0 : i32
    %c0_i32_0 = arith.constant 0 : i32
    %c0_i32_1 = arith.constant 0 : i32
    return %c0_i32, %c0_i32_0 : i32, i32
  }
  func.func @transform_2(%arg0: i32) -> (i32, i32) {
    %c0_i32 = arith.constant 0 : i32
    %c0_i32_0 = arith.constant 0 : i32
    %c0_i32_1 = arith.constant 0 : i32
    return %c0_i32, %c0_i32_0 : i32, i32
  }
  func.func @transform_3(%arg0: i32) -> (i32, i32) {
    %c0_i32 = arith.constant 0 : i32
    %c0_i32_0 = arith.constant 0 : i32
    %c0_i32_1 = arith.constant 0 : i32
    return %c0_i32, %c0_i32_0 : i32, i32
  }
  func.func @transform_4(%arg0: i32) -> (i32, i32) {
    %c0_i32 = arith.constant 0 : i32
    %c0_i32_0 = arith.constant 0 : i32
    %c0_i32_1 = arith.constant 0 : i32
    return %c0_i32, %c0_i32_0 : i32, i32
  }
  func.func @transform_5(%arg0: i32) -> (i32, i32) {
    %c0_i32 = arith.constant 0 : i32
    %c0_i32_0 = arith.constant 0 : i32
    return %arg0, %c0_i32 : i32, i32
  }
}

module attributes {stable_mosaic.version = 11 : i64} {
  func.func @projection_head_kernel(%arg0: i32, %arg1: memref<256x256xbf16, #tpu.memory_space<vmem>>, %arg2: memref<256x256xbf16, #tpu.memory_space<vmem>>, %arg3: memref<1x256xf32, #tpu.memory_space<vmem>>, %arg4: memref<256x256xbf16, #tpu.memory_space<vmem>>, %arg5: memref<1x256xf32, #tpu.memory_space<vmem>>, %arg6: memref<256x256xbf16, #tpu.memory_space<vmem>>) attributes {dimension_semantics = [#tpu.dimension_semantics<parallel>], iteration_bounds = array<i64: 3>, scalar_prefetch = 0 : i64, scratch_operands = 0 : i64, tpu.core_type = #tpu.core_type<tc>, window_params = [{transform_indices = @transform_0, window_bounds = array<i64: 256, 256>}, {pipeline_mode = #tpu.pipeline_mode<synchronous>, transform_indices = @transform_1, window_bounds = array<i64: 256, 256>}, {pipeline_mode = #tpu.pipeline_mode<synchronous>, transform_indices = @transform_2, window_bounds = array<i64: 1, 256>}, {pipeline_mode = #tpu.pipeline_mode<synchronous>, transform_indices = @transform_3, window_bounds = array<i64: 256, 256>}, {pipeline_mode = #tpu.pipeline_mode<synchronous>, transform_indices = @transform_4, window_bounds = array<i64: 1, 256>}, {transform_indices = @transform_5, window_bounds = array<i64: 256, 256>}]} {
    %c0 = arith.constant 0 : index
    %c0_0 = arith.constant 0 : index
    %0 = vector.load %arg1[%c0, %c0_0] : memref<256x256xbf16, #tpu.memory_space<vmem>>, vector<256x256xbf16>
    %c0_1 = arith.constant 0 : index
    %c0_2 = arith.constant 0 : index
    %1 = vector.load %arg2[%c0_1, %c0_2] : memref<256x256xbf16, #tpu.memory_space<vmem>>, vector<256x256xbf16>
    %cst = arith.constant dense<0.000000e+00> : vector<256x256xf32>
    %2 = tpu.matmul %0, %1, %cst {dimension_numbers = #tpu.dot_dimension_numbers<[1], [0], [0], [1], [0, 0, 1, 1], [], []>} : vector<256x256xbf16>, vector<256x256xbf16>, vector<256x256xf32> -> vector<256x256xf32>
    %c0_3 = arith.constant 0 : index
    %c0_4 = arith.constant 0 : index
    %3 = vector.load %arg3[%c0_3, %c0_4] : memref<1x256xf32, #tpu.memory_space<vmem>>, vector<1x256xf32>
    %4 = vector.broadcast %3 : vector<1x256xf32> to vector<256x256xf32>
    %5 = arith.addf %2, %4 : vector<256x256xf32>
    %cst_5 = arith.constant 0.000000e+00 : f32
    %6 = vector.broadcast %cst_5 : f32 to vector<256x256xf32>
    %7 = arith.maximumf %5, %6 : vector<256x256xf32>
    %c0_6 = arith.constant 0 : index
    %c0_7 = arith.constant 0 : index
    %8 = vector.load %arg4[%c0_6, %c0_7] : memref<256x256xbf16, #tpu.memory_space<vmem>>, vector<256x256xbf16>
    %9 = arith.extf %8 : vector<256x256xbf16> to vector<256x256xf32>
    %cst_8 = arith.constant dense<0.000000e+00> : vector<256x256xf32>
    %10 = tpu.matmul %7, %9, %cst_8 {dimension_numbers = #tpu.dot_dimension_numbers<[1], [0], [0], [1], [0, 0, 1, 1], [], []>} : vector<256x256xf32>, vector<256x256xf32>, vector<256x256xf32> -> vector<256x256xf32>
    %c0_9 = arith.constant 0 : index
    %c0_10 = arith.constant 0 : index
    %11 = vector.load %arg5[%c0_9, %c0_10] : memref<1x256xf32, #tpu.memory_space<vmem>>, vector<1x256xf32>
    %12 = vector.broadcast %11 : vector<1x256xf32> to vector<256x256xf32>
    %13 = arith.addf %10, %12 : vector<256x256xf32>
    %14 = arith.mulf %13, %13 : vector<256x256xf32>
    %cst_11 = arith.constant dense<0.000000e+00> : vector<256xf32>
    %15 = vector.multi_reduction <add>, %14, %cst_11 [1] : vector<256x256xf32> to vector<256xf32>
    %16 = vector.shape_cast %15 : vector<256xf32> to vector<256x1xf32>
    %cst_12 = arith.constant 1.000000e-24 : f32
    %17 = vector.broadcast %cst_12 : f32 to vector<256x1xf32>
    %18 = arith.maximumf %16, %17 : vector<256x1xf32>
    %19 = math.rsqrt %18 : vector<256x1xf32>
    %20 = vector.broadcast %19 : vector<256x1xf32> to vector<256x256xf32>
    %21 = arith.mulf %13, %20 : vector<256x256xf32>
    %22 = arith.truncf %21 : vector<256x256xf32> to vector<256x256xbf16>
    %c0_13 = arith.constant 0 : index
    %c0_14 = arith.constant 0 : index
    %23 = vector.load %arg6[%c0_13, %c0_14] : memref<256x256xbf16, #tpu.memory_space<vmem>>, vector<256x256xbf16>
    tpu.vector_store %arg6[%c0_13, %c0_14], %22 {strides = array<i32>} : memref<256x256xbf16, #tpu.memory_space<vmem>>, vector<256x256xbf16>,
    return
  }
  func.func @transform_0(%arg0: i32) -> (i32, i32) {
    %c0_i32 = arith.constant 0 : i32
    %c0_i32_0 = arith.constant 0 : i32
    return %arg0, %c0_i32 : i32, i32
  }
  func.func @transform_1(%arg0: i32) -> (i32, i32) {
    %c0_i32 = arith.constant 0 : i32
    %c0_i32_0 = arith.constant 0 : i32
    %c0_i32_1 = arith.constant 0 : i32
    return %c0_i32, %c0_i32_0 : i32, i32
  }
  func.func @transform_2(%arg0: i32) -> (i32, i32) {
    %c0_i32 = arith.constant 0 : i32
    %c0_i32_0 = arith.constant 0 : i32
    %c0_i32_1 = arith.constant 0 : i32
    return %c0_i32, %c0_i32_0 : i32, i32
  }
  func.func @transform_3(%arg0: i32) -> (i32, i32) {
    %c0_i32 = arith.constant 0 : i32
    %c0_i32_0 = arith.constant 0 : i32
    %c0_i32_1 = arith.constant 0 : i32
    return %c0_i32, %c0_i32_0 : i32, i32
  }
  func.func @transform_4(%arg0: i32) -> (i32, i32) {
    %c0_i32 = arith.constant 0 : i32
    %c0_i32_0 = arith.constant 0 : i32
    %c0_i32_1 = arith.constant 0 : i32
    return %c0_i32, %c0_i32_0 : i32, i32
  }
  func.func @transform_5(%arg0: i32) -> (i32, i32) {
    %c0_i32 = arith.constant 0 : i32
    %c0_i32_0 = arith.constant 0 : i32
    return %arg0, %c0_i32 : i32, i32
  }
}

</mosaic_0001>

<bundles_post_ra>
// kernel: tpu_custom_call.1
= control target key start
LH: loop header
LB: loop body
LE: loop exit
PB: predicated region body
PF: predicated region fallthrough
CT: control target
= control target key end

     0   :  { %10 = vsyncpa [#allocation3], 0  ;;  %s3455_s0 = inlined_call_operand.hbm [shape: bf16[520,256], index: 0, kind: input, shape index: {}]   ;;  %s3456_s1 = inlined_call_operand.hbm [shape: bf16[256,256], index: 1, kind: input, shape index: {}]   ;;  %s3457_s2 = inlined_call_operand.vmem [shape: f32[1,256], index: 2, kind: input, shape index: {}]   ;;  %s3458_s3 = inlined_call_operand.hbm [shape: bf16[256,256], index: 3, kind: input, shape index: {}]   ;;  %s3459_s4 = inlined_call_operand.vmem [shape: f32[1,256], index: 4, kind: input, shape index: {}]   ;;  %s3460_s5 = inlined_call_operand.hbm [shape: bf16[520,256], index: 5, kind: output, shape index: {}]  }
   0x1   :  { %12 = vsyncpa [#allocation3 + $0x1], 0 }
   0x2   :  { %13 = vsyncpa [#allocation6], 0 }
   0x3   :  { %14 = vsyncpa [#allocation4], 0 }
   0x4   :  { %16 = vsyncpa [#allocation4 + $0x1], 0  ;;  %s2666_s18 = smov 0   ;;  %s2668_s19 = smov 0  }
   0x5   :  { %s2670_s20 = smov 0   ;;  %s2672_s21 = smov 0  }
   0x6 LB: > { %s2687_s22 = sadd.s32 4294967295, %s2624_s21   ;;  %s1936_s23 = sadd.s32 4294967294, %s2624_s21   ;;  %s2624_s21 = sphi %s2672_s21, %s3527_s21   ;;  %s2620_s20 = sphi %s2670_s20, %s3526_s20   ;;  %s2616_s19 = sphi %s2668_s19, %s3525_s19   ;;  %s2612_s18 = sphi %s2666_s18, %s3524_s18  }
   0x7   : > { %s2691_s24 = sadd.s32 1, %s2624_s21   ;;  %s29_s25 = sadd.s32 1, %s2620_s20 }
   0x8   : > { %s26_s26 = ssub.s32 %s2624_s21, %s2691_s24  ;;  %p36_p0 = scmp.ne.s32.totalorder %s2620_s20, %s2616_s19 }
   0x9   : > { %p27_p1 = scmp.eq.s32.totalorder %s26_s26, 0  ;;  %p37_p2 = scmp.eq.s32.totalorder %s2624_s21, 0 }
   0xa   : > { %p42_p3 = scmp.ne.s32.totalorder %s2616_s19, %s2612_s18  ;;  %p3461_p4 = scmp.eq.s32.totalorder %s2687_s22, 0 }
   0xb   : > { %s2703_s27 = scalar_select %p27_p1, %s2620_s20, %s29_s25  }
   0xc   : > { %p2705_p5 = por %p37_p2, %p36_p0  ;;  %p2711_p6 = por %p3461_p4, %p42_p3 }
   0xd   : > { %3479 = sst [smem:[#allocation12_spill]] %s2703_s27  ;;  %p150_p7 = scmp.eq.s32.totalorder %s2687_s22, 2 }
   0xe   : > { %s3480_s28 = scalar_select %p2705_p5, 1, 0 }
   0xf   : > { %s3481_s29 = scalar_select %p2711_p6, 1, 0 }
  0x10   : > { %p156_p8 = scmp.eq.s32.totalorder %s1936_s23, 2  ;;  %p1937_p9 = scmp.ge.s32.totalorder %s2624_s21, 1 }
  0x11   : > { %p163_p10 = scmp.lt.s32.totalorder %s2624_s21, 4  ;;  %p2718_p11 = por %p150_p7, %p36_p0 }
  0x12   : > { %p2722_p12 = por %p156_p8, %p42_p3  ;;  %s2626_s8 = smov [#allocation5]  }
  0x13   : > { %s3482_s30 = scalar_select %p2718_p11, 1, 0 }
  0x14   : > { %s3483_s6 = scalar_select %p2722_p12, 1, 0 }
  0x15   : > { %p2726_p13 = pnand %p1937_p9, %p163_p10  ;;  %s175_s9 = sshll.u32 %s2626_s8, 4  ;;  %s176_s9 = int_to_ptr.vmem [resolvable:$true] %s175_s9 }
  0x16   : > { %s2627_s11 = smov [#allocation7]   ;;  %s2470_s15 = scalar_lea.hbm %s3456_s1, 4096 }
  0x17   : > { %s3484_s7 = scalar_select %p2726_p13, 1, 0 }
  0x18   : > { %p2206_p1 = pneg %p2726_p13  ;;  %s191_s12 = sshll.u32 %s2627_s11, 4  ;;  %s2738_s12 = int_to_ptr.vmem [resolvable:$true] %s191_s12 }
  0x19   : > { %p2471_p0 = scmp.ne.s32.totalorder %s3456_s1, %s2470_s15  ;;  %p2477_p9 = scmp.lt.u32.totalorder %s2470_s15, %s3456_s1 }
  0x1a   : > { %p2734_p2 = pnand %p2206_p1, %p3461_p4 }
  0x1c   : > { %p2472_p3 = pneg %p2734_p2 }
  0x1e   : > { %p2473_p7 = pnand %p2472_p3, %p2471_p0 }
  0x20   : > { %p2474_p8 = pneg %p2473_p7 }
  0x22   : > { %p2479_p10 = pnand %p2477_p9, %p2474_p8 }
  0x24   : > { %2482 = shalt.err (!%p2479_p10)
}
  0x25   : > { %s2483_s26 = scalar_lea.vmem %s176_s9, 4096  ;;  %p2491_p11 = scmp.lt.s32.totalorder %s176_s9, %s176_s9 }
  0x26   : > { %p2484_p1 = scmp.ne.s32.totalorder %s176_s9, %s2483_s26  ;;  %p2492_p6 = scmp.lt.s32.totalorder %s2483_s26, %s2483_s26 }
  0x28   : > { %p2486_p4 = pnand %p2484_p1, %p2472_p3  ;;  %p2493_p13 = por %p2492_p6, %p2491_p11 }
  0x2a   : > { %p2487_p12 = pneg %p2486_p4 }
  0x2c   : > { %p2494_p5 = pnand %p2493_p13, %p2487_p12 }
  0x2e   : > { %2497 = shalt.err (!%p2494_p5)
}
  0x2f   : > { %s2628_s8 = smov 128   ;;  %s2629_s11 = smov 8  }
  0x30   : > { %2209 = dma.hbm_to_vmem [thread:$0]  (!%p2734_p2), %s3456_s1, 4096, %s176_s9, [#allocation6], %s2628_s8, %s2628_s8, %s2629_s11  }
  0x31   : > { %s2498_s17 = scalar_lea.hbm %s3458_s3, 4096 }
  0x32   : > { %p2499_p4 = scmp.ne.s32.totalorder %s3458_s3, %s2498_s17  ;;  %p2505_p11 = scmp.lt.u32.totalorder %s2498_s17, %s3458_s3 }
  0x34   : > { %p2501_p5 = pnand %p2499_p4, %p2472_p3 }
  0x36   : > { %p2502_p6 = pneg %p2501_p5 }
  0x38   : > { %p2507_p12 = pnand %p2505_p11, %p2502_p6 }
  0x3a   : > { %2510 = shalt.err (!%p2507_p12)
}
  0x3b   : > { %s2511_s9 = scalar_lea.vmem %s2738_s12, 4096  ;;  %p2519_p8 = scmp.lt.s32.totalorder %s2738_s12, %s2738_s12 }
  0x3c   : > { %p2512_p13 = scmp.ne.s32.totalorder %s2738_s12, %s2511_s9  ;;  %p2520_p9 = scmp.lt.s32.totalorder %s2511_s9, %s2511_s9 }
  0x3e   : > { %p2514_p0 = pnand %p2512_p13, %p2472_p3  ;;  %p2521_p10 = por %p2520_p9, %p2519_p8 }
  0x40   : > { %p2515_p7 = pneg %p2514_p0 }
  0x42   : > { %p2522_p1 = pnand %p2521_p10, %p2515_p7 }
  0x44   : > { %2525 = shalt.err (!%p2522_p1)
}
  0x45   : > { %2212 = dma.hbm_to_vmem [thread:$0]  (!%p2734_p2), %s3458_s3, 4096, %s2738_s12, [#allocation6], %s2628_s8, %s2628_s8, %s2629_s11  }
  0x46   : > { %p1940_p4 = scmp.ge.s32.totalorder %s2624_s21, 3 }
  0x47   : > { %p3486_p5 = scmp.ne.s32.totalorder (!%p1940_p4), %s3480_s28, 0 }
  0x48   : > { %204 = sbr.rel (%p1940_p4) target bundleno = 114 (0x72), region = 32 }
  0x4f   : > { %207 = sbr.rel (!%p3486_p5) target bundleno = 114 (0x72), region = 36  ;;  %s208_s14 = sand.u32 (%p3486_p5), 1, %s2620_s20  }
  0x50   : > { %s1942_s15 = sshll.u32 (%p3486_p5), %s2624_s21, 5  ;;  %s1941_s16 = sshll.u32 (%p3486_p5), %s208_s14, 8 }
  0x51   : > { %s214_s17 = ssub.s32 (%p3486_p5), 65, %s1942_s15  ;;  %s2795_s25 = scalar_lea.sflag (%p3486_p5), [#allocation3], %s208_s14 }
  0x52   : > { %p215_p3 = scmp.lt.s32.totalorder (%p3486_p5), %s214_s17, 32  ;;  %s212_s12 = scalar_lea.vmem (%p3486_p5), [#allocation2], %s1941_s16 }
  0x56   : > { %s3529_s17 = smov (!%p215_p3, %s214_s17), 32 }
  0x57   : > { %s2792_s10 = sshll.u32 %s3529_s17, 7 }
  0x58   : > { %s220_s23 = ssub.s32 4096, %s2792_s10 }
  0x59   : > { %221 = vsyncadd %s2795_s25, %s220_s23  ;;  %p1945_p2 = scmp.ne.s32.totalorder %s2792_s10, 0  ;;  %s2064_s28 = sshll.u32 %s2624_s21, 12 }
  0x5a   : > { %s2803_s26 = scalar_lea.hbm %s3455_s0, %s2064_s28  ;;  %s227_s9 = sshll.u32 %s212_s12, 4  ;;  %s2805_s9 = int_to_ptr.vmem [resolvable:$true] %s227_s9 }
  0x5b   : > { %s2526_s27 = scalar_lea.hbm %s2803_s26, %s2792_s10  ;;  %s2530_s15 = scalar_lea.hbm %s3455_s0, 8320 }
  0x5c   : > { %p2527_p6 = scmp.ne.s32.totalorder %s2803_s26, %s2526_s27  ;;  %p2531_p13 = scmp.lt.u32.totalorder %s2803_s26, %s3455_s0 }
  0x5d   : > { %p2532_p0 = scmp.lt.u32.totalorder %s2530_s15, %s2526_s27  ;;  %p2534_p8 = scmp.lt.u32.totalorder %s2526_s27, %s2803_s26 }
  0x5e   : > { %p2528_p11 = pnand %p2527_p6, %p1945_p2 }
  0x5f   : > { %p2533_p7 = por %p2532_p0, %p2531_p13 }
  0x60   : > { %p2529_p12 = pneg %p2528_p11 }
  0x61   : > { %p2535_p9 = por %p2534_p8, %p2533_p7 }
  0x63   : > { %p2536_p10 = pnand %p2535_p9, %p2529_p12 }
  0x65   : > { %2539 = shalt.err (!%p2536_p10)
}
  0x66   : > { %s2540_s23 = scalar_lea.vmem %s2805_s9, %s2792_s10  ;;  %s2630_s12 = smov [#allocation2]  }
  0x67   : > { %p2541_p1 = scmp.ne.s32.totalorder %s2805_s9, %s2540_s23  ;;  %s2544_s28 = sshll.u32 %s2630_s12, 4  ;;  %s2545_s28 = int_to_ptr.vmem [resolvable:$false] %s2544_s28 }
  0x68   : > { %s2546_s8 = scalar_lea.vmem %s2545_s28, 8192  ;;  %p2547_p3 = scmp.lt.s32.totalorder %s2805_s9, %s2545_s28 }
  0x69   : > { %p2542_p4 = pnand %p2541_p1, %p1945_p2  ;;  %p2548_p6 = scmp.lt.s32.totalorder %s2546_s8, %s2540_s23 }
  0x6b   : > { %p2543_p5 = pneg %p2542_p4  ;;  %p2549_p11 = por %p2548_p6, %p2547_p3 }
  0x6d   : > { %p2550_p13 = pnand %p2549_p11, %p2543_p5 }
  0x6f   : > { %2553 = shalt.err (!%p2550_p13)
}
  0x70   : > { %s2631_s11 = smov 128   ;;  %s2632_s27 = smov 8  }
  0x71   : > { %233 = dma.hbm_to_vmem [thread:$0]  (%p1945_p2), %s2803_s26, %s2792_s10, %s2805_s9, %s2795_s25, %s2631_s11, %s2631_s11, %s2632_s27  }
  0x72 PF: > { %p3487_p12 = scmp.ne.s32.totalorder %s3484_s7, 0 }
  0x74   : > { %239 = sbr.rel (%p3487_p12) target bundleno = 944 (0x3b0), region = 40 }
  0x7b   : > { %s2835_s13 = sand.u32 1, %s2616_s19   ;;  %p3488_p0 = scmp.ne.s32.totalorder %s3481_s29, 0 }
  0x7c   : > { %s1951_s14 = sshll.u32 %s2835_s13, 8  ;;  %s242_s15 = scalar_lea.sflag [#allocation3], %s2835_s13 }
  0x7d   : > { %s2841_s16 = scalar_lea.vmem [#allocation2], %s1951_s14 }
  0x7e   : > { %2599 = dma.done.wait (%p3488_p0), %s242_s15, 4096  }
  0x7f   : > { %2601 = vsyncadd (%p3488_p0), %s242_s15, 4294963200  ;;  %p3489_p2 = scmp.eq.s32.totalorder %s2687_s22, 0 }
  0x81   : > { %2603 = dma.done.wait (%p3489_p2), [#allocation6], 8192   ;;  %p3490_p7 = pmov %p3489_p2 }
  0x82   : > { %v2262_v0 = vld [vmem:[#allocation5 + $0x4] ss:$8 sps:$4 sm:$0xff]   ;;  %v2264_v1 = vld [vmem:[#allocation5] ss:$8 sps:$4 sm:$0xff]   ;;  %v2265_v2 = vld [vmem:[#allocation5 + $0x14] ss:$8 sps:$4 sm:$0xff]  }
  0x83   : > { %2605 = vsyncadd (%p3490_p7), [#allocation6], 4294959104  ;;  %688 = vmatprep.subr.bf16.mxu0 %v2262_v0  ;;  %v2267_v3 = vld [vmem:[#allocation5 + $0x10] ss:$8 sps:$4 sm:$0xff]   ;;  %v2268_v4 = vld [vmem:[#allocation5 + $0x24] ss:$8 sps:$4 sm:$0xff]  }
  0x84   : > { %689 = vmatpush1.bf16.msra.mxu0 %v2264_v1  ;;  %v2270_v5 = vld [vmem:[#allocation5 + $0x20] ss:$8 sps:$4 sm:$0xff]   ;;  %v2271_v6 = vld [vmem:[#allocation5 + $0x34] ss:$8 sps:$4 sm:$0xff]   ;;  %v2273_v7 = vld [vmem:[#allocation5 + $0x30] ss:$8 sps:$4 sm:$0xff]  }
  0x85   : > { %690 = vmatprep.subr.bf16.mxu0 %v2265_v2  ;;  %v2274_v8 = vld [vmem:[#allocation5 + $0x44] ss:$8 sps:$4 sm:$0xff]   ;;  %v2276_v9 = vld [vmem:[#allocation5 + $0x40] ss:$8 sps:$4 sm:$0xff]   ;;  %v2277_v10 = vld [vmem:[#allocation5 + $0x54] ss:$8 sps:$4 sm:$0xff]  }
  0x86   : > { %v2279_v11 = vld [vmem:[#allocation5 + $0x50] ss:$8 sps:$4 sm:$0xff]   ;;  %v2280_v12 = vld [vmem:[#allocation5 + $0x64] ss:$8 sps:$4 sm:$0xff]   ;;  %v2282_v14 = vld [vmem:[#allocation5 + $0x60] ss:$8 sps:$4 sm:$0xff]  }
  0x87   : > { %v2312_v13 = vld [vmem:[%s2841_s16 + $0x4] ss:$8 sps:$4 sm:$0xff]   ;;  %v2283_v15 = vld [vmem:[#allocation5 + $0x74] ss:$8 sps:$4 sm:$0xff]   ;;  %v2285_v16 = vld [vmem:[#allocation5 + $0x70] ss:$8 sps:$4 sm:$0xff]  }
  0x88   : > { %691 = vmatpush1.bf16.msra.mxu0 %v2267_v3  ;;  %720 = vmatprep.mubr.bf16.mxu0 %v2312_v13  ;;  %v2286_v17 = vld [vmem:[#allocation5 + $0x84] ss:$8 sps:$4 sm:$0xff]   ;;  %v2288_v18 = vld [vmem:[#allocation5 + $0x80] ss:$8 sps:$4 sm:$0xff]   ;;  %v2289_v19 = vld [vmem:[#allocation5 + $0x94] ss:$8 sps:$4 sm:$0xff]  }
  0x89   : > { %692 = vmatprep.subr.bf16.mxu0 %v2268_v4  ;;  %v2291_v20 = vld [vmem:[#allocation5 + $0x90] ss:$8 sps:$4 sm:$0xff]   ;;  %v2292_v21 = vld [vmem:[#allocation5 + $0xa4] ss:$8 sps:$4 sm:$0xff]   ;;  %v2294_v22 = vld [vmem:[#allocation5 + $0xa0] ss:$8 sps:$4 sm:$0xff]  }
  0x8a   : > { %v2295_v23 = vld [vmem:[#allocation5 + $0xb4] ss:$8 sps:$4 sm:$0xff]   ;;  %v2297_v24 = vld [vmem:[#allocation5 + $0xb0] ss:$8 sps:$4 sm:$0xff]   ;;  %v2298_v25 = vld [vmem:[#allocation5 + $0xc4] ss:$8 sps:$4 sm:$0xff]  }
  0x8b   : > { %v2300_v26 = vld [vmem:[#allocation5 + $0xc0] ss:$8 sps:$4 sm:$0xff]   ;;  %v2301_v27 = vld [vmem:[#allocation5 + $0xd4] ss:$8 sps:$4 sm:$0xff]   ;;  %v2303_v28 = vld [vmem:[#allocation5 + $0xd0] ss:$8 sps:$4 sm:$0xff]  }
  0x8c   : > { %693 = vmatpush1.bf16.msra.mxu0 %v2270_v5  ;;  %v2304_v29 = vld [vmem:[#allocation5 + $0xe4] ss:$8 sps:$4 sm:$0xff]   ;;  %v2306_v30 = vld [vmem:[#allocation5 + $0xe0] ss:$8 sps:$4 sm:$0xff]   ;;  %v2307_v31 = vld [vmem:[#allocation5 + $0xf4] ss:$8 sps:$4 sm:$0xff]  }
  0x8d   : > { %694 = vmatprep.subr.bf16.mxu0 %v2271_v6  ;;  %v2358_v32 = vld [vmem:[#allocation7 + $0x4] ss:$8 sps:$4 sm:$0xff]   ;;  %v2360_v33 = vld [vmem:[#allocation7] ss:$8 sps:$4 sm:$0xff]   ;;  %v2361_v34 = vld [vmem:[#allocation7 + $0x14] ss:$8 sps:$4 sm:$0xff]  }
  0x8e   : > { %v2309_v35 = vld [vmem:[#allocation5 + $0xf0] ss:$8 sps:$4 sm:$0xff]   ;;  %2101 = vmatprep.subr.bf16.mxu1 %v2358_v32  ;;  %v2310_v37 = vld [vmem:[%s2841_s16] ss:$8 sps:$4 sm:$0xff]   ;;  %v2364_v38 = vld [vmem:[#allocation7 + $0x24] ss:$8 sps:$4 sm:$0xff]   ;;  %v358_v32 = vlaneseq }
  0x8f   : > { %2103 = vmatpush1.bf16.msra.mxu1 %v2360_v33  ;;  %v2363_v36 = vld [vmem:[#allocation7 + $0x10] ss:$8 sps:$4 sm:$0xff]   ;;  %v2313_v39 = vld [vmem:[%s2841_s16 + $0x14] ss:$8 sps:$4 sm:$0xff]   ;;  %v2366_v40 = vld [vmem:[#allocation7 + $0x20] ss:$8 sps:$4 sm:$0xff]  }
  0x90   : > { %695 = vmatpush1.bf16.msra.mxu0 %v2273_v7  ;;  %2105 = vmatprep.subr.bf16.mxu1 %v2361_v34  ;;  %v2367_v41 = vld [vmem:[#allocation7 + $0x34] ss:$8 sps:$4 sm:$0xff]   ;;  %v2369_v42 = vld [vmem:[#allocation7 + $0x30] ss:$8 sps:$4 sm:$0xff]   ;;  %v2370_v44 = vld [vmem:[#allocation7 + $0x44] ss:$8 sps:$4 sm:$0xff]  }
  0x91   : > { %696 = vmatprep.subr.bf16.mxu0 %v2274_v8  ;;  %v2315_v43 = vld [vmem:[%s2841_s16 + $0x10] ss:$8 sps:$4 sm:$0xff]   ;;  %v2316_v45 = vld [vmem:[%s2841_s16 + $0x24] ss:$8 sps:$4 sm:$0xff]   ;;  %v2372_v46 = vld [vmem:[#allocation7 + $0x40] ss:$8 sps:$4 sm:$0xff]  }
  0x92   : > { %v2373_v47 = vld [vmem:[#allocation7 + $0x54] ss:$8 sps:$4 sm:$0xff]   ;;  %v2375_v48 = vld [vmem:[#allocation7 + $0x50] ss:$8 sps:$4 sm:$0xff]   ;;  %v2318_v49 = vld [vmem:[%s2841_s16 + $0x20] ss:$8 sps:$4 sm:$0xff]  }
  0x93   : > { %2107 = vmatpush1.bf16.msra.mxu1 %v2363_v36  ;;  %v2376_v50 = vld [vmem:[#allocation7 + $0x64] ss:$8 sps:$4 sm:$0xff]   ;;  %v2319_v51 = vld [vmem:[%s2841_s16 + $0x34] ss:$8 sps:$4 sm:$0xff]   ;;  %v2378_v52 = vld [vmem:[#allocation7 + $0x60] ss:$8 sps:$4 sm:$0xff]  }
  0x94   : > { %697 = vmatpush1.bf16.msra.mxu0 %v2276_v9  ;;  %2109 = vmatprep.subr.bf16.mxu1 %v2364_v38  ;;  %v2379_v53 = vld [vmem:[#allocation7 + $0x74] ss:$8 sps:$4 sm:$0xff]   ;;  %v2381_v54 = vld [vmem:[#allocation7 + $0x70] ss:$8 sps:$4 sm:$0xff]   ;;  %v2382_v56 = vld [vmem:[#allocation7 + $0x84] ss:$8 sps:$4 sm:$0xff]  }
  0x95   : > { %698 = vmatprep.subr.bf16.mxu0 %v2277_v10  ;;  %v2321_v55 = vld [vmem:[%s2841_s16 + $0x30] ss:$8 sps:$4 sm:$0xff]   ;;  %v2322_v57 = vld [vmem:[%s2841_s16 + $0x44] ss:$8 sps:$4 sm:$0xff]   ;;  %v2384_v58 = vld [vmem:[#allocation7 + $0x80] ss:$8 sps:$4 sm:$0xff]  }
  0x96   : > { %v2385_v59 = vld [vmem:[#allocation7 + $0x94] ss:$8 sps:$4 sm:$0xff]   ;;  %v2387_v60 = vld [vmem:[#allocation7 + $0x90] ss:$8 sps:$4 sm:$0xff]   ;;  %v2324_v61 = vld [vmem:[%s2841_s16 + $0x40] ss:$8 sps:$4 sm:$0xff]  }
  0x97   : > { %2111 = vmatpush1.bf16.msra.mxu1 %v2366_v40  ;;  %v2388_v62 = vld [vmem:[#allocation7 + $0xa4] ss:$8 sps:$4 sm:$0xff]   ;;  %v2325_v63 = vld [vmem:[%s2841_s16 + $0x54] ss:$8 sps:$4 sm:$0xff]   ;;  %v2390_v0 = vld [vmem:[#allocation7 + $0xa0] ss:$8 sps:$4 sm:$0xff]  }
  0x98   : > { %699 = vmatpush1.bf16.msra.mxu0 %v2279_v11  ;;  %2113 = vmatprep.subr.bf16.mxu1 %v2367_v41  ;;  %v2391_v1 = vld [vmem:[#allocation7 + $0xb4] ss:$8 sps:$4 sm:$0xff]   ;;  %v2393_v2 = vld [vmem:[#allocation7 + $0xb0] ss:$8 sps:$4 sm:$0xff]   ;;  %v2394_v4 = vld [vmem:[#allocation7 + $0xc4] ss:$8 sps:$4 sm:$0xff]  }
  0x99   : > { %700 = vmatprep.subr.bf16.mxu0 %v2280_v12  ;;  %v2327_v3 = vld [vmem:[%s2841_s16 + $0x50] ss:$8 sps:$4 sm:$0xff]   ;;  %v2328_v5 = vld [vmem:[%s2841_s16 + $0x64] ss:$8 sps:$4 sm:$0xff]   ;;  %v2396_v6 = vld [vmem:[#allocation7 + $0xc0] ss:$8 sps:$4 sm:$0xff]  }
  0x9a   : > { %v2397_v7 = vld [vmem:[#allocation7 + $0xd4] ss:$8 sps:$4 sm:$0xff]   ;;  %v2399_v8 = vld [vmem:[#allocation7 + $0xd0] ss:$8 sps:$4 sm:$0xff]   ;;  %v2330_v9 = vld [vmem:[%s2841_s16 + $0x60] ss:$8 sps:$4 sm:$0xff]  }
  0x9b   : > { %2115 = vmatpush1.bf16.msra.mxu1 %v2369_v42  ;;  %v2400_v10 = vld [vmem:[#allocation7 + $0xe4] ss:$8 sps:$4 sm:$0xff]   ;;  %v2331_v11 = vld [vmem:[%s2841_s16 + $0x74] ss:$8 sps:$4 sm:$0xff]   ;;  %v2333_v12 = vld [vmem:[%s2841_s16 + $0x70] ss:$8 sps:$4 sm:$0xff]  }
  0x9c   : > { %701 = vmatpush1.bf16.msra.mxu0 %v2282_v14  ;;  %2117 = vmatprep.subr.bf16.mxu1 %v2370_v44  ;;  %v2334_v13 = vld [vmem:[%s2841_s16 + $0x84] ss:$8 sps:$4 sm:$0xff]   ;;  %v2336_v14 = vld [vmem:[%s2841_s16 + $0x80] ss:$8 sps:$4 sm:$0xff]   ;;  %v2883_v33 = vshrl.u32 %v358_v32, 7  ;;  %s3297_s26 = scalar_lea.vmem [#allocation8], %s1951_s14 }
  0x9d   : > { %702 = vmatprep.subr.bf16.mxu0 %v2283_v15  ;;  %v2337_v15 = vld [vmem:[%s2841_s16 + $0x94] ss:$8 sps:$4 sm:$0xff]   ;;  %s1823_s9 = scalar_lea.sflag [#allocation4], %s2835_s13  ;;  %p3521_p8 = scmp.ne.s32.totalorder %s3482_s30, 0 }
  0x9e   : > { %v360_v34 = vsub.s32 0, %v2883_v33  ;;  %v364_v36 = vsub.s32 1, %v2883_v33  ;;  %s2052_s17 = sshll.u32 (%p3521_p8), %s2687_s22, 5 }
  0x9f   : > { %2119 = vmatpush1.bf16.msra.mxu1 %v2372_v46  ;;  %s1831_s23 = ssub.s32 (%p3521_p8), 65, %s2052_s17 }
  0xa0   : > { %703 = vmatpush1.bf16.msra.mxu0 %v2285_v16  ;;  %2121 = vmatprep.subr.bf16.mxu1 %v2373_v47  ;;  %v2339_v16 = vld [vmem:[%s2841_s16 + $0x90] ss:$8 sps:$4 sm:$0xff]   ;;  %p1832_p9 = scmp.lt.s32.totalorder (%p3521_p8), %s1831_s23, 32 }
  0xa1   : > { %704 = vmatprep.subr.bf16.mxu0 %v2286_v17  ;;  %v2340_v17 = vld [vmem:[%s2841_s16 + $0xa4] ss:$8 sps:$4 sm:$0xff]  }
  0xa3   : > { %2123 = vmatpush1.bf16.msra.mxu1 %v2375_v48 }
  0xa4   : > { %705 = vmatpush1.bf16.msra.mxu0 %v2288_v18  ;;  %2125 = vmatprep.subr.bf16.mxu1 %v2376_v50  ;;  %v2342_v18 = vld [vmem:[%s2841_s16 + $0xa0] ss:$8 sps:$4 sm:$0xff]  }
  0xa5   : > { %706 = vmatprep.subr.bf16.mxu0 %v2289_v19  ;;  %v2343_v19 = vld [vmem:[%s2841_s16 + $0xb4] ss:$8 sps:$4 sm:$0xff]  }
  0xa7   : > { %2127 = vmatpush1.bf16.msra.mxu1 %v2378_v52 }
  0xa8   : > { %707 = vmatpush1.bf16.msra.mxu0 %v2291_v20  ;;  %2129 = vmatprep.subr.bf16.mxu1 %v2379_v53  ;;  %v2402_v20 = vld [vmem:[#allocation7 + $0xe0] ss:$8 sps:$4 sm:$0xff]  }
  0xa9   : > { %708 = vmatprep.subr.bf16.mxu0 %v2292_v21  ;;  %v2345_v21 = vld [vmem:[%s2841_s16 + $0xb0] ss:$8 sps:$4 sm:$0xff]  }
  0xab   : > { %2131 = vmatpush1.bf16.msra.mxu1 %v2381_v54 }
  0xac   : > { %709 = vmatpush1.bf16.msra.mxu0 %v2294_v22  ;;  %2133 = vmatprep.subr.bf16.mxu1 %v2382_v56  ;;  %v2403_v22 = vld [vmem:[#allocation7 + $0xf4] ss:$8 sps:$4 sm:$0xff]  }
  0xad   : > { %710 = vmatprep.subr.bf16.mxu0 %v2295_v23  ;;  %v2346_v23 = vld [vmem:[%s2841_s16 + $0xc4] ss:$8 sps:$4 sm:$0xff]  }
  0xaf   : > { %2135 = vmatpush1.bf16.msra.mxu1 %v2384_v58 }
  0xb0   : > { %711 = vmatpush1.bf16.msra.mxu0 %v2297_v24  ;;  %2137 = vmatprep.subr.bf16.mxu1 %v2385_v59  ;;  %v2405_v24 = vld [vmem:[#allocation7 + $0xf0] ss:$8 sps:$4 sm:$0xff]  }
  0xb1   : > { %712 = vmatprep.subr.bf16.mxu0 %v2298_v25  ;;  %v2348_v25 = vld [vmem:[%s2841_s16 + $0xc0] ss:$8 sps:$4 sm:$0xff]  }
  0xb3   : > { %2139 = vmatpush1.bf16.msra.mxu1 %v2387_v60 }
  0xb4   : > { %713 = vmatpush1.bf16.msra.mxu0 %v2300_v26  ;;  %2141 = vmatprep.subr.bf16.mxu1 %v2388_v62  ;;  %v2349_v26 = vld [vmem:[%s2841_s16 + $0xd4] ss:$8 sps:$4 sm:$0xff]  }
  0xb5   : > { %714 = vmatprep.subr.bf16.mxu0 %v2301_v27  ;;  %v2351_v27 = vld [vmem:[%s2841_s16 + $0xd0] ss:$8 sps:$4 sm:$0xff]  }
  0xb7   : > { %2143 = vmatpush1.bf16.msra.mxu1 %v2390_v0 }
  0xb8   : > { %715 = vmatpush1.bf16.msra.mxu0 %v2303_v28  ;;  %2145 = vmatprep.subr.bf16.mxu1 %v2391_v1  ;;  %v2352_v28 = vld [vmem:[%s2841_s16 + $0xe4] ss:$8 sps:$4 sm:$0xff]  }
  0xb9   : > { %716 = vmatprep.subr.bf16.mxu0 %v2304_v29  ;;  %v2354_v29 = vld [vmem:[%s2841_s16 + $0xe0] ss:$8 sps:$4 sm:$0xff]  }
  0xbb   : > { %2147 = vmatpush1.bf16.msra.mxu1 %v2393_v2 }
  0xbc   : > { %717 = vmatpush1.bf16.msra.mxu0 %v2306_v30  ;;  %2149 = vmatprep.subr.bf16.mxu1 %v2394_v4  ;;  %v2355_v30 = vld [vmem:[%s2841_s16 + $0xf4] ss:$8 sps:$4 sm:$0xff]  }
  0xbd   : > { %718 = vmatprep.subr.bf16.mxu0 %v2307_v31  ;;  %v2357_v31 = vld [vmem:[%s2841_s16 + $0xf0] ss:$8 sps:$4 sm:$0xff]  }
  0xbf   : > { %2151 = vmatpush1.bf16.msra.mxu1 %v2396_v6 }
  0xc0   : > { %719 = vmatpush1.bf16.msra.mxu0 %v2309_v35  ;;  %2153 = vmatprep.subr.bf16.mxu1 %v2397_v7  ;;  %v356_v35 = vld [vmem:[%s3457_s2] sm:$0x3] }
  0xc1   : > { %v2896_v38 = vrot.slane %v356_v35, %v364_v36 }
  0xc3   : > { %721 = vmatmul.mubr.bf16.vlgmr.msra.gmra.mrb[0].mxu0 %v2310_v37  ;;  %2155 = vmatpush1.bf16.msra.mxu1 %v2399_v8  ;;  %v2892_v37 = vrot.slane %v356_v35, %v360_v34 }
  0xc4   : > { %730 = vmatprep.mubr.bf16.mxu0 %v2313_v39  ;;  %2157 = vmatprep.subr.bf16.mxu1 %v2400_v10 }
  0xc7   : > { %2159 = vmatpush1.bf16.msra.mxu1 %v2402_v20 }
  0xc8   : > { %2161 = vmatprep.subr.bf16.mxu1 %v2403_v22 }
  0xcb   : > { %731 = vmatmul.mubr.bf16.gmra.mrb[4].mxu0 %v2315_v43  ;;  %2163 = vmatpush1.bf16.msra.mxu1 %v2405_v24 }
  0xcc   : > { %740 = vmatprep.mubr.bf16.mxu0 %v2316_v45 }
  0xd3   : > { %741 = vmatmul.mubr.bf16.gmra.mrb[8].mxu0 %v2318_v49 }
  0xd4   : > { %750 = vmatprep.mubr.bf16.mxu0 %v2319_v51 }
  0xdb   : > { %751 = vmatmul.mubr.bf16.gmra.mrb[12].mxu0 %v2321_v55 }
  0xdc   : > { %760 = vmatprep.mubr.bf16.mxu0 %v2322_v57 }
  0xe3   : > { %761 = vmatmul.mubr.bf16.gmra.mrb[16].mxu0 %v2324_v61 }
  0xe4   : > { %770 = vmatprep.mubr.bf16.mxu0 %v2325_v63 }
  0xeb   : > { %771 = vmatmul.mubr.bf16.gmra.mrb[20].mxu0 %v2327_v3 }
  0xec   : > { %780 = vmatprep.mubr.bf16.mxu0 %v2328_v5 }
  0xf3   : > { %781 = vmatmul.mubr.bf16.gmra.mrb[24].mxu0 %v2330_v9 }
  0xf4   : > { %790 = vmatprep.mubr.bf16.mxu0 %v2331_v11 }
  0xfb   : > { %791 = vmatmul.mubr.bf16.gmra.mrb[28].mxu0 %v2333_v12 }
  0xfc   : > { %800 = vmatprep.mubr.bf16.mxu0 %v2334_v13 }
 0x103   : > { %801 = vmatmul.mubr.bf16.gmra.mrb[32].mxu0 %v2336_v14 }
 0x104   : > { %810 = vmatprep.mubr.bf16.mxu0 %v2337_v15 }
 0x10b   : > { %811 = vmatmul.mubr.bf16.gmra.mrb[36].mxu0 %v2339_v16 }
 0x10c   : > { %820 = vmatprep.mubr.bf16.mxu0 %v2340_v17 }
 0x113   : > { %821 = vmatmul.mubr.bf16.gmra.mrb[40].mxu0 %v2342_v18 }
 0x114   : > { %830 = vmatprep.mubr.bf16.mxu0 %v2343_v19 }
 0x11b   : > { %831 = vmatmul.mubr.bf16.gmra.mrb[44].mxu0 %v2345_v21 }
 0x11c   : > { %840 = vmatprep.mubr.bf16.mxu0 %v2346_v23 }
 0x123   : > { %841 = vmatmul.mubr.bf16.gmra.mrb[48].mxu0 %v2348_v25 }
 0x124   : > { %850 = vmatprep.mubr.bf16.mxu0 %v2349_v26 }
 0x12b   : > { %851 = vmatmul.mubr.bf16.gmra.mrb[52].mxu0 %v2351_v27 }
 0x12c   : > { %860 = vmatprep.mubr.bf16.mxu0 %v2352_v28 }
 0x133   : > { %861 = vmatmul.mubr.bf16.gmra.mrb[56].mxu0 %v2354_v29 }
 0x134   : > { %870 = vmatprep.mubr.bf16.mxu0 %v2355_v30 }
 0x13b   : > { %871 = vmatmul.mubr.bf16.gmra.mrb[60].mxu0 %v2357_v31 }
 0x196   : > { %v722_v39 = vpop.f32.mrb[0].mxu0 }
 0x197   : > { %v723_v40 = vadd.f32 %v722_v39, %v2892_v37  ;;  %v724_v41 = vpop.f32.mrb[1].mxu0 }
 0x198   : > { %v726_v42 = vpop.f32.mrb[2].mxu0  ;;  %v725_v43 = vadd.f32 %v724_v41, %v2896_v38 }
 0x199   : > { %v728_v44 = vpop.f32.mrb[3].mxu0  ;;  %v881_v47 = vmax.f32 %v723_v40, 0.0  ;;  %v727_v48 = vadd.f32 %v726_v42, %v2892_v37 }
 0x19a   : > { %v729_v45 = vadd.f32 %v728_v44, %v2896_v38  ;;  %v882_v46 = vmax.f32 %v725_v43, 0.0 }
 0x19b   : > { %v883_v51 = vmax.f32 %v727_v48, 0.0 }
 0x19c   : > { %v884_v49 = vmax.f32 %v729_v45, 0.0  ;;  %1117 = vmatprep.mubr.f32.mxu1 %v882_v46 }
 0x19d   : > { %1118 = vmatmul.mubr.f32.vlgmr.msra.gmra.mrb[0].mxu1 %v881_v47 }
 0x19e   : > { %v732_v50 = vpop.f32.mrb[4].mxu0  ;;  %1123 = vmatprep.mubr.f32.mxu1 %v884_v49 }
 0x19f   : > { %v733_v52 = vadd.f32 %v732_v50, %v2892_v37  ;;  %v734_v53 = vpop.f32.mrb[5].mxu0 }
 0x1a0   : > { %v735_v54 = vadd.f32 %v734_v53, %v2896_v38  ;;  %v736_v55 = vpop.f32.mrb[6].mxu0 }
 0x1a1   : > { %v738_v56 = vpop.f32.mrb[7].mxu0  ;;  %1124 = vmatmul.mubr.f32.gmra.mrb[2].mxu1 %v883_v51  ;;  %v885_v59 = vmax.f32 %v733_v52, 0.0  ;;  %v737_v60 = vadd.f32 %v736_v55, %v2892_v37 }
 0x1a2   : > { %v886_v57 = vmax.f32 %v735_v54, 0.0  ;;  %v739_v58 = vadd.f32 %v738_v56, %v2896_v38 }
 0x1a3   : > { %v887_v63 = vmax.f32 %v737_v60, 0.0 }
 0x1a4   : > { %v888_v61 = vmax.f32 %v739_v58, 0.0  ;;  %1129 = vmatprep.mubr.f32.mxu1 %v886_v57 }
 0x1a5   : > { %1130 = vmatmul.mubr.f32.gmra.mrb[4].mxu1 %v885_v59 }
 0x1a6   : > { %v742_v62 = vpop.f32.mrb[8].mxu0  ;;  %1135 = vmatprep.mubr.f32.mxu1 %v888_v61 }
 0x1a7   : > { %v743_v0 = vadd.f32 %v742_v62, %v2892_v37  ;;  %v744_v1 = vpop.f32.mrb[9].mxu0 }
 0x1a8   : > { %v745_v2 = vadd.f32 %v744_v1, %v2896_v38  ;;  %v746_v3 = vpop.f32.mrb[10].mxu0 }
 0x1a9   : > { %v748_v4 = vpop.f32.mrb[11].mxu0  ;;  %1136 = vmatmul.mubr.f32.gmra.mrb[6].mxu1 %v887_v63  ;;  %v889_v7 = vmax.f32 %v743_v0, 0.0  ;;  %v747_v8 = vadd.f32 %v746_v3, %v2892_v37 }
 0x1aa   : > { %v890_v5 = vmax.f32 %v745_v2, 0.0  ;;  %v749_v6 = vadd.f32 %v748_v4, %v2896_v38 }
 0x1ab   : > { %v891_v11 = vmax.f32 %v747_v8, 0.0 }
 0x1ac   : > { %v892_v9 = vmax.f32 %v749_v6, 0.0  ;;  %1141 = vmatprep.mubr.f32.mxu1 %v890_v5 }
 0x1ad   : > { %1142 = vmatmul.mubr.f32.gmra.mrb[8].mxu1 %v889_v7 }
 0x1ae   : > { %v752_v10 = vpop.f32.mrb[12].mxu0  ;;  %1147 = vmatprep.mubr.f32.mxu1 %v892_v9 }
 0x1af   : > { %v753_v12 = vadd.f32 %v752_v10, %v2892_v37  ;;  %v754_v13 = vpop.f32.mrb[13].mxu0 }
 0x1b0   : > { %v755_v14 = vadd.f32 %v754_v13, %v2896_v38  ;;  %v756_v15 = vpop.f32.mrb[14].mxu0 }
 0x1b1   : > { %v758_v16 = vpop.f32.mrb[15].mxu0  ;;  %1148 = vmatmul.mubr.f32.gmra.mrb[10].mxu1 %v891_v11  ;;  %v893_v19 = vmax.f32 %v753_v12, 0.0  ;;  %v757_v20 = vadd.f32 %v756_v15, %v2892_v37 }
 0x1b2   : > { %v894_v17 = vmax.f32 %v755_v14, 0.0  ;;  %v759_v18 = vadd.f32 %v758_v16, %v2896_v38 }
 0x1b3   : > { %v895_v23 = vmax.f32 %v757_v20, 0.0 }
 0x1b4   : > { %v896_v21 = vmax.f32 %v759_v18, 0.0  ;;  %1153 = vmatprep.mubr.f32.mxu1 %v894_v17 }
 0x1b5   : > { %1154 = vmatmul.mubr.f32.gmra.mrb[12].mxu1 %v893_v19 }
 0x1b6   : > { %v762_v22 = vpop.f32.mrb[16].mxu0  ;;  %1159 = vmatprep.mubr.f32.mxu1 %v896_v21 }
 0x1b7   : > { %v763_v24 = vadd.f32 %v762_v22, %v2892_v37  ;;  %v764_v25 = vpop.f32.mrb[17].mxu0 }
 0x1b8   : > { %v765_v26 = vadd.f32 %v764_v25, %v2896_v38  ;;  %v766_v27 = vpop.f32.mrb[18].mxu0 }
 0x1b9   : > { %v768_v28 = vpop.f32.mrb[19].mxu0  ;;  %1160 = vmatmul.mubr.f32.gmra.mrb[14].mxu1 %v895_v23  ;;  %v897_v31 = vmax.f32 %v763_v24, 0.0  ;;  %v767_v32 = vadd.f32 %v766_v27, %v2892_v37 }
 0x1ba   : > { %v898_v29 = vmax.f32 %v765_v26, 0.0  ;;  %v769_v30 = vadd.f32 %v768_v28, %v2896_v38 }
 0x1bb   : > { %v899_v40 = vmax.f32 %v767_v32, 0.0 }
 0x1bc   : > { %v900_v35 = vmax.f32 %v769_v30, 0.0  ;;  %1165 = vmatprep.mubr.f32.mxu1 %v898_v29 }
 0x1bd   : > { %1166 = vmatmul.mubr.f32.gmra.mrb[16].mxu1 %v897_v31 }
 0x1be   : > { %v772_v39 = vpop.f32.mrb[20].mxu0  ;;  %1171 = vmatprep.mubr.f32.mxu1 %v900_v35 }
 0x1bf   : > { %v773_v41 = vadd.f32 %v772_v39, %v2892_v37  ;;  %v774_v42 = vpop.f32.mrb[21].mxu0 }
 0x1c0   : > { %v775_v43 = vadd.f32 %v774_v42, %v2896_v38  ;;  %v776_v44 = vpop.f32.mrb[22].mxu0 }
 0x1c1   : > { %v778_v45 = vpop.f32.mrb[23].mxu0  ;;  %1172 = vmatmul.mubr.f32.gmra.mrb[18].mxu1 %v899_v40  ;;  %v901_v48 = vmax.f32 %v773_v41, 0.0  ;;  %v777_v49 = vadd.f32 %v776_v44, %v2892_v37 }
 0x1c2   : > { %v902_v46 = vmax.f32 %v775_v43, 0.0  ;;  %v779_v47 = vadd.f32 %v778_v45, %v2896_v38 }
 0x1c3   : > { %v903_v52 = vmax.f32 %v777_v49, 0.0 }
 0x1c4   : > { %v904_v50 = vmax.f32 %v779_v47, 0.0  ;;  %1177 = vmatprep.mubr.f32.mxu1 %v902_v46 }
 0x1c5   : > { %1178 = vmatmul.mubr.f32.gmra.mrb[20].mxu1 %v901_v48 }
 0x1c6   : > { %v782_v51 = vpop.f32.mrb[24].mxu0  ;;  %1183 = vmatprep.mubr.f32.mxu1 %v904_v50 }
 0x1c7   : > { %v783_v53 = vadd.f32 %v782_v51, %v2892_v37  ;;  %v784_v54 = vpop.f32.mrb[25].mxu0 }
 0x1c8   : > { %v785_v55 = vadd.f32 %v784_v54, %v2896_v38  ;;  %v786_v56 = vpop.f32.mrb[26].mxu0 }
 0x1c9   : > { %v788_v57 = vpop.f32.mrb[27].mxu0  ;;  %1184 = vmatmul.mubr.f32.gmra.mrb[22].mxu1 %v903_v52  ;;  %v905_v60 = vmax.f32 %v783_v53, 0.0  ;;  %v787_v61 = vadd.f32 %v786_v56, %v2892_v37 }
 0x1ca   : > { %v906_v58 = vmax.f32 %v785_v55, 0.0  ;;  %v789_v59 = vadd.f32 %v788_v57, %v2896_v38 }
 0x1cb   : > { %v907_v0 = vmax.f32 %v787_v61, 0.0 }
 0x1cc   : > { %v908_v62 = vmax.f32 %v789_v59, 0.0  ;;  %1189 = vmatprep.mubr.f32.mxu1 %v906_v58 }
 0x1cd   : > { %1190 = vmatmul.mubr.f32.gmra.mrb[24].mxu1 %v905_v60 }
 0x1ce   : > { %v792_v63 = vpop.f32.mrb[28].mxu0  ;;  %1195 = vmatprep.mubr.f32.mxu1 %v908_v62 }
 0x1cf   : > { %v793_v1 = vadd.f32 %v792_v63, %v2892_v37  ;;  %v794_v2 = vpop.f32.mrb[29].mxu0 }
 0x1d0   : > { %v795_v3 = vadd.f32 %v794_v2, %v2896_v38  ;;  %v796_v4 = vpop.f32.mrb[30].mxu0 }
 0x1d1   : > { %v798_v5 = vpop.f32.mrb[31].mxu0  ;;  %1196 = vmatmul.mubr.f32.gmra.mrb[26].mxu1 %v907_v0  ;;  %v909_v8 = vmax.f32 %v793_v1, 0.0  ;;  %v797_v9 = vadd.f32 %v796_v4, %v2892_v37 }
 0x1d2   : > { %v910_v6 = vmax.f32 %v795_v3, 0.0  ;;  %v799_v7 = vadd.f32 %v798_v5, %v2896_v38 }
 0x1d3   : > { %v911_v12 = vmax.f32 %v797_v9, 0.0 }
 0x1d4   : > { %v912_v10 = vmax.f32 %v799_v7, 0.0  ;;  %1201 = vmatprep.mubr.f32.mxu1 %v910_v6 }
 0x1d5   : > { %1202 = vmatmul.mubr.f32.gmra.mrb[28].mxu1 %v909_v8 }
 0x1d6   : > { %v802_v11 = vpop.f32.mrb[32].mxu0  ;;  %1207 = vmatprep.mubr.f32.mxu1 %v912_v10 }
 0x1d7   : > { %v803_v13 = vadd.f32 %v802_v11, %v2892_v37  ;;  %v804_v14 = vpop.f32.mrb[33].mxu0 }
 0x1d8   : > { %v805_v15 = vadd.f32 %v804_v14, %v2896_v38  ;;  %v806_v16 = vpop.f32.mrb[34].mxu0 }
 0x1d9   : > { %v808_v17 = vpop.f32.mrb[35].mxu0  ;;  %1208 = vmatmul.mubr.f32.gmra.mrb[30].mxu1 %v911_v12  ;;  %v913_v20 = vmax.f32 %v803_v13, 0.0  ;;  %v807_v21 = vadd.f32 %v806_v16, %v2892_v37 }
 0x1da   : > { %v914_v18 = vmax.f32 %v805_v15, 0.0  ;;  %v809_v19 = vadd.f32 %v808_v17, %v2896_v38 }
 0x1db   : > { %v915_v24 = vmax.f32 %v807_v21, 0.0 }
 0x1dc   : > { %v916_v22 = vmax.f32 %v809_v19, 0.0  ;;  %1213 = vmatprep.mubr.f32.mxu1 %v914_v18 }
 0x1dd   : > { %1214 = vmatmul.mubr.f32.gmra.mrb[32].mxu1 %v913_v20 }
 0x1de   : > { %v812_v23 = vpop.f32.mrb[36].mxu0  ;;  %1219 = vmatprep.mubr.f32.mxu1 %v916_v22 }
 0x1df   : > { %v813_v25 = vadd.f32 %v812_v23, %v2892_v37  ;;  %v814_v26 = vpop.f32.mrb[37].mxu0 }
 0x1e0   : > { %v815_v27 = vadd.f32 %v814_v26, %v2896_v38  ;;  %v816_v28 = vpop.f32.mrb[38].mxu0 }
 0x1e1   : > { %v818_v29 = vpop.f32.mrb[39].mxu0  ;;  %1220 = vmatmul.mubr.f32.gmra.mrb[34].mxu1 %v915_v24  ;;  %v917_v32 = vmax.f32 %v813_v25, 0.0  ;;  %v817_v35 = vadd.f32 %v816_v28, %v2892_v37 }
 0x1e2   : > { %v918_v30 = vmax.f32 %v815_v27, 0.0  ;;  %v819_v31 = vadd.f32 %v818_v29, %v2896_v38 }
 0x1e3   : > { %v919_v41 = vmax.f32 %v817_v35, 0.0 }
 0x1e4   : > { %v920_v39 = vmax.f32 %v819_v31, 0.0  ;;  %1225 = vmatprep.mubr.f32.mxu1 %v918_v30 }
 0x1e5   : > { %1226 = vmatmul.mubr.f32.gmra.mrb[36].mxu1 %v917_v32 }
 0x1e6   : > { %v822_v40 = vpop.f32.mrb[40].mxu0  ;;  %1231 = vmatprep.mubr.f32.mxu1 %v920_v39 }
 0x1e7   : > { %v823_v42 = vadd.f32 %v822_v40, %v2892_v37  ;;  %v824_v43 = vpop.f32.mrb[41].mxu0 }
 0x1e8   : > { %v825_v44 = vadd.f32 %v824_v43, %v2896_v38  ;;  %v826_v45 = vpop.f32.mrb[42].mxu0 }
 0x1e9   : > { %v828_v46 = vpop.f32.mrb[43].mxu0  ;;  %1232 = vmatmul.mubr.f32.gmra.mrb[38].mxu1 %v919_v41  ;;  %v921_v49 = vmax.f32 %v823_v42, 0.0  ;;  %v827_v50 = vadd.f32 %v826_v45, %v2892_v37 }
 0x1ea   : > { %v922_v47 = vmax.f32 %v825_v44, 0.0  ;;  %v829_v48 = vadd.f32 %v828_v46, %v2896_v38 }
 0x1eb   : > { %v923_v53 = vmax.f32 %v827_v50, 0.0 }
 0x1ec   : > { %v924_v51 = vmax.f32 %v829_v48, 0.0  ;;  %1237 = vmatprep.mubr.f32.mxu1 %v922_v47 }
 0x1ed   : > { %1238 = vmatmul.mubr.f32.gmra.mrb[40].mxu1 %v921_v49 }
 0x1ee   : > { %v832_v52 = vpop.f32.mrb[44].mxu0  ;;  %1243 = vmatprep.mubr.f32.mxu1 %v924_v51 }
 0x1ef   : > { %v833_v54 = vadd.f32 %v832_v52, %v2892_v37  ;;  %v834_v55 = vpop.f32.mrb[45].mxu0 }
 0x1f0   : > { %v835_v56 = vadd.f32 %v834_v55, %v2896_v38  ;;  %v836_v57 = vpop.f32.mrb[46].mxu0 }
 0x1f1   : > { %v838_v58 = vpop.f32.mrb[47].mxu0  ;;  %1244 = vmatmul.mubr.f32.gmra.mrb[42].mxu1 %v923_v53  ;;  %v925_v61 = vmax.f32 %v833_v54, 0.0  ;;  %v837_v62 = vadd.f32 %v836_v57, %v2892_v37  ;;  %v1041_v54 = vld [vmem:[%s3459_s4] sm:$0x3] }
 0x1f2   : > { %v926_v59 = vmax.f32 %v835_v56, 0.0  ;;  %v839_v60 = vadd.f32 %v838_v58, %v2896_v38  ;;  %v2967_v55 = vrot.slane %v1041_v54, %v360_v34 }
 0x1f3   : > { %v927_v1 = vmax.f32 %v837_v62, 0.0 }
 0x1f4   : > { %v928_v63 = vmax.f32 %v839_v60, 0.0  ;;  %1249 = vmatprep.mubr.f32.mxu1 %v926_v59 }
 0x1f5   : > { %1250 = vmatmul.mubr.f32.gmra.mrb[44].mxu1 %v925_v61 }
 0x1f6   : > { %v842_v0 = vpop.f32.mrb[48].mxu0  ;;  %1255 = vmatprep.mubr.f32.mxu1 %v928_v63 }
 0x1f7   : > { %v843_v2 = vadd.f32 %v842_v0, %v2892_v37  ;;  %v844_v3 = vpop.f32.mrb[49].mxu0 }
 0x1f8   : > { %v845_v4 = vadd.f32 %v844_v3, %v2896_v38  ;;  %v846_v5 = vpop.f32.mrb[50].mxu0 }
 0x1f9   : > { %v848_v6 = vpop.f32.mrb[51].mxu0  ;;  %1256 = vmatmul.mubr.f32.gmra.mrb[46].mxu1 %v927_v1  ;;  %v929_v9 = vmax.f32 %v843_v2, 0.0  ;;  %v847_v10 = vadd.f32 %v846_v5, %v2892_v37 }
 0x1fa   : > { %v930_v7 = vmax.f32 %v845_v4, 0.0  ;;  %v849_v8 = vadd.f32 %v848_v6, %v2896_v38 }
 0x1fb   : > { %v931_v13 = vmax.f32 %v847_v10, 0.0 }
 0x1fc   : > { %v932_v11 = vmax.f32 %v849_v8, 0.0  ;;  %1261 = vmatprep.mubr.f32.mxu1 %v930_v7 }
 0x1fd   : > { %1262 = vmatmul.mubr.f32.gmra.mrb[48].mxu1 %v929_v9 }
 0x1fe   : > { %v852_v12 = vpop.f32.mrb[52].mxu0  ;;  %1267 = vmatprep.mubr.f32.mxu1 %v932_v11 }
 0x1ff   : > { %v853_v14 = vadd.f32 %v852_v12, %v2892_v37  ;;  %v854_v15 = vpop.f32.mrb[53].mxu0 }
 0x200   : > { %v855_v16 = vadd.f32 %v854_v15, %v2896_v38  ;;  %v856_v17 = vpop.f32.mrb[54].mxu0 }
 0x201   : > { %v858_v18 = vpop.f32.mrb[55].mxu0  ;;  %1268 = vmatmul.mubr.f32.gmra.mrb[50].mxu1 %v931_v13  ;;  %v933_v21 = vmax.f32 %v853_v14, 0.0  ;;  %v857_v22 = vadd.f32 %v856_v17, %v2892_v37 }
 0x202   : > { %v934_v19 = vmax.f32 %v855_v16, 0.0  ;;  %v859_v20 = vadd.f32 %v858_v18, %v2896_v38 }
 0x203   : > { %v935_v25 = vmax.f32 %v857_v22, 0.0 }
 0x204   : > { %v936_v23 = vmax.f32 %v859_v20, 0.0  ;;  %1273 = vmatprep.mubr.f32.mxu1 %v934_v19 }
 0x205   : > { %1274 = vmatmul.mubr.f32.gmra.mrb[52].mxu1 %v933_v21 }
 0x206   : > { %v862_v24 = vpop.f32.mrb[56].mxu0  ;;  %1279 = vmatprep.mubr.f32.mxu1 %v936_v23 }
 0x207   : > { %v863_v26 = vadd.f32 %v862_v24, %v2892_v37  ;;  %v864_v27 = vpop.f32.mrb[57].mxu0 }
 0x208   : > { %v865_v28 = vadd.f32 %v864_v27, %v2896_v38  ;;  %v866_v29 = vpop.f32.mrb[58].mxu0 }
 0x209   : > { %v868_v30 = vpop.f32.mrb[59].mxu0  ;;  %1280 = vmatmul.mubr.f32.gmra.mrb[54].mxu1 %v935_v25  ;;  %v937_v35 = vmax.f32 %v863_v26, 0.0  ;;  %v867_v39 = vadd.f32 %v866_v29, %v2892_v37 }
 0x20a   : > { %v938_v31 = vmax.f32 %v865_v28, 0.0  ;;  %v869_v32 = vadd.f32 %v868_v30, %v2896_v38 }
 0x20b   : > { %v939_v42 = vmax.f32 %v867_v39, 0.0 }
 0x20c   : > { %v940_v40 = vmax.f32 %v869_v32, 0.0  ;;  %1285 = vmatprep.mubr.f32.mxu1 %v938_v31 }
 0x20d   : > { %1286 = vmatmul.mubr.f32.gmra.mrb[56].mxu1 %v937_v35 }
 0x20e   : > { %v872_v41 = vpop.f32.mrb[60].mxu0  ;;  %1291 = vmatprep.mubr.f32.mxu1 %v940_v40 }
 0x20f   : > { %v873_v43 = vadd.f32 %v872_v41, %v2892_v37  ;;  %v874_v44 = vpop.f32.mrb[61].mxu0 }
 0x210   : > { %v875_v45 = vadd.f32 %v874_v44, %v2896_v38  ;;  %v876_v46 = vpop.f32.mrb[62].mxu0 }
 0x211   : > { %v878_v47 = vpop.f32.mrb[63].mxu0  ;;  %1292 = vmatmul.mubr.f32.gmra.mrb[58].mxu1 %v939_v42  ;;  %v941_v50 = vmax.f32 %v873_v43, 0.0  ;;  %v877_v51 = vadd.f32 %v876_v46, %v2892_v37 }
 0x212   : > { %v942_v48 = vmax.f32 %v875_v45, 0.0  ;;  %v879_v49 = vadd.f32 %v878_v47, %v2896_v38  ;;  %v2971_v38 = vrot.slane %v1041_v54, %v364_v36 }
 0x213   : > { %v943_v53 = vmax.f32 %v877_v51, 0.0 }
 0x214   : > { %v944_v52 = vmax.f32 %v879_v49, 0.0  ;;  %1297 = vmatprep.mubr.f32.mxu1 %v942_v48 }
 0x215   : > { %1298 = vmatmul.mubr.f32.gmra.mrb[60].mxu1 %v941_v50 }
 0x216   : > { %1303 = vmatprep.mubr.f32.mxu1 %v944_v52 }
 0x219   : > { %1304 = vmatmul.mubr.f32.gmra.mrb[62].mxu1 %v943_v53 }
 0x270   : > { %v1119_v56 = vpop.f32.mrb[0].mxu1 }
 0x271   : > { %v2974_v37 = vadd.f32 %v1119_v56, %v2967_v55  ;;  %v1121_v57 = vpop.f32.mrb[1].mxu1 }
 0x272   : > { %v2977_v58 = vadd.f32 %v1121_v57, %v2971_v38 }
 0x273   : > { %v1310_v59 = vmul.f32 %v2974_v37, %v2974_v37 }
 0x274   : > { %v1125_v60 = vpop.f32.mrb[2].mxu1  ;;  %v1311_v34 = vmul.f32 %v2977_v58, %v2977_v58 }
 0x275   : > { %v2984_v61 = vadd.f32 %v1125_v60, %v2967_v55  ;;  %v1127_v33 = vpop.f32.mrb[3].mxu1 }
 0x276   : > { %v2987_v36 = vadd.f32 %v1127_v33, %v2971_v38  ;;  %v1374_v62 = vadd.f32 %v1311_v34, %v1310_v59 }
 0x277   : > { %v1312_v63 = vmul.f32 %v2984_v61, %v2984_v61 }
 0x278   : > { %v1313_v0 = vmul.f32 %v2987_v36, %v2987_v36  ;;  %v1131_v1 = vpop.f32.mrb[4].mxu1  ;;  %1375 = vadd.xlane.f32.xlu0 %v1374_v62 }
 0x279   : > { %v2994_v2 = vadd.f32 %v1131_v1, %v2967_v55  ;;  %v1133_v3 = vpop.f32.mrb[5].mxu1 }
 0x27a   : > { %v2997_v4 = vadd.f32 %v1133_v3, %v2971_v38  ;;  %v1377_v5 = vadd.f32 %v1313_v0, %v1312_v63 }
 0x27b   : > { %v1314_v6 = vmul.f32 %v2994_v2, %v2994_v2 }
 0x27c   : > { %v1137_v7 = vpop.f32.mrb[6].mxu1  ;;  %1378 = vadd.xlane.f32.xlu0 %v1377_v5  ;;  %v1315_v8 = vmul.f32 %v2997_v4, %v2997_v4 }
 0x27d   : > { %v3004_v9 = vadd.f32 %v1137_v7, %v2967_v55  ;;  %v1139_v10 = vpop.f32.mrb[7].mxu1 }
 0x27e   : > { %v3007_v11 = vadd.f32 %v1139_v10, %v2971_v38  ;;  %v1380_v12 = vadd.f32 %v1315_v8, %v1314_v6 }
 0x27f   : > { %v1316_v13 = vmul.f32 %v3004_v9, %v3004_v9 }
 0x280   : > { %v1317_v14 = vmul.f32 %v3007_v11, %v3007_v11  ;;  %v1143_v15 = vpop.f32.mrb[8].mxu1  ;;  %1381 = vadd.xlane.f32.xlu1 %v1380_v12 }
 0x281   : > { %v3014_v16 = vadd.f32 %v1143_v15, %v2967_v55  ;;  %v1145_v17 = vpop.f32.mrb[9].mxu1 }
 0x282   : > { %v3017_v18 = vadd.f32 %v1145_v17, %v2971_v38  ;;  %v1383_v19 = vadd.f32 %v1317_v14, %v1316_v13 }
 0x283   : > { %v1318_v20 = vmul.f32 %v3014_v16, %v3014_v16 }
 0x284   : > { %v1319_v21 = vmul.f32 %v3017_v18, %v3017_v18  ;;  %v1149_v22 = vpop.f32.mrb[10].mxu1  ;;  %1384 = vadd.xlane.f32.xlu1 %v1383_v19 }
 0x285   : > { %v3024_v23 = vadd.f32 %v1149_v22, %v2967_v55  ;;  %v1151_v24 = vpop.f32.mrb[11].mxu1 }
 0x286   : > { %v3027_v25 = vadd.f32 %v1151_v24, %v2971_v38  ;;  %v1386_v26 = vadd.f32 %v1319_v21, %v1318_v20 }
 0x287   : > { %v1320_v27 = vmul.f32 %v3024_v23, %v3024_v23 }
 0x288   : > { %v1321_v28 = vmul.f32 %v3027_v25, %v3027_v25  ;;  %v1155_v29 = vpop.f32.mrb[12].mxu1  ;;  %1387 = vadd.xlane.f32.xlu0 %v1386_v26 }
 0x289   : > { %v3034_v30 = vadd.f32 %v1155_v29, %v2967_v55  ;;  %v1157_v31 = vpop.f32.mrb[13].mxu1 }
 0x28a   : > { %v3037_v32 = vadd.f32 %v1157_v31, %v2971_v38  ;;  %v1389_v35 = vadd.f32 %v1321_v28, %v1320_v27 }
 0x28b   : > { %v1322_v39 = vmul.f32 %v3034_v30, %v3034_v30 }
 0x28c   : > { %v1323_v40 = vmul.f32 %v3037_v32, %v3037_v32  ;;  %v1161_v41 = vpop.f32.mrb[14].mxu1  ;;  %1390 = vadd.xlane.f32.xlu1 %v1389_v35 }
 0x28d   : > { %v3044_v42 = vadd.f32 %v1161_v41, %v2967_v55  ;;  %v1163_v43 = vpop.f32.mrb[15].mxu1 }
 0x28e   : > { %v3047_v44 = vadd.f32 %v1163_v43, %v2971_v38  ;;  %v1392_v45 = vadd.f32 %v1323_v40, %v1322_v39 }
 0x28f   : > { %v1324_v46 = vmul.f32 %v3044_v42, %v3044_v42 }
 0x290   : > { %v1325_v47 = vmul.f32 %v3047_v44, %v3047_v44  ;;  %v1167_v48 = vpop.f32.mrb[16].mxu1  ;;  %1393 = vadd.xlane.f32.xlu0 %v1392_v45 }
 0x291   : > { %v3054_v49 = vadd.f32 %v1167_v48, %v2967_v55  ;;  %v1169_v50 = vpop.f32.mrb[17].mxu1 }
 0x292   : > { %v3057_v51 = vadd.f32 %v1169_v50, %v2971_v38  ;;  %v1395_v52 = vadd.f32 %v1325_v47, %v1324_v46 }
 0x293   : > { %v1326_v53 = vmul.f32 %v3054_v49, %v3054_v49 }
 0x294   : > { %v1327_v54 = vmul.f32 %v3057_v51, %v3057_v51  ;;  %v1173_v56 = vpop.f32.mrb[18].mxu1  ;;  %1396 = vadd.xlane.f32.xlu1 %v1395_v52 }
 0x295   : > { %v3064_v57 = vadd.f32 %v1173_v56, %v2967_v55  ;;  %v1175_v59 = vpop.f32.mrb[19].mxu1 }
 0x296   : > { %v3067_v60 = vadd.f32 %v1175_v59, %v2971_v38  ;;  %v1398_v34 = vadd.f32 %v1327_v54, %v1326_v53 }
 0x297   : > { %v1328_v33 = vmul.f32 %v3064_v57, %v3064_v57 }
 0x298   : > { %v1329_v62 = vmul.f32 %v3067_v60, %v3067_v60  ;;  %v1179_v63 = vpop.f32.mrb[20].mxu1  ;;  %1399 = vadd.xlane.f32.xlu0 %v1398_v34 }
 0x299   : > { %v3074_v0 = vadd.f32 %v1179_v63, %v2967_v55  ;;  %v1181_v1 = vpop.f32.mrb[21].mxu1 }
 0x29a   : > { %v3077_v3 = vadd.f32 %v1181_v1, %v2971_v38  ;;  %v1401_v5 = vadd.f32 %v1329_v62, %v1328_v33 }
 0x29b   : > { %v1330_v6 = vmul.f32 %v3074_v0, %v3074_v0 }
 0x29c   : > { %v1331_v7 = vmul.f32 %v3077_v3, %v3077_v3  ;;  %v1185_v8 = vpop.f32.mrb[22].mxu1  ;;  %1402 = vadd.xlane.f32.xlu1 %v1401_v5 }
 0x29d   : > { %v3084_v10 = vadd.f32 %v1185_v8, %v2967_v55  ;;  %v1187_v12 = vpop.f32.mrb[23].mxu1 }
 0x29e   : > { %v3087_v13 = vadd.f32 %v1187_v12, %v2971_v38  ;;  %v1404_v14 = vadd.f32 %v1331_v7, %v1330_v6 }
 0x29f   : > { %v1332_v15 = vmul.f32 %v3084_v10, %v3084_v10 }
 0x2a0   : > { %v1333_v17 = vmul.f32 %v3087_v13, %v3087_v13  ;;  %v1191_v19 = vpop.f32.mrb[24].mxu1  ;;  %1405 = vadd.xlane.f32.xlu0 %v1404_v14 }
 0x2a1   : > { %v3094_v20 = vadd.f32 %v1191_v19, %v2967_v55  ;;  %v1193_v21 = vpop.f32.mrb[25].mxu1 }
 0x2a2   : > { %v3097_v22 = vadd.f32 %v1193_v21, %v2971_v38  ;;  %v1407_v24 = vadd.f32 %v1333_v17, %v1332_v15 }
 0x2a3   : > { %v1334_v26 = vmul.f32 %v3094_v20, %v3094_v20 }
 0x2a4   : > { %v1335_v27 = vmul.f32 %v3097_v22, %v3097_v22  ;;  %v1197_v28 = vpop.f32.mrb[26].mxu1  ;;  %1408 = vadd.xlane.f32.xlu1 %v1407_v24 }
 0x2a5   : > { %v3104_v29 = vadd.f32 %v1197_v28, %v2967_v55  ;;  %v1199_v31 = vpop.f32.mrb[27].mxu1 }
 0x2a6   : > { %v3107_v35 = vadd.f32 %v1199_v31, %v2971_v38  ;;  %v1410_v39 = vadd.f32 %v1335_v27, %v1334_v26 }
 0x2a7   : > { %v1336_v40 = vmul.f32 %v3104_v29, %v3104_v29 }
 0x2a8   : > { %v1337_v41 = vmul.f32 %v3107_v35, %v3107_v35  ;;  %v1203_v43 = vpop.f32.mrb[28].mxu1  ;;  %1411 = vadd.xlane.f32.xlu0 %v1410_v39 }
 0x2a9   : > { %v3114_v45 = vadd.f32 %v1203_v43, %v2967_v55  ;;  %v1205_v46 = vpop.f32.mrb[29].mxu1 }
 0x2aa   : > { %v3117_v47 = vadd.f32 %v1205_v46, %v2971_v38  ;;  %v1413_v48 = vadd.f32 %v1337_v41, %v1336_v40 }
 0x2ab   : > { %v1338_v50 = vmul.f32 %v3114_v45, %v3114_v45 }
 0x2ac   : > { %v1339_v52 = vmul.f32 %v3117_v47, %v3117_v47  ;;  %v1209_v53 = vpop.f32.mrb[30].mxu1  ;;  %1414 = vadd.xlane.f32.xlu1 %v1413_v48 }
 0x2ad   : > { %v3124_v54 = vadd.f32 %v1209_v53, %v2967_v55  ;;  %v1211_v56 = vpop.f32.mrb[31].mxu1 }
 0x2ae   : > { %v3127_v59 = vadd.f32 %v1211_v56, %v2971_v38  ;;  %v1416_v34 = vadd.f32 %v1339_v52, %v1338_v50 }
 0x2af   : > { %v1340_v33 = vmul.f32 %v3124_v54, %v3124_v54 }
 0x2b0   : > { %v1341_v62 = vmul.f32 %v3127_v59, %v3127_v59  ;;  %v1215_v63 = vpop.f32.mrb[32].mxu1  ;;  %1417 = vadd.xlane.f32.xlu0 %v1416_v34 }
 0x2b1   : > { %v3134_v1 = vadd.f32 %v1215_v63, %v2967_v55  ;;  %v1217_v5 = vpop.f32.mrb[33].mxu1 }
 0x2b2   : > { %v3137_v6 = vadd.f32 %v1217_v5, %v2971_v38  ;;  %v1419_v7 = vadd.f32 %v1341_v62, %v1340_v33 }
 0x2b3   : > { %v1342_v8 = vmul.f32 %v3134_v1, %v3134_v1 }
 0x2b4   : > { %v1343_v12 = vmul.f32 %v3137_v6, %v3137_v6  ;;  %v1221_v14 = vpop.f32.mrb[34].mxu1  ;;  %1420 = vadd.xlane.f32.xlu1 %v1419_v7 }
 0x2b5   : > { %v3144_v15 = vadd.f32 %v1221_v14, %v2967_v55  ;;  %v1223_v17 = vpop.f32.mrb[35].mxu1 }
 0x2b6   : > { %v3147_v19 = vadd.f32 %v1223_v17, %v2971_v38  ;;  %v1422_v21 = vadd.f32 %v1343_v12, %v1342_v8 }
 0x2b7   : > { %v1344_v24 = vmul.f32 %v3144_v15, %v3144_v15 }
 0x2b8   : > { %v1345_v26 = vmul.f32 %v3147_v19, %v3147_v19  ;;  %v1227_v27 = vpop.f32.mrb[36].mxu1  ;;  %1423 = vadd.xlane.f32.xlu0 %v1422_v21 }
 0x2b9   : > { %v3154_v28 = vadd.f32 %v1227_v27, %v2967_v55  ;;  %v1229_v31 = vpop.f32.mrb[37].mxu1 }
 0x2ba   : > { %v3157_v39 = vadd.f32 %v1229_v31, %v2971_v38  ;;  %v1425_v40 = vadd.f32 %v1345_v26, %v1344_v24 }
 0x2bb   : > { %v1346_v41 = vmul.f32 %v3154_v28, %v3154_v28 }
 0x2bc   : > { %v1347_v43 = vmul.f32 %v3157_v39, %v3157_v39  ;;  %v1233_v46 = vpop.f32.mrb[38].mxu1  ;;  %1426 = vadd.xlane.f32.xlu1 %v1425_v40 }
 0x2bd   : > { %v3164_v48 = vadd.f32 %v1233_v46, %v2967_v55  ;;  %v1235_v50 = vpop.f32.mrb[39].mxu1 }
 0x2be   : > { %v3167_v52 = vadd.f32 %v1235_v50, %v2971_v38  ;;  %v1428_v53 = vadd.f32 %v1347_v43, %v1346_v41 }
 0x2bf   : > { %v1348_v56 = vmul.f32 %v3164_v48, %v3164_v48 }
 0x2c0   : > { %v1349_v34 = vmul.f32 %v3167_v52, %v3167_v52  ;;  %v1239_v33 = vpop.f32.mrb[40].mxu1  ;;  %1429 = vadd.xlane.f32.xlu0 %v1428_v53 }
 0x2c1   : > { %v3174_v62 = vadd.f32 %v1239_v33, %v2967_v55  ;;  %v1241_v63 = vpop.f32.mrb[41].mxu1 }
 0x2c2   : > { %v3177_v5 = vadd.f32 %v1241_v63, %v2971_v38  ;;  %v1431_v7 = vadd.f32 %v1349_v34, %v1348_v56 }
 0x2c3   : > { %v1350_v8 = vmul.f32 %v3174_v62, %v3174_v62 }
 0x2c4   : > { %v1351_v12 = vmul.f32 %v3177_v5, %v3177_v5  ;;  %v1245_v14 = vpop.f32.mrb[42].mxu1  ;;  %1432 = vadd.xlane.f32.xlu1 %v1431_v7 }
 0x2c5   : > { %v3184_v17 = vadd.f32 %v1245_v14, %v2967_v55  ;;  %v1247_v21 = vpop.f32.mrb[43].mxu1 }
 0x2c6   : > { %v3187_v24 = vadd.f32 %v1247_v21, %v2971_v38  ;;  %v1434_v26 = vadd.f32 %v1351_v12, %v1350_v8 }
 0x2c7   : > { %v1352_v27 = vmul.f32 %v3184_v17, %v3184_v17 }
 0x2c8   : > { %v1353_v31 = vmul.f32 %v3187_v24, %v3187_v24  ;;  %v1251_v40 = vpop.f32.mrb[44].mxu1  ;;  %1435 = vadd.xlane.f32.xlu0 %v1434_v26 }
 0x2c9   : > { %v3194_v41 = vadd.f32 %v1251_v40, %v2967_v55  ;;  %v1253_v43 = vpop.f32.mrb[45].mxu1 }
 0x2ca   : > { %v3197_v46 = vadd.f32 %v1253_v43, %v2971_v38  ;;  %v1437_v50 = vadd.f32 %v1353_v31, %v1352_v27 }
 0x2cb   : > { %v1354_v53 = vmul.f32 %v3194_v41, %v3194_v41 }
 0x2cc   : > { %v1355_v56 = vmul.f32 %v3197_v46, %v3197_v46  ;;  %v1257_v34 = vpop.f32.mrb[46].mxu1  ;;  %1438 = vadd.xlane.f32.xlu1 %v1437_v50 }
 0x2cd   : > { %v3204_v33 = vadd.f32 %v1257_v34, %v2967_v55  ;;  %v1259_v63 = vpop.f32.mrb[47].mxu1 }
 0x2ce   : > { %v3207_v7 = vadd.f32 %v1259_v63, %v2971_v38  ;;  %v1440_v8 = vadd.f32 %v1355_v56, %v1354_v53 }
 0x2cf   : > { %v1356_v12 = vmul.f32 %v3204_v33, %v3204_v33 }
 0x2d0   : > { %v1357_v14 = vmul.f32 %v3207_v7, %v3207_v7  ;;  %v1263_v21 = vpop.f32.mrb[48].mxu1  ;;  %1441 = vadd.xlane.f32.xlu0 %v1440_v8 }
 0x2d1   : > { %v3214_v26 = vadd.f32 %v1263_v21, %v2967_v55  ;;  %v1265_v27 = vpop.f32.mrb[49].mxu1 }
 0x2d2   : > { %v3217_v31 = vadd.f32 %v1265_v27, %v2971_v38  ;;  %v1443_v40 = vadd.f32 %v1357_v14, %v1356_v12 }
 0x2d3   : > { %v1358_v43 = vmul.f32 %v3214_v26, %v3214_v26 }
 0x2d4   : > { %3491 = vst [vmem:[#allocation13_spill] sm:$0xff] %v3217_v31  ;;  %v1359_v50 = vmul.f32 %v3217_v31, %v3217_v31  ;;  %v1269_v53 = vpop.f32.mrb[50].mxu1  ;;  %1444 = vadd.xlane.f32.xlu1 %v1443_v40 }
 0x2d5   : > { %v3224_v56 = vadd.f32 %v1269_v53, %v2967_v55  ;;  %v1271_v34 = vpop.f32.mrb[51].mxu1 }
 0x2d6   : > { %v3227_v63 = vadd.f32 %v1271_v34, %v2971_v38  ;;  %v1446_v8 = vadd.f32 %v1359_v50, %v1358_v43 }
 0x2d7   : > { %3492 = vst [vmem:[#allocation14_spill] sm:$0xff] %v3224_v56  ;;  %v1360_v21 = vmul.f32 %v3224_v56, %v3224_v56 }
 0x2d8   : > { %3493 = vst [vmem:[#allocation15_spill] sm:$0xff] %v3227_v63  ;;  %v1361_v12 = vmul.f32 %v3227_v63, %v3227_v63  ;;  %v1275_v14 = vpop.f32.mrb[52].mxu1  ;;  %1447 = vadd.xlane.f32.xlu0 %v1446_v8 }
 0x2d9   : > { %v3234_v27 = vadd.f32 %v1275_v14, %v2967_v55  ;;  %v1277_v40 = vpop.f32.mrb[53].mxu1 }
 0x2da   : > { %v3237_v53 = vadd.f32 %v1277_v40, %v2971_v38  ;;  %v1449_v31 = vadd.f32 %v1361_v12, %v1360_v21 }
 0x2db   : > { %3494 = vst [vmem:[#allocation16_spill] sm:$0xff] %v3234_v27  ;;  %v1362_v34 = vmul.f32 %v3234_v27, %v3234_v27 }
 0x2dc   : > { %3495 = vst [vmem:[#allocation17_spill] sm:$0xff] %v3237_v53  ;;  %v1363_v43 = vmul.f32 %v3237_v53, %v3237_v53  ;;  %v1281_v50 = vpop.f32.mrb[54].mxu1  ;;  %1450 = vadd.xlane.f32.xlu1 %v1449_v31 }
 0x2dd   : > { %v3244_v63 = vadd.f32 %v1281_v50, %v2967_v55  ;;  %v1283_v8 = vpop.f32.mrb[55].mxu1 }
 0x2de   : > { %v3247_v14 = vadd.f32 %v1283_v8, %v2971_v38  ;;  %v1452_v56 = vadd.f32 %v1363_v43, %v1362_v34 }
 0x2df   : > { %3496 = vst [vmem:[#allocation18_spill] sm:$0xff] %v3244_v63  ;;  %v1364_v40 = vmul.f32 %v3244_v63, %v3244_v63 }
 0x2e0   : > { %3497 = vst [vmem:[#allocation19_spill] sm:$0xff] %v3247_v14  ;;  %v1365_v21 = vmul.f32 %v3247_v14, %v3247_v14  ;;  %v1287_v12 = vpop.f32.mrb[56].mxu1  ;;  %1453 = vadd.xlane.f32.xlu0 %v1452_v56 }
 0x2e1   : > { %v3254_v53 = vadd.f32 %v1287_v12, %v2967_v55  ;;  %v1289_v31 = vpop.f32.mrb[57].mxu1 }
 0x2e2   : > { %v3257_v50 = vadd.f32 %v1289_v31, %v2971_v38  ;;  %v1455_v27 = vadd.f32 %v1365_v21, %v1364_v40 }
 0x2e3   : > { %3498 = vst [vmem:[#allocation20_spill] sm:$0xff] %v3254_v53  ;;  %v1366_v8 = vmul.f32 %v3254_v53, %v3254_v53 }
 0x2e4   : > { %3499 = vst [vmem:[#allocation21_spill] sm:$0xff] %v3257_v50  ;;  %v1367_v34 = vmul.f32 %v3257_v50, %v3257_v50  ;;  %v1293_v43 = vpop.f32.mrb[58].mxu1  ;;  %1456 = vadd.xlane.f32.xlu1 %v1455_v27 }
 0x2e5   : > { %v3264_v14 = vadd.f32 %v1293_v43, %v2967_v55  ;;  %v1295_v56 = vpop.f32.mrb[59].mxu1 }
 0x2e6   : > { %v3267_v12 = vadd.f32 %v1295_v56, %v2971_v38  ;;  %v1458_v63 = vadd.f32 %v1367_v34, %v1366_v8 }
 0x2e7   : > { %3500 = vst [vmem:[#allocation22_spill] sm:$0xff] %v3264_v14  ;;  %v1368_v31 = vmul.f32 %v3264_v14, %v3264_v14 }
 0x2e8   : > { %3501 = vst [vmem:[#allocation23_spill] sm:$0xff] %v3267_v12  ;;  %v1369_v40 = vmul.f32 %v3267_v12, %v3267_v12  ;;  %v1299_v21 = vpop.f32.mrb[60].mxu1  ;;  %1459 = vadd.xlane.f32.xlu0 %v1458_v63 }
 0x2e9   : > { %v3274_v50 = vadd.f32 %v1299_v21, %v2967_v55  ;;  %v1301_v27 = vpop.f32.mrb[61].mxu1 }
 0x2ea   : > { %v3277_v43 = vadd.f32 %v1301_v27, %v2971_v38  ;;  %v1461_v53 = vadd.f32 %v1369_v40, %v1368_v31 }
 0x2eb   : > { %3502 = vst [vmem:[#allocation24_spill] sm:$0xff] %v3274_v50  ;;  %v1370_v56 = vmul.f32 %v3274_v50, %v3274_v50 }
 0x2ec   : > { %3503 = vst [vmem:[#allocation25_spill] sm:$0xff] %v3277_v43  ;;  %v1371_v8 = vmul.f32 %v3277_v43, %v3277_v43  ;;  %v1305_v34 = vpop.f32.mrb[62].mxu1  ;;  %1462 = vadd.xlane.f32.xlu1 %v1461_v53 }
 0x2ed   : > { %v3284_v12 = vadd.f32 %v1305_v34, %v2967_v55  ;;  %v1307_v63 = vpop.f32.mrb[63].mxu1 }
 0x2ee   : > { %v3287_v21 = vadd.f32 %v1307_v63, %v2971_v38  ;;  %v1464_v14 = vadd.f32 %v1371_v8, %v1370_v56 }
 0x2ef   : > { %3504 = vst [vmem:[#allocation26_spill] sm:$0xff] %v3284_v12  ;;  %v1372_v27 = vmul.f32 %v3284_v12, %v3284_v12 }
 0x2f0   : > { %3505 = vst [vmem:[#allocation27_spill] sm:$0xff] %v3287_v21  ;;  %v1373_v31 = vmul.f32 %v3287_v21, %v3287_v21  ;;  %1465 = vadd.xlane.f32.xlu0 %v1464_v14 }
 0x2f2   : > { %v1467_v40 = vadd.f32 %v1373_v31, %v1372_v27 }
 0x2f4   : > { %1468 = vadd.xlane.f32.xlu1 %v1467_v40 }
 0x305   : > { %v1376_v43 = vpop.xlane.xlu0 %1375 }
 0x306   : > { %v1470_v50 = vmax.f32 %v1376_v43, 1e-24 }
 0x308   : > { %2406 = vrsqrt.f32 %v1470_v50 }
 0x309   : > { %v1379_v53 = vpop.xlane.xlu0 %1378 }
 0x30a   : > { %v1471_v55 = vmax.f32 %v1379_v53, 1e-24 }
 0x30c   : > { %2408 = vrsqrt.f32 %v1471_v55 }
 0x30d   : > { %v1382_v34 = vpop.xlane.xlu1 %1381 }
 0x30e   : > { %v1472_v38 = vmax.f32 %v1382_v34, 1e-24 }
 0x310   : > { %2410 = vrsqrt.f32 %v1472_v38 }
 0x311   : > { %v1385_v56 = vpop.xlane.xlu1 %1384 }
 0x312   : > { %v2407_v8 = vpop.eup %2406  ;;  %v1473_v63 = vmax.f32 %v1385_v56, 1e-24 }
 0x313   : > { %v1534_v12 = vmul.f32 %v2407_v8, %v2974_v37  ;;  %v1535_v21 = vmul.f32 %v2407_v8, %v2977_v58 }
 0x314   : > { %2412 = vrsqrt.f32 %v1473_v63 }
 0x315   : > { %v2065_v14 = vpack.c.bf16 %v1535_v21, %v1534_v12  ;;  %v1388_v27 = vpop.xlane.xlu0 %1387 }
 0x316   : > { %v2409_v31 = vpop.eup %2408  ;;  %v1474_v43 = vmax.f32 %v1388_v27, 1e-24 }
 0x317   : > { %1790 = vst [vmem:[%s3297_s26] sm:$0xff] %v2065_v14  ;;  %v1536_v50 = vmul.f32 %v2409_v31, %v2984_v61  ;;  %v1537_v40 = vmul.f32 %v2409_v31, %v2987_v36 }
 0x318   : > { %2414 = vrsqrt.f32 %v1474_v43 }
 0x319   : > { %v2066_v37 = vpack.c.bf16 %v1537_v40, %v1536_v50  ;;  %v1391_v53 = vpop.xlane.xlu1 %1390 }
 0x31a   : > { %v2411_v58 = vpop.eup %2410  ;;  %v1475_v55 = vmax.f32 %v1391_v53, 1e-24 }
 0x31b   : > { %1791 = vst [vmem:[%s3297_s26 + $0x8] sm:$0xff] %v2066_v37  ;;  %v1538_v12 = vmul.f32 %v2411_v58, %v2994_v2  ;;  %v1539_v21 = vmul.f32 %v2411_v58, %v2997_v4 }
 0x31c   : > { %2416 = vrsqrt.f32 %v1475_v55 }
 0x31d   : > { %v2067_v34 = vpack.c.bf16 %v1539_v21, %v1538_v12  ;;  %v1394_v38 = vpop.xlane.xlu0 %1393 }
 0x31e   : > { %v2413_v56 = vpop.eup %2412  ;;  %v1476_v8 = vmax.f32 %v1394_v38, 1e-24 }
 0x31f   : > { %1792 = vst [vmem:[%s3297_s26 + $0x10] sm:$0xff] %v2067_v34  ;;  %v1540_v61 = vmul.f32 %v2413_v56, %v3004_v9  ;;  %v1541_v36 = vmul.f32 %v2413_v56, %v3007_v11 }
 0x320   : > { %2418 = vrsqrt.f32 %v1476_v8 }
 0x321   : > { %v2068_v63 = vpack.c.bf16 %v1541_v36, %v1540_v61  ;;  %v1397_v14 = vpop.xlane.xlu1 %1396 }
 0x322   : > { %v2415_v27 = vpop.eup %2414  ;;  %v1477_v31 = vmax.f32 %v1397_v14, 1e-24 }
 0x323   : > { %1793 = vst [vmem:[%s3297_s26 + $0x18] sm:$0xff] %v2068_v63  ;;  %v1542_v2 = vmul.f32 %v2415_v27, %v3014_v16  ;;  %v1543_v4 = vmul.f32 %v2415_v27, %v3017_v18 }
 0x324   : > { %2420 = vrsqrt.f32 %v1477_v31 }
 0x325   : > { %v2069_v43 = vpack.c.bf16 %v1543_v4, %v1542_v2  ;;  %v1400_v50 = vpop.xlane.xlu0 %1399 }
 0x326   : > { %v2417_v40 = vpop.eup %2416  ;;  %v1478_v37 = vmax.f32 %v1400_v50, 1e-24 }
 0x327   : > { %1794 = vst [vmem:[%s3297_s26 + $0x20] sm:$0xff] %v2069_v43  ;;  %v1544_v9 = vmul.f32 %v2417_v40, %v3024_v23  ;;  %v1545_v11 = vmul.f32 %v2417_v40, %v3027_v25 }
 0x328   : > { %2422 = vrsqrt.f32 %v1478_v37 }
 0x329   : > { %v2070_v53 = vpack.c.bf16 %v1545_v11, %v1544_v9  ;;  %v1403_v58 = vpop.xlane.xlu1 %1402 }
 0x32a   : > { %v2419_v55 = vpop.eup %2418  ;;  %v1479_v12 = vmax.f32 %v1403_v58, 1e-24 }
 0x32b   : > { %1795 = vst [vmem:[%s3297_s26 + $0x28] sm:$0xff] %v2070_v53  ;;  %v1546_v16 = vmul.f32 %v2419_v55, %v3034_v30  ;;  %v1547_v18 = vmul.f32 %v2419_v55, %v3037_v32 }
 0x32c   : > { %2424 = vrsqrt.f32 %v1479_v12 }
 0x32d   : > { %v2071_v21 = vpack.c.bf16 %v1547_v18, %v1546_v16  ;;  %v1406_v34 = vpop.xlane.xlu0 %1405 }
 0x32e   : > { %v2421_v38 = vpop.eup %2420  ;;  %v1480_v56 = vmax.f32 %v1406_v34, 1e-24 }
 0x32f   : > { %1796 = vst [vmem:[%s3297_s26 + $0x30] sm:$0xff] %v2071_v21  ;;  %v1548_v23 = vmul.f32 %v2421_v38, %v3044_v42  ;;  %v1549_v25 = vmul.f32 %v2421_v38, %v3047_v44 }
 0x330   : > { %2426 = vrsqrt.f32 %v1480_v56 }
 0x331   : > { %v2072_v8 = vpack.c.bf16 %v1549_v25, %v1548_v23  ;;  %v1409_v61 = vpop.xlane.xlu1 %1408 }
 0x332   : > { %v2423_v36 = vpop.eup %2422  ;;  %v1481_v63 = vmax.f32 %v1409_v61, 1e-24 }
 0x333   : > { %1797 = vst [vmem:[%s3297_s26 + $0x38] sm:$0xff] %v2072_v8  ;;  %v1550_v30 = vmul.f32 %v2423_v36, %v3054_v49  ;;  %v1551_v32 = vmul.f32 %v2423_v36, %v3057_v51 }
 0x334   : > { %2428 = vrsqrt.f32 %v1481_v63 }
 0x335   : > { %v2073_v14 = vpack.c.bf16 %v1551_v32, %v1550_v30  ;;  %v1412_v27 = vpop.xlane.xlu0 %1411 }
 0x336   : > { %v2425_v31 = vpop.eup %2424  ;;  %v1482_v2 = vmax.f32 %v1412_v27, 1e-24 }
 0x337   : > { %1798 = vst [vmem:[%s3297_s26 + $0x40] sm:$0xff] %v2073_v14  ;;  %v1552_v42 = vmul.f32 %v2425_v31, %v3064_v57  ;;  %v1553_v44 = vmul.f32 %v2425_v31, %v3067_v60 }
 0x338   : > { %2430 = vrsqrt.f32 %v1482_v2 }
 0x339   : > { %v2074_v4 = vpack.c.bf16 %v1553_v44, %v1552_v42  ;;  %v1415_v43 = vpop.xlane.xlu1 %1414 }
 0x33a   : > { %v2427_v50 = vpop.eup %2426  ;;  %v1483_v40 = vmax.f32 %v1415_v43, 1e-24 }
 0x33b   : > { %1799 = vst [vmem:[%s3297_s26 + $0x48] sm:$0xff] %v2074_v4  ;;  %v1554_v49 = vmul.f32 %v2427_v50, %v3074_v0  ;;  %v1555_v51 = vmul.f32 %v2427_v50, %v3077_v3 }
 0x33c   : > { %2432 = vrsqrt.f32 %v1483_v40 }
 0x33d   : > { %v2075_v37 = vpack.c.bf16 %v1555_v51, %v1554_v49  ;;  %v1418_v9 = vpop.xlane.xlu0 %1417 }
 0x33e   : > { %v2429_v11 = vpop.eup %2428  ;;  %v1484_v53 = vmax.f32 %v1418_v9, 1e-24 }
 0x33f   : > { %1800 = vst [vmem:[%s3297_s26 + $0x50] sm:$0xff] %v2075_v37  ;;  %v1556_v57 = vmul.f32 %v2429_v11, %v3084_v10  ;;  %v1557_v60 = vmul.f32 %v2429_v11, %v3087_v13 }
 0x340   : > { %2434 = vrsqrt.f32 %v1484_v53 }
 0x341   : > { %v2076_v58 = vpack.c.bf16 %v1557_v60, %v1556_v57  ;;  %v1421_v55 = vpop.xlane.xlu1 %1420 }
 0x342   : > { %v2431_v12 = vpop.eup %2430  ;;  %v1485_v16 = vmax.f32 %v1421_v55, 1e-24 }
 0x343   : > { %1801 = vst [vmem:[%s3297_s26 + $0x58] sm:$0xff] %v2076_v58  ;;  %v1558_v0 = vmul.f32 %v2431_v12, %v3094_v20  ;;  %v1559_v3 = vmul.f32 %v2431_v12, %v3097_v22 }
 0x344   : > { %2436 = vrsqrt.f32 %v1485_v16 }
 0x345   : > { %v2077_v18 = vpack.c.bf16 %v1559_v3, %v1558_v0  ;;  %v1424_v21 = vpop.xlane.xlu0 %1423 }
 0x346   : > { %v2433_v34 = vpop.eup %2432  ;;  %v1486_v38 = vmax.f32 %v1424_v21, 1e-24 }
 0x347   : > { %1802 = vst [vmem:[%s3297_s26 + $0x60] sm:$0xff] %v2077_v18  ;;  %v1560_v10 = vmul.f32 %v2433_v34, %v3104_v29  ;;  %v1561_v13 = vmul.f32 %v2433_v34, %v3107_v35 }
 0x348   : > { %2438 = vrsqrt.f32 %v1486_v38 }
 0x349   : > { %v2078_v56 = vpack.c.bf16 %v1561_v13, %v1560_v10  ;;  %v1427_v23 = vpop.xlane.xlu1 %1426 }
 0x34a   : > { %v2435_v25 = vpop.eup %2434  ;;  %v1487_v8 = vmax.f32 %v1427_v23, 1e-24 }
 0x34b   : > { %1803 = vst [vmem:[%s3297_s26 + $0x68] sm:$0xff] %v2078_v56  ;;  %v1562_v20 = vmul.f32 %v2435_v25, %v3114_v45  ;;  %v1563_v22 = vmul.f32 %v2435_v25, %v3117_v47 }
 0x34c   : > { %2440 = vrsqrt.f32 %v1487_v8 }
 0x34d   : > { %v2079_v61 = vpack.c.bf16 %v1563_v22, %v1562_v20  ;;  %v1430_v36 = vpop.xlane.xlu0 %1429 }
 0x34e   : > { %v2437_v63 = vpop.eup %2436  ;;  %v1488_v30 = vmax.f32 %v1430_v36, 1e-24 }
 0x34f   : > { %1804 = vst [vmem:[%s3297_s26 + $0x70] sm:$0xff] %v2079_v61  ;;  %v1564_v29 = vmul.f32 %v2437_v63, %v3124_v54  ;;  %v1565_v35 = vmul.f32 %v2437_v63, %v3127_v59 }
 0x350   : > { %2442 = vrsqrt.f32 %v1488_v30 }
 0x351   : > { %v2080_v32 = vpack.c.bf16 %v1565_v35, %v1564_v29  ;;  %v1433_v14 = vpop.xlane.xlu1 %1432  ;;  %v3508_v29 = vld [vmem:[#allocation15_spill] sm:$0xff] }
 0x352   : > { %v2439_v27 = vpop.eup %2438  ;;  %v1489_v31 = vmax.f32 %v1433_v14, 1e-24 }
 0x353   : > { %1805 = vst [vmem:[%s3297_s26 + $0x78] sm:$0xff] %v2080_v32  ;;  %v1566_v45 = vmul.f32 %v2439_v27, %v3134_v1  ;;  %v1567_v47 = vmul.f32 %v2439_v27, %v3137_v6 }
 0x354   : > { %2444 = vrsqrt.f32 %v1489_v31 }
 0x355   : > { %v2081_v2 = vpack.c.bf16 %v1567_v47, %v1566_v45  ;;  %v1436_v42 = vpop.xlane.xlu0 %1435  ;;  %v3510_v47 = vld [vmem:[#allocation17_spill] sm:$0xff] }
 0x356   : > { %v2441_v44 = vpop.eup %2440  ;;  %v1490_v4 = vmax.f32 %v1436_v42, 1e-24 }
 0x357   : > { %1806 = vst [vmem:[%s3297_s26 + $0x80] sm:$0xff] %v2081_v2  ;;  %v1568_v54 = vmul.f32 %v2441_v44, %v3144_v15  ;;  %v1569_v59 = vmul.f32 %v2441_v44, %v3147_v19 }
 0x358   : > { %2446 = vrsqrt.f32 %v1490_v4 }
 0x359   : > { %v2082_v43 = vpack.c.bf16 %v1569_v59, %v1568_v54  ;;  %v1439_v50 = vpop.xlane.xlu1 %1438  ;;  %v3511_v59 = vld [vmem:[#allocation18_spill] sm:$0xff] }
 0x35a   : > { %v2443_v40 = vpop.eup %2442  ;;  %v1491_v49 = vmax.f32 %v1439_v50, 1e-24  ;;  %v3512_v50 = vld [vmem:[#allocation19_spill] sm:$0xff] }
 0x35b   : > { %1807 = vst [vmem:[%s3297_s26 + $0x88] sm:$0xff] %v2082_v43  ;;  %v1570_v1 = vmul.f32 %v2443_v40, %v3154_v28  ;;  %v1571_v6 = vmul.f32 %v2443_v40, %v3157_v39 }
 0x35c   : > { %2448 = vrsqrt.f32 %v1491_v49 }
 0x35d   : > { %v2083_v51 = vpack.c.bf16 %v1571_v6, %v1570_v1  ;;  %v1442_v37 = vpop.xlane.xlu0 %1441 }
 0x35e   : > { %v2445_v9 = vpop.eup %2444  ;;  %v1492_v11 = vmax.f32 %v1442_v37, 1e-24  ;;  %v3513_v37 = vld [vmem:[#allocation20_spill] sm:$0xff] }
 0x35f   : > { %1808 = vst [vmem:[%s3297_s26 + $0x90] sm:$0xff] %v2083_v51  ;;  %v1572_v15 = vmul.f32 %v2445_v9, %v3164_v48  ;;  %v1573_v19 = vmul.f32 %v2445_v9, %v3167_v52 }
 0x360   : > { %2450 = vrsqrt.f32 %v1492_v11  ;;  %v3514_v11 = vld [vmem:[#allocation21_spill] sm:$0xff] }
 0x361   : > { %v2084_v53 = vpack.c.bf16 %v1573_v19, %v1572_v15  ;;  %v1445_v57 = vpop.xlane.xlu1 %1444 }
 0x362   : > { %v2447_v60 = vpop.eup %2446  ;;  %v1493_v58 = vmax.f32 %v1445_v57, 1e-24  ;;  %v3515_v57 = vld [vmem:[#allocation22_spill] sm:$0xff] }
 0x363   : > { %1809 = vst [vmem:[%s3297_s26 + $0x98] sm:$0xff] %v2084_v53  ;;  %v1574_v28 = vmul.f32 %v2447_v60, %v3174_v62  ;;  %v1575_v39 = vmul.f32 %v2447_v60, %v3177_v5 }
 0x364   : > { %2452 = vrsqrt.f32 %v1493_v58  ;;  %v3516_v58 = vld [vmem:[#allocation23_spill] sm:$0xff] }
 0x365   : > { %v2085_v55 = vpack.c.bf16 %v1575_v39, %v1574_v28  ;;  %v1448_v12 = vpop.xlane.xlu0 %1447 }
 0x366   : > { %v2449_v16 = vpop.eup %2448  ;;  %v1494_v0 = vmax.f32 %v1448_v12, 1e-24  ;;  %v3517_v12 = vld [vmem:[#allocation24_spill] sm:$0xff] }
 0x367   : > { %1810 = vst [vmem:[%s3297_s26 + $0xa0] sm:$0xff] %v2085_v55  ;;  %v1576_v48 = vmul.f32 %v2449_v16, %v3184_v17  ;;  %v1577_v52 = vmul.f32 %v2449_v16, %v3187_v24 }
 0x368   : > { %2454 = vrsqrt.f32 %v1494_v0  ;;  %v3518_v0 = vld [vmem:[#allocation25_spill] sm:$0xff] }
 0x369   : > { %v2086_v3 = vpack.c.bf16 %v1577_v52, %v1576_v48  ;;  %v1451_v18 = vpop.xlane.xlu1 %1450 }
 0x36a   : > { %v2451_v21 = vpop.eup %2450  ;;  %v1495_v34 = vmax.f32 %v1451_v18, 1e-24  ;;  %v3519_v18 = vld [vmem:[#allocation26_spill] sm:$0xff] }
 0x36b   : > { %1811 = vst [vmem:[%s3297_s26 + $0xa8] sm:$0xff] %v2086_v3  ;;  %v1578_v62 = vmul.f32 %v2451_v21, %v3194_v41  ;;  %v1579_v5 = vmul.f32 %v2451_v21, %v3197_v46  ;;  %v3506_v46 = vld [vmem:[#allocation13_spill] sm:$0xff] }
 0x36c   : > { %2456 = vrsqrt.f32 %v1495_v34  ;;  %v3520_v34 = vld [vmem:[#allocation27_spill] sm:$0xff] }
 0x36d   : > { %v2087_v38 = vpack.c.bf16 %v1579_v5, %v1578_v62  ;;  %v1454_v10 = vpop.xlane.xlu0 %1453 }
 0x36e   : > { %v2453_v13 = vpop.eup %2452  ;;  %v1496_v56 = vmax.f32 %v1454_v10, 1e-24 }
 0x36f   : > { %1812 = vst [vmem:[%s3297_s26 + $0xb0] sm:$0xff] %v2087_v38  ;;  %v1580_v17 = vmul.f32 %v2453_v13, %v3204_v33  ;;  %v1581_v24 = vmul.f32 %v2453_v13, %v3207_v7  ;;  %v3507_v33 = vld [vmem:[#allocation14_spill] sm:$0xff] }
 0x370   : > { %2458 = vrsqrt.f32 %v1496_v56 }
 0x371   : > { %v2088_v23 = vpack.c.bf16 %v1581_v24, %v1580_v17  ;;  %v1457_v25 = vpop.xlane.xlu1 %1456 }
 0x372   : > { %v2455_v8 = vpop.eup %2454  ;;  %v1497_v20 = vmax.f32 %v1457_v25, 1e-24 }
 0x373   : > { %1813 = vst [vmem:[%s3297_s26 + $0xb8] sm:$0xff] %v2088_v23  ;;  %v1582_v41 = vmul.f32 %v2455_v8, %v3214_v26  ;;  %v1583_v22 = vmul.f32 %v2455_v8, %v3506_v46  ;;  %v3509_v26 = vld [vmem:[#allocation16_spill] sm:$0xff] }
 0x374   : > { %2460 = vrsqrt.f32 %v1497_v20 }
 0x375   : > { %v2089_v61 = vpack.c.bf16 %v1583_v22, %v1582_v41  ;;  %v1460_v36 = vpop.xlane.xlu0 %1459 }
 0x376   : > { %v2457_v63 = vpop.eup %2456  ;;  %v1498_v30 = vmax.f32 %v1460_v36, 1e-24 }
 0x377   : > { %1814 = vst [vmem:[%s3297_s26 + $0xc0] sm:$0xff] %v2089_v61  ;;  %v1584_v7 = vmul.f32 %v2457_v63, %v3507_v33  ;;  %v1585_v35 = vmul.f32 %v2457_v63, %v3508_v29 }
 0x378   : > { %2462 = vrsqrt.f32 %v1498_v30 }
 0x379   : > { %v2090_v32 = vpack.c.bf16 %v1585_v35, %v1584_v7  ;;  %v1463_v14 = vpop.xlane.xlu1 %1462 }
 0x37a   : > { %v2459_v27 = vpop.eup %2458  ;;  %v1499_v31 = vmax.f32 %v1463_v14, 1e-24 }
 0x37b   : > { %1815 = vst [vmem:[%s3297_s26 + $0xc8] sm:$0xff] %v2090_v32  ;;  %v1586_v45 = vmul.f32 %v2459_v27, %v3509_v26  ;;  %v1587_v2 = vmul.f32 %v2459_v27, %v3510_v47 }
 0x37c   : > { %2464 = vrsqrt.f32 %v1499_v31 }
 0x37d   : > { %v2091_v42 = vpack.c.bf16 %v1587_v2, %v1586_v45  ;;  %v1466_v44 = vpop.xlane.xlu0 %1465 }
 0x37e   : > { %v2461_v4 = vpop.eup %2460  ;;  %v1500_v54 = vmax.f32 %v1466_v44, 1e-24 }
 0x37f   : > { %1816 = vst [vmem:[%s3297_s26 + $0xd0] sm:$0xff] %v2091_v42  ;;  %v1588_v43 = vmul.f32 %v2461_v4, %v3511_v59  ;;  %v1589_v40 = vmul.f32 %v2461_v4, %v3512_v50 }
 0x380   : > { %2466 = vrsqrt.f32 %v1500_v54 }
 0x381   : > { %v2092_v49 = vpack.c.bf16 %v1589_v40, %v1588_v43  ;;  %v1469_v1 = vpop.xlane.xlu1 %1468 }
 0x382   : > { %v2463_v6 = vpop.eup %2462  ;;  %v1501_v51 = vmax.f32 %v1469_v1, 1e-24 }
 0x383   : > { %1817 = vst [vmem:[%s3297_s26 + $0xd8] sm:$0xff] %v2092_v49  ;;  %v1590_v9 = vmul.f32 %v2463_v6, %v3513_v37  ;;  %v1591_v15 = vmul.f32 %v2463_v6, %v3514_v11 }
 0x384   : > { %2468 = vrsqrt.f32 %v1501_v51 }
 0x385   : > { %v2093_v19 = vpack.c.bf16 %v1591_v15, %v1590_v9 }
 0x386   : > { %v2465_v53 = vpop.eup %2464 }
 0x387   : > { %1818 = vst [vmem:[%s3297_s26 + $0xe0] sm:$0xff] %v2093_v19  ;;  %v1592_v60 = vmul.f32 %v2465_v53, %v3515_v57  ;;  %v1593_v28 = vmul.f32 %v2465_v53, %v3516_v58 }
 0x389   : > { %v2094_v39 = vpack.c.bf16 %v1593_v28, %v1592_v60 }
 0x38a   : > { %v2467_v55 = vpop.eup %2466 }
 0x38b   : > { %1819 = vst [vmem:[%s3297_s26 + $0xe8] sm:$0xff] %v2094_v39  ;;  %v1594_v16 = vmul.f32 %v2467_v55, %v3517_v12  ;;  %v1595_v48 = vmul.f32 %v2467_v55, %v3518_v0 }
 0x38d   : > { %v2095_v52 = vpack.c.bf16 %v1595_v48, %v1594_v16  ;;  %1829 = sbr.rel (!%p3521_p8) target bundleno = 944 (0x3b0), region = 56 }
 0x38e   : > { %v2469_v3 = vpop.eup %2468 }
 0x38f   : > { %1820 = vst [vmem:[%s3297_s26 + $0xf0] sm:$0xff] %v2095_v52  ;;  %v1596_v21 = vmul.f32 %v2469_v3, %v3519_v18  ;;  %v1597_v62 = vmul.f32 %v2469_v3, %v3520_v34 }
 0x391   : > { %v2096_v5 = vpack.c.bf16 %v1597_v62, %v1596_v21 }
 0x393   : > { %1821 = vst [vmem:[%s3297_s26 + $0xf8] sm:$0xff] %v2096_v5 }
 0x394   : > { %s3531_s23 = smov (!%p1832_p9, %s1831_s23), 32 }
 0x395   : > { %s3397_s12 = sshll.u32 %s3531_s23, 7 }
 0x396   : > { %s1837_s28 = ssub.s32 4096, %s3397_s12 }
 0x397   : > { %1838 = vsyncadd %s1823_s9, %s1837_s28  ;;  %p2055_p10 = scmp.ne.s32.totalorder %s3397_s12, 0  ;;  %s2099_s30 = sshll.u32 %s2687_s22, 12 }
 0x398   : > { %s3407_s27 = scalar_lea.hbm %s3460_s5, %s2099_s30  ;;  %s1844_s14 = sshll.u32 %s3297_s26, 4  ;;  %s3410_s14 = int_to_ptr.vmem [resolvable:$true] %s1844_s14 }
 0x399   : > { %s2554_s15 = scalar_lea.vmem %s3410_s14, %s3397_s12  ;;  %s2633_s16 = smov [#allocation8]  }
 0x39a   : > { %p2555_p1 = scmp.ne.s32.totalorder %s3410_s14, %s2554_s15  ;;  %s2558_s29 = sshll.u32 %s2633_s16, 4  ;;  %s2559_s29 = int_to_ptr.vmem [resolvable:$false] %s2558_s29 }
 0x39b   : > { %s2560_s22 = scalar_lea.vmem %s2559_s29, 8192  ;;  %p2561_p3 = scmp.lt.s32.totalorder %s3410_s14, %s2559_s29 }
 0x39c   : > { %p2556_p4 = pnand %p2555_p1, %p2055_p10  ;;  %p2562_p6 = scmp.lt.s32.totalorder %s2560_s22, %s2554_s15 }
 0x39e   : > { %p2557_p5 = pneg %p2556_p4  ;;  %p2563_p11 = por %p2562_p6, %p2561_p3 }
 0x3a0   : > { %p2564_p13 = pnand %p2563_p11, %p2557_p5 }
 0x3a2   : > { %2567 = shalt.err (!%p2564_p13)
}
 0x3a3   : > { %s2568_s7 = scalar_lea.hbm %s3407_s27, %s3397_s12  ;;  %s2572_s26 = scalar_lea.hbm %s3460_s5, 8320 }
 0x3a4   : > { %p2569_p12 = scmp.ne.s32.totalorder %s3407_s27, %s2568_s7  ;;  %p2573_p7 = scmp.lt.u32.totalorder %s3407_s27, %s3460_s5 }
 0x3a5   : > { %p2574_p8 = scmp.lt.u32.totalorder %s2572_s26, %s2568_s7  ;;  %p2576_p1 = scmp.lt.u32.totalorder %s2568_s7, %s3407_s27 }
 0x3a6   : > { %p2570_p0 = pnand %p2569_p12, %p2055_p10 }
 0x3a7   : > { %p2575_p9 = por %p2574_p8, %p2573_p7 }
 0x3a8   : > { %p2571_p2 = pneg %p2570_p0 }
 0x3a9   : > { %p2577_p4 = por %p2576_p1, %p2575_p9 }
 0x3ab   : > { %p2578_p5 = pnand %p2577_p4, %p2571_p2 }
 0x3ad   : > { %2581 = shalt.err (!%p2578_p5)
}
 0x3ae   : > { %s2634_s28 = smov 128   ;;  %s2635_s30 = smov 8  }
 0x3af   : > { %1850 = dma.vmem_to_hbm [thread:$0]  (%p2055_p10), %s3410_s14, %s3397_s12, %s3407_s27, %s1823_s9, %s2634_s28, %s2634_s28, %s2635_s30  }
 0x3b0 PF: > { %p2221_p3 = scmp.ge.s32.totalorder %s2624_s21, 2  ;;  %s1859_s8 = sand.u32 1, %s2612_s18  }
 0x3b1   : > { %p3522_p6 = scmp.ne.s32.totalorder %s3483_s6, 0  ;;  %s1860_s11 = scalar_lea.sflag [#allocation4], %s1859_s8 }
 0x3b3   : > { %p2214_p11 = pnand %p2221_p3, %p3522_p6 }
 0x3b5   : > { %2607 = dma.done.wait (!%p2214_p11), %s1860_s11, 4096  }
 0x3b6   : > { %2609 = vsyncadd (!%p2214_p11), %s1860_s11, 4294963200  ;;  %s3523_s15 = sld [smem:[#allocation12_spill]]  ;;  %p19_p13 = scmp.ge.s32.totalorder %s2691_s24, 5  }
 0x3b7   : > { %s3524_s18 = smov %s2616_s19  ;;  %s3525_s19 = smov %s2620_s20 }
 0x3b8   : > { %s3527_s21 = smov %s2691_s24  ;;  %21 = sbr.rel (!%p19_p13) target bundleno = 6 (0x6), region = 93 }
 0x3bc   : > { %s3526_s20 = smov %s3523_s15 }
 0x3bf   :  { %1865 = vsyncpa [#allocation3], 1 }
 0x3c0   :  { %1867 = vsyncpa [#allocation3 + $0x1], 1 }
 0x3c1   :  { %1868 = vsyncpa [#allocation6], 1 }
 0x3c2   :  { %1869 = vsyncpa [#allocation4], 1 }
 0x3c3   :  { %1871 = vsyncpa [#allocation4 + $0x1], 1 }

// kernel: tpu_custom_call.1
= control target key start
LH: loop header
LB: loop body
LE: loop exit
PB: predicated region body
PF: predicated region fallthrough
CT: control target
= control target key end

     0   :  { %10 = vsyncpa [#allocation3], 0  ;;  %s3455_s0 = inlined_call_operand.hbm [shape: bf16[520,256], index: 0, kind: input, shape index: {}]   ;;  %s3456_s1 = inlined_call_operand.hbm [shape: bf16[256,256], index: 1, kind: input, shape index: {}]   ;;  %s3457_s2 = inlined_call_operand.vmem [shape: f32[1,256], index: 2, kind: input, shape index: {}]   ;;  %s3458_s3 = inlined_call_operand.hbm [shape: bf16[256,256], index: 3, kind: input, shape index: {}]   ;;  %s3459_s4 = inlined_call_operand.vmem [shape: f32[1,256], index: 4, kind: input, shape index: {}]   ;;  %s3460_s5 = inlined_call_operand.hbm [shape: bf16[520,256], index: 5, kind: output, shape index: {}]  }
   0x1   :  { %12 = vsyncpa [#allocation3 + $0x1], 0 }
   0x2   :  { %13 = vsyncpa [#allocation6], 0 }
   0x3   :  { %14 = vsyncpa [#allocation4], 0 }
   0x4   :  { %16 = vsyncpa [#allocation4 + $0x1], 0  ;;  %s2666_s18 = smov 0   ;;  %s2668_s19 = smov 0  }
   0x5   :  { %s2670_s20 = smov 0   ;;  %s2672_s21 = smov 0  }
   0x6 LB: > { %s2687_s22 = sadd.s32 4294967295, %s2624_s21   ;;  %s1936_s23 = sadd.s32 4294967294, %s2624_s21   ;;  %s2624_s21 = sphi %s2672_s21, %s3527_s21   ;;  %s2620_s20 = sphi %s2670_s20, %s3526_s20   ;;  %s2616_s19 = sphi %s2668_s19, %s3525_s19   ;;  %s2612_s18 = sphi %s2666_s18, %s3524_s18  }
   0x7   : > { %s2691_s24 = sadd.s32 1, %s2624_s21   ;;  %s29_s25 = sadd.s32 1, %s2620_s20 }
   0x8   : > { %s26_s26 = ssub.s32 %s2624_s21, %s2691_s24  ;;  %p36_p0 = scmp.ne.s32.totalorder %s2620_s20, %s2616_s19 }
   0x9   : > { %p27_p1 = scmp.eq.s32.totalorder %s26_s26, 0  ;;  %p37_p2 = scmp.eq.s32.totalorder %s2624_s21, 0 }
   0xa   : > { %p42_p3 = scmp.ne.s32.totalorder %s2616_s19, %s2612_s18  ;;  %p3461_p4 = scmp.eq.s32.totalorder %s2687_s22, 0 }
   0xb   : > { %s2703_s27 = scalar_select %p27_p1, %s2620_s20, %s29_s25  }
   0xc   : > { %p2705_p5 = por %p37_p2, %p36_p0  ;;  %p2711_p6 = por %p3461_p4, %p42_p3 }
   0xd   : > { %3479 = sst [smem:[#allocation12_spill]] %s2703_s27  ;;  %p150_p7 = scmp.eq.s32.totalorder %s2687_s22, 2 }
   0xe   : > { %s3480_s28 = scalar_select %p2705_p5, 1, 0 }
   0xf   : > { %s3481_s29 = scalar_select %p2711_p6, 1, 0 }
  0x10   : > { %p156_p8 = scmp.eq.s32.totalorder %s1936_s23, 2  ;;  %p1937_p9 = scmp.ge.s32.totalorder %s2624_s21, 1 }
  0x11   : > { %p163_p10 = scmp.lt.s32.totalorder %s2624_s21, 4  ;;  %p2718_p11 = por %p150_p7, %p36_p0 }
  0x12   : > { %p2722_p12 = por %p156_p8, %p42_p3  ;;  %s2626_s8 = smov [#allocation5]  }
  0x13   : > { %s3482_s30 = scalar_select %p2718_p11, 1, 0 }
  0x14   : > { %s3483_s6 = scalar_select %p2722_p12, 1, 0 }
  0x15   : > { %p2726_p13 = pnand %p1937_p9, %p163_p10  ;;  %s175_s9 = sshll.u32 %s2626_s8, 4  ;;  %s176_s9 = int_to_ptr.vmem [resolvable:$true] %s175_s9 }
  0x16   : > { %s2627_s11 = smov [#allocation7]   ;;  %s2470_s15 = scalar_lea.hbm %s3456_s1, 4096 }
  0x17   : > { %s3484_s7 = scalar_select %p2726_p13, 1, 0 }
  0x18   : > { %p2206_p1 = pneg %p2726_p13  ;;  %s191_s12 = sshll.u32 %s2627_s11, 4  ;;  %s2738_s12 = int_to_ptr.vmem [resolvable:$true] %s191_s12 }
  0x19   : > { %p2471_p0 = scmp.ne.s32.totalorder %s3456_s1, %s2470_s15  ;;  %p2477_p9 = scmp.lt.u32.totalorder %s2470_s15, %s3456_s1 }
  0x1a   : > { %p2734_p2 = pnand %p2206_p1, %p3461_p4 }
  0x1c   : > { %p2472_p3 = pneg %p2734_p2 }
  0x1e   : > { %p2473_p7 = pnand %p2472_p3, %p2471_p0 }
  0x20   : > { %p2474_p8 = pneg %p2473_p7 }
  0x22   : > { %p2479_p10 = pnand %p2477_p9, %p2474_p8 }
  0x24   : > { %2482 = shalt.err (!%p2479_p10)
}
  0x25   : > { %s2483_s26 = scalar_lea.vmem %s176_s9, 4096  ;;  %p2491_p11 = scmp.lt.s32.totalorder %s176_s9, %s176_s9 }
  0x26   : > { %p2484_p1 = scmp.ne.s32.totalorder %s176_s9, %s2483_s26  ;;  %p2492_p6 = scmp.lt.s32.totalorder %s2483_s26, %s2483_s26 }
  0x28   : > { %p2486_p4 = pnand %p2484_p1, %p2472_p3  ;;  %p2493_p13 = por %p2492_p6, %p2491_p11 }
  0x2a   : > { %p2487_p12 = pneg %p2486_p4 }
  0x2c   : > { %p2494_p5 = pnand %p2493_p13, %p2487_p12 }
  0x2e   : > { %2497 = shalt.err (!%p2494_p5)
}
  0x2f   : > { %s2628_s8 = smov 128   ;;  %s2629_s11 = smov 8  }
  0x30   : > { %2209 = dma.hbm_to_vmem [thread:$0]  (!%p2734_p2), %s3456_s1, 4096, %s176_s9, [#allocation6], %s2628_s8, %s2628_s8, %s2629_s11  }
  0x31   : > { %s2498_s17 = scalar_lea.hbm %s3458_s3, 4096 }
  0x32   : > { %p2499_p4 = scmp.ne.s32.totalorder %s3458_s3, %s2498_s17  ;;  %p2505_p11 = scmp.lt.u32.totalorder %s2498_s17, %s3458_s3 }
  0x34   : > { %p2501_p5 = pnand %p2499_p4, %p2472_p3 }
  0x36   : > { %p2502_p6 = pneg %p2501_p5 }
  0x38   : > { %p2507_p12 = pnand %p2505_p11, %p2502_p6 }
  0x3a   : > { %2510 = shalt.err (!%p2507_p12)
}
  0x3b   : > { %s2511_s9 = scalar_lea.vmem %s2738_s12, 4096  ;;  %p2519_p8 = scmp.lt.s32.totalorder %s2738_s12, %s2738_s12 }
  0x3c   : > { %p2512_p13 = scmp.ne.s32.totalorder %s2738_s12, %s2511_s9  ;;  %p2520_p9 = scmp.lt.s32.totalorder %s2511_s9, %s2511_s9 }
  0x3e   : > { %p2514_p0 = pnand %p2512_p13, %p2472_p3  ;;  %p2521_p10 = por %p2520_p9, %p2519_p8 }
  0x40   : > { %p2515_p7 = pneg %p2514_p0 }
  0x42   : > { %p2522_p1 = pnand %p2521_p10, %p2515_p7 }
  0x44   : > { %2525 = shalt.err (!%p2522_p1)
}
  0x45   : > { %2212 = dma.hbm_to_vmem [thread:$0]  (!%p2734_p2), %s3458_s3, 4096, %s2738_s12, [#allocation6], %s2628_s8, %s2628_s8, %s2629_s11  }
  0x46   : > { %p1940_p4 = scmp.ge.s32.totalorder %s2624_s21, 3 }
  0x47   : > { %p3486_p5 = scmp.ne.s32.totalorder (!%p1940_p4), %s3480_s28, 0 }
  0x48   : > { %204 = sbr.rel (%p1940_p4) target bundleno = 114 (0x72), region = 32 }
  0x4f   : > { %207 = sbr.rel (!%p3486_p5) target bundleno = 114 (0x72), region = 36  ;;  %s208_s14 = sand.u32 (%p3486_p5), 1, %s2620_s20  }
  0x50   : > { %s1942_s15 = sshll.u32 (%p3486_p5), %s2624_s21, 5  ;;  %s1941_s16 = sshll.u32 (%p3486_p5), %s208_s14, 8 }
  0x51   : > { %s214_s17 = ssub.s32 (%p3486_p5), 65, %s1942_s15  ;;  %s2795_s25 = scalar_lea.sflag (%p3486_p5), [#allocation3], %s208_s14 }
  0x52   : > { %p215_p3 = scmp.lt.s32.totalorder (%p3486_p5), %s214_s17, 32  ;;  %s212_s12 = scalar_lea.vmem (%p3486_p5), [#allocation2], %s1941_s16 }
  0x56   : > { %s3529_s17 = smov (!%p215_p3, %s214_s17), 32 }
  0x57   : > { %s2792_s10 = sshll.u32 %s3529_s17, 7 }
  0x58   : > { %s220_s23 = ssub.s32 4096, %s2792_s10 }
  0x59   : > { %221 = vsyncadd %s2795_s25, %s220_s23  ;;  %p1945_p2 = scmp.ne.s32.totalorder %s2792_s10, 0  ;;  %s2064_s28 = sshll.u32 %s2624_s21, 12 }
  0x5a   : > { %s2803_s26 = scalar_lea.hbm %s3455_s0, %s2064_s28  ;;  %s227_s9 = sshll.u32 %s212_s12, 4  ;;  %s2805_s9 = int_to_ptr.vmem [resolvable:$true] %s227_s9 }
  0x5b   : > { %s2526_s27 = scalar_lea.hbm %s2803_s26, %s2792_s10  ;;  %s2530_s15 = scalar_lea.hbm %s3455_s0, 8320 }
  0x5c   : > { %p2527_p6 = scmp.ne.s32.totalorder %s2803_s26, %s2526_s27  ;;  %p2531_p13 = scmp.lt.u32.totalorder %s2803_s26, %s3455_s0 }
  0x5d   : > { %p2532_p0 = scmp.lt.u32.totalorder %s2530_s15, %s2526_s27  ;;  %p2534_p8 = scmp.lt.u32.totalorder %s2526_s27, %s2803_s26 }
  0x5e   : > { %p2528_p11 = pnand %p2527_p6, %p1945_p2 }
  0x5f   : > { %p2533_p7 = por %p2532_p0, %p2531_p13 }
  0x60   : > { %p2529_p12 = pneg %p2528_p11 }
  0x61   : > { %p2535_p9 = por %p2534_p8, %p2533_p7 }
  0x63   : > { %p2536_p10 = pnand %p2535_p9, %p2529_p12 }
  0x65   : > { %2539 = shalt.err (!%p2536_p10)
}
  0x66   : > { %s2540_s23 = scalar_lea.vmem %s2805_s9, %s2792_s10  ;;  %s2630_s12 = smov [#allocation2]  }
  0x67   : > { %p2541_p1 = scmp.ne.s32.totalorder %s2805_s9, %s2540_s23  ;;  %s2544_s28 = sshll.u32 %s2630_s12, 4  ;;  %s2545_s28 = int_to_ptr.vmem [resolvable:$false] %s2544_s28 }
  0x68   : > { %s2546_s8 = scalar_lea.vmem %s2545_s28, 8192  ;;  %p2547_p3 = scmp.lt.s32.totalorder %s2805_s9, %s2545_s28 }
  0x69   : > { %p2542_p4 = pnand %p2541_p1, %p1945_p2  ;;  %p2548_p6 = scmp.lt.s32.totalorder %s2546_s8, %s2540_s23 }
  0x6b   : > { %p2543_p5 = pneg %p2542_p4  ;;  %p2549_p11 = por %p2548_p6, %p2547_p3 }
  0x6d   : > { %p2550_p13 = pnand %p2549_p11, %p2543_p5 }
  0x6f   : > { %2553 = shalt.err (!%p2550_p13)
}
  0x70   : > { %s2631_s11 = smov 128   ;;  %s2632_s27 = smov 8  }
  0x71   : > { %233 = dma.hbm_to_vmem [thread:$0]  (%p1945_p2), %s2803_s26, %s2792_s10, %s2805_s9, %s2795_s25, %s2631_s11, %s2631_s11, %s2632_s27  }
  0x72 PF: > { %p3487_p12 = scmp.ne.s32.totalorder %s3484_s7, 0 }
  0x74   : > { %239 = sbr.rel (%p3487_p12) target bundleno = 944 (0x3b0), region = 40 }
  0x7b   : > { %s2835_s13 = sand.u32 1, %s2616_s19   ;;  %p3488_p0 = scmp.ne.s32.totalorder %s3481_s29, 0 }
  0x7c   : > { %s1951_s14 = sshll.u32 %s2835_s13, 8  ;;  %s242_s15 = scalar_lea.sflag [#allocation3], %s2835_s13 }
  0x7d   : > { %s2841_s16 = scalar_lea.vmem [#allocation2], %s1951_s14 }
  0x7e   : > { %2599 = dma.done.wait (%p3488_p0), %s242_s15, 4096  }
  0x7f   : > { %2601 = vsyncadd (%p3488_p0), %s242_s15, 4294963200  ;;  %p3489_p2 = scmp.eq.s32.totalorder %s2687_s22, 0 }
  0x81   : > { %2603 = dma.done.wait (%p3489_p2), [#allocation6], 8192   ;;  %p3490_p7 = pmov %p3489_p2 }
  0x82   : > { %v2262_v0 = vld [vmem:[#allocation5 + $0x4] ss:$8 sps:$4 sm:$0xff]   ;;  %v2264_v1 = vld [vmem:[#allocation5] ss:$8 sps:$4 sm:$0xff]   ;;  %v2265_v2 = vld [vmem:[#allocation5 + $0x14] ss:$8 sps:$4 sm:$0xff]  }
  0x83   : > { %2605 = vsyncadd (%p3490_p7), [#allocation6], 4294959104  ;;  %688 = vmatprep.subr.bf16.mxu0 %v2262_v0  ;;  %v2267_v3 = vld [vmem:[#allocation5 + $0x10] ss:$8 sps:$4 sm:$0xff]   ;;  %v2268_v4 = vld [vmem:[#allocation5 + $0x24] ss:$8 sps:$4 sm:$0xff]  }
  0x84   : > { %689 = vmatpush1.bf16.msra.mxu0 %v2264_v1  ;;  %v2270_v5 = vld [vmem:[#allocation5 + $0x20] ss:$8 sps:$4 sm:$0xff]   ;;  %v2271_v6 = vld [vmem:[#allocation5 + $0x34] ss:$8 sps:$4 sm:$0xff]   ;;  %v2273_v7 = vld [vmem:[#allocation5 + $0x30] ss:$8 sps:$4 sm:$0xff]  }
  0x85   : > { %690 = vmatprep.subr.bf16.mxu0 %v2265_v2  ;;  %v2274_v8 = vld [vmem:[#allocation5 + $0x44] ss:$8 sps:$4 sm:$0xff]   ;;  %v2276_v9 = vld [vmem:[#allocation5 + $0x40] ss:$8 sps:$4 sm:$0xff]   ;;  %v2277_v10 = vld [vmem:[#allocation5 + $0x54] ss:$8 sps:$4 sm:$0xff]  }
  0x86   : > { %v2279_v11 = vld [vmem:[#allocation5 + $0x50] ss:$8 sps:$4 sm:$0xff]   ;;  %v2280_v12 = vld [vmem:[#allocation5 + $0x64] ss:$8 sps:$4 sm:$0xff]   ;;  %v2282_v14 = vld [vmem:[#allocation5 + $0x60] ss:$8 sps:$4 sm:$0xff]  }
  0x87   : > { %v2312_v13 = vld [vmem:[%s2841_s16 + $0x4] ss:$8 sps:$4 sm:$0xff]   ;;  %v2283_v15 = vld [vmem:[#allocation5 + $0x74] ss:$8 sps:$4 sm:$0xff]   ;;  %v2285_v16 = vld [vmem:[#allocation5 + $0x70] ss:$8 sps:$4 sm:$0xff]  }
  0x88   : > { %691 = vmatpush1.bf16.msra.mxu0 %v2267_v3  ;;  %720 = vmatprep.mubr.bf16.mxu0 %v2312_v13  ;;  %v2286_v17 = vld [vmem:[#allocation5 + $0x84] ss:$8 sps:$4 sm:$0xff]   ;;  %v2288_v18 = vld [vmem:[#allocation5 + $0x80] ss:$8 sps:$4 sm:$0xff]   ;;  %v2289_v19 = vld [vmem:[#allocation5 + $0x94] ss:$8 sps:$4 sm:$0xff]  }
  0x89   : > { %692 = vmatprep.subr.bf16.mxu0 %v2268_v4  ;;  %v2291_v20 = vld [vmem:[#allocation5 + $0x90] ss:$8 sps:$4 sm:$0xff]   ;;  %v2292_v21 = vld [vmem:[#allocation5 + $0xa4] ss:$8 sps:$4 sm:$0xff]   ;;  %v2294_v22 = vld [vmem:[#allocation5 + $0xa0] ss:$8 sps:$4 sm:$0xff]  }
  0x8a   : > { %v2295_v23 = vld [vmem:[#allocation5 + $0xb4] ss:$8 sps:$4 sm:$0xff]   ;;  %v2297_v24 = vld [vmem:[#allocation5 + $0xb0] ss:$8 sps:$4 sm:$0xff]   ;;  %v2298_v25 = vld [vmem:[#allocation5 + $0xc4] ss:$8 sps:$4 sm:$0xff]  }
  0x8b   : > { %v2300_v26 = vld [vmem:[#allocation5 + $0xc0] ss:$8 sps:$4 sm:$0xff]   ;;  %v2301_v27 = vld [vmem:[#allocation5 + $0xd4] ss:$8 sps:$4 sm:$0xff]   ;;  %v2303_v28 = vld [vmem:[#allocation5 + $0xd0] ss:$8 sps:$4 sm:$0xff]  }
  0x8c   : > { %693 = vmatpush1.bf16.msra.mxu0 %v2270_v5  ;;  %v2304_v29 = vld [vmem:[#allocation5 + $0xe4] ss:$8 sps:$4 sm:$0xff]   ;;  %v2306_v30 = vld [vmem:[#allocation5 + $0xe0] ss:$8 sps:$4 sm:$0xff]   ;;  %v2307_v31 = vld [vmem:[#allocation5 + $0xf4] ss:$8 sps:$4 sm:$0xff]  }
  0x8d   : > { %694 = vmatprep.subr.bf16.mxu0 %v2271_v6  ;;  %v2358_v32 = vld [vmem:[#allocation7 + $0x4] ss:$8 sps:$4 sm:$0xff]   ;;  %v2360_v33 = vld [vmem:[#allocation7] ss:$8 sps:$4 sm:$0xff]   ;;  %v2361_v34 = vld [vmem:[#allocation7 + $0x14] ss:$8 sps:$4 sm:$0xff]  }
  0x8e   : > { %v2309_v35 = vld [vmem:[#allocation5 + $0xf0] ss:$8 sps:$4 sm:$0xff]   ;;  %2101 = vmatprep.subr.bf16.mxu1 %v2358_v32  ;;  %v2310_v37 = vld [vmem:[%s2841_s16] ss:$8 sps:$4 sm:$0xff]   ;;  %v2364_v38 = vld [vmem:[#allocation7 + $0x24] ss:$8 sps:$4 sm:$0xff]   ;;  %v358_v32 = vlaneseq }
  0x8f   : > { %2103 = vmatpush1.bf16.msra.mxu1 %v2360_v33  ;;  %v2363_v36 = vld [vmem:[#allocation7 + $0x10] ss:$8 sps:$4 sm:$0xff]   ;;  %v2313_v39 = vld [vmem:[%s2841_s16 + $0x14] ss:$8 sps:$4 sm:$0xff]   ;;  %v2366_v40 = vld [vmem:[#allocation7 + $0x20] ss:$8 sps:$4 sm:$0xff]  }
  0x90   : > { %695 = vmatpush1.bf16.msra.mxu0 %v2273_v7  ;;  %2105 = vmatprep.subr.bf16.mxu1 %v2361_v34  ;;  %v2367_v41 = vld [vmem:[#allocation7 + $0x34] ss:$8 sps:$4 sm:$0xff]   ;;  %v2369_v42 = vld [vmem:[#allocation7 + $0x30] ss:$8 sps:$4 sm:$0xff]   ;;  %v2370_v44 = vld [vmem:[#allocation7 + $0x44] ss:$8 sps:$4 sm:$0xff]  }
  0x91   : > { %696 = vmatprep.subr.bf16.mxu0 %v2274_v8  ;;  %v2315_v43 = vld [vmem:[%s2841_s16 + $0x10] ss:$8 sps:$4 sm:$0xff]   ;;  %v2316_v45 = vld [vmem:[%s2841_s16 + $0x24] ss:$8 sps:$4 sm:$0xff]   ;;  %v2372_v46 = vld [vmem:[#allocation7 + $0x40] ss:$8 sps:$4 sm:$0xff]  }
  0x92   : > { %v2373_v47 = vld [vmem:[#allocation7 + $0x54] ss:$8 sps:$4 sm:$0xff]   ;;  %v2375_v48 = vld [vmem:[#allocation7 + $0x50] ss:$8 sps:$4 sm:$0xff]   ;;  %v2318_v49 = vld [vmem:[%s2841_s16 + $0x20] ss:$8 sps:$4 sm:$0xff]  }
  0x93   : > { %2107 = vmatpush1.bf16.msra.mxu1 %v2363_v36  ;;  %v2376_v50 = vld [vmem:[#allocation7 + $0x64] ss:$8 sps:$4 sm:$0xff]   ;;  %v2319_v51 = vld [vmem:[%s2841_s16 + $0x34] ss:$8 sps:$4 sm:$0xff]   ;;  %v2378_v52 = vld [vmem:[#allocation7 + $0x60] ss:$8 sps:$4 sm:$0xff]  }
  0x94   : > { %697 = vmatpush1.bf16.msra.mxu0 %v2276_v9  ;;  %2109 = vmatprep.subr.bf16.mxu1 %v2364_v38  ;;  %v2379_v53 = vld [vmem:[#allocation7 + $0x74] ss:$8 sps:$4 sm:$0xff]   ;;  %v2381_v54 = vld [vmem:[#allocation7 + $0x70] ss:$8 sps:$4 sm:$0xff]   ;;  %v2382_v56 = vld [vmem:[#allocation7 + $0x84] ss:$8 sps:$4 sm:$0xff]  }
  0x95   : > { %698 = vmatprep.subr.bf16.mxu0 %v2277_v10  ;;  %v2321_v55 = vld [vmem:[%s2841_s16 + $0x30] ss:$8 sps:$4 sm:$0xff]   ;;  %v2322_v57 = vld [vmem:[%s2841_s16 + $0x44] ss:$8 sps:$4 sm:$0xff]   ;;  %v2384_v58 = vld [vmem:[#allocation7 + $0x80] ss:$8 sps:$4 sm:$0xff]  }
  0x96   : > { %v2385_v59 = vld [vmem:[#allocation7 + $0x94] ss:$8 sps:$4 sm:$0xff]   ;;  %v2387_v60 = vld [vmem:[#allocation7 + $0x90] ss:$8 sps:$4 sm:$0xff]   ;;  %v2324_v61 = vld [vmem:[%s2841_s16 + $0x40] ss:$8 sps:$4 sm:$0xff]  }
  0x97   : > { %2111 = vmatpush1.bf16.msra.mxu1 %v2366_v40  ;;  %v2388_v62 = vld [vmem:[#allocation7 + $0xa4] ss:$8 sps:$4 sm:$0xff]   ;;  %v2325_v63 = vld [vmem:[%s2841_s16 + $0x54] ss:$8 sps:$4 sm:$0xff]   ;;  %v2390_v0 = vld [vmem:[#allocation7 + $0xa0] ss:$8 sps:$4 sm:$0xff]  }
  0x98   : > { %699 = vmatpush1.bf16.msra.mxu0 %v2279_v11  ;;  %2113 = vmatprep.subr.bf16.mxu1 %v2367_v41  ;;  %v2391_v1 = vld [vmem:[#allocation7 + $0xb4] ss:$8 sps:$4 sm:$0xff]   ;;  %v2393_v2 = vld [vmem:[#allocation7 + $0xb0] ss:$8 sps:$4 sm:$0xff]   ;;  %v2394_v4 = vld [vmem:[#allocation7 + $0xc4] ss:$8 sps:$4 sm:$0xff]  }
  0x99   : > { %700 = vmatprep.subr.bf16.mxu0 %v2280_v12  ;;  %v2327_v3 = vld [vmem:[%s2841_s16 + $0x50] ss:$8 sps:$4 sm:$0xff]   ;;  %v2328_v5 = vld [vmem:[%s2841_s16 + $0x64] ss:$8 sps:$4 sm:$0xff]   ;;  %v2396_v6 = vld [vmem:[#allocation7 + $0xc0] ss:$8 sps:$4 sm:$0xff]  }
  0x9a   : > { %v2397_v7 = vld [vmem:[#allocation7 + $0xd4] ss:$8 sps:$4 sm:$0xff]   ;;  %v2399_v8 = vld [vmem:[#allocation7 + $0xd0] ss:$8 sps:$4 sm:$0xff]   ;;  %v2330_v9 = vld [vmem:[%s2841_s16 + $0x60] ss:$8 sps:$4 sm:$0xff]  }
  0x9b   : > { %2115 = vmatpush1.bf16.msra.mxu1 %v2369_v42  ;;  %v2400_v10 = vld [vmem:[#allocation7 + $0xe4] ss:$8 sps:$4 sm:$0xff]   ;;  %v2331_v11 = vld [vmem:[%s2841_s16 + $0x74] ss:$8 sps:$4 sm:$0xff]   ;;  %v2333_v12 = vld [vmem:[%s2841_s16 + $0x70] ss:$8 sps:$4 sm:$0xff]  }
  0x9c   : > { %701 = vmatpush1.bf16.msra.mxu0 %v2282_v14  ;;  %2117 = vmatprep.subr.bf16.mxu1 %v2370_v44  ;;  %v2334_v13 = vld [vmem:[%s2841_s16 + $0x84] ss:$8 sps:$4 sm:$0xff]   ;;  %v2336_v14 = vld [vmem:[%s2841_s16 + $0x80] ss:$8 sps:$4 sm:$0xff]   ;;  %v2883_v33 = vshrl.u32 %v358_v32, 7  ;;  %s3297_s26 = scalar_lea.vmem [#allocation8], %s1951_s14 }
  0x9d   : > { %702 = vmatprep.subr.bf16.mxu0 %v2283_v15  ;;  %v2337_v15 = vld [vmem:[%s2841_s16 + $0x94] ss:$8 sps:$4 sm:$0xff]   ;;  %s1823_s9 = scalar_lea.sflag [#allocation4], %s2835_s13  ;;  %p3521_p8 = scmp.ne.s32.totalorder %s3482_s30, 0 }
  0x9e   : > { %v360_v34 = vsub.s32 0, %v2883_v33  ;;  %v364_v36 = vsub.s32 1, %v2883_v33  ;;  %s2052_s17 = sshll.u32 (%p3521_p8), %s2687_s22, 5 }
  0x9f   : > { %2119 = vmatpush1.bf16.msra.mxu1 %v2372_v46  ;;  %s1831_s23 = ssub.s32 (%p3521_p8), 65, %s2052_s17 }
  0xa0   : > { %703 = vmatpush1.bf16.msra.mxu0 %v2285_v16  ;;  %2121 = vmatprep.subr.bf16.mxu1 %v2373_v47  ;;  %v2339_v16 = vld [vmem:[%s2841_s16 + $0x90] ss:$8 sps:$4 sm:$0xff]   ;;  %p1832_p9 = scmp.lt.s32.totalorder (%p3521_p8), %s1831_s23, 32 }
  0xa1   : > { %704 = vmatprep.subr.bf16.mxu0 %v2286_v17  ;;  %v2340_v17 = vld [vmem:[%s2841_s16 + $0xa4] ss:$8 sps:$4 sm:$0xff]  }
  0xa3   : > { %2123 = vmatpush1.bf16.msra.mxu1 %v2375_v48 }
  0xa4   : > { %705 = vmatpush1.bf16.msra.mxu0 %v2288_v18  ;;  %2125 = vmatprep.subr.bf16.mxu1 %v2376_v50  ;;  %v2342_v18 = vld [vmem:[%s2841_s16 + $0xa0] ss:$8 sps:$4 sm:$0xff]  }
  0xa5   : > { %706 = vmatprep.subr.bf16.mxu0 %v2289_v19  ;;  %v2343_v19 = vld [vmem:[%s2841_s16 + $0xb4] ss:$8 sps:$4 sm:$0xff]  }
  0xa7   : > { %2127 = vmatpush1.bf16.msra.mxu1 %v2378_v52 }
  0xa8   : > { %707 = vmatpush1.bf16.msra.mxu0 %v2291_v20  ;;  %2129 = vmatprep.subr.bf16.mxu1 %v2379_v53  ;;  %v2402_v20 = vld [vmem:[#allocation7 + $0xe0] ss:$8 sps:$4 sm:$0xff]  }
  0xa9   : > { %708 = vmatprep.subr.bf16.mxu0 %v2292_v21  ;;  %v2345_v21 = vld [vmem:[%s2841_s16 + $0xb0] ss:$8 sps:$4 sm:$0xff]  }
  0xab   : > { %2131 = vmatpush1.bf16.msra.mxu1 %v2381_v54 }
  0xac   : > { %709 = vmatpush1.bf16.msra.mxu0 %v2294_v22  ;;  %2133 = vmatprep.subr.bf16.mxu1 %v2382_v56  ;;  %v2403_v22 = vld [vmem:[#allocation7 + $0xf4] ss:$8 sps:$4 sm:$0xff]  }
  0xad   : > { %710 = vmatprep.subr.bf16.mxu0 %v2295_v23  ;;  %v2346_v23 = vld [vmem:[%s2841_s16 + $0xc4] ss:$8 sps:$4 sm:$0xff]  }
  0xaf   : > { %2135 = vmatpush1.bf16.msra.mxu1 %v2384_v58 }
  0xb0   : > { %711 = vmatpush1.bf16.msra.mxu0 %v2297_v24  ;;  %2137 = vmatprep.subr.bf16.mxu1 %v2385_v59  ;;  %v2405_v24 = vld [vmem:[#allocation7 + $0xf0] ss:$8 sps:$4 sm:$0xff]  }
  0xb1   : > { %712 = vmatprep.subr.bf16.mxu0 %v2298_v25  ;;  %v2348_v25 = vld [vmem:[%s2841_s16 + $0xc0] ss:$8 sps:$4 sm:$0xff]  }
  0xb3   : > { %2139 = vmatpush1.bf16.msra.mxu1 %v2387_v60 }
  0xb4   : > { %713 = vmatpush1.bf16.msra.mxu0 %v2300_v26  ;;  %2141 = vmatprep.subr.bf16.mxu1 %v2388_v62  ;;  %v2349_v26 = vld [vmem:[%s2841_s16 + $0xd4] ss:$8 sps:$4 sm:$0xff]  }
  0xb5   : > { %714 = vmatprep.subr.bf16.mxu0 %v2301_v27  ;;  %v2351_v27 = vld [vmem:[%s2841_s16 + $0xd0] ss:$8 sps:$4 sm:$0xff]  }
  0xb7   : > { %2143 = vmatpush1.bf16.msra.mxu1 %v2390_v0 }
  0xb8   : > { %715 = vmatpush1.bf16.msra.mxu0 %v2303_v28  ;;  %2145 = vmatprep.subr.bf16.mxu1 %v2391_v1  ;;  %v2352_v28 = vld [vmem:[%s2841_s16 + $0xe4] ss:$8 sps:$4 sm:$0xff]  }
  0xb9   : > { %716 = vmatprep.subr.bf16.mxu0 %v2304_v29  ;;  %v2354_v29 = vld [vmem:[%s2841_s16 + $0xe0] ss:$8 sps:$4 sm:$0xff]  }
  0xbb   : > { %2147 = vmatpush1.bf16.msra.mxu1 %v2393_v2 }
  0xbc   : > { %717 = vmatpush1.bf16.msra.mxu0 %v2306_v30  ;;  %2149 = vmatprep.subr.bf16.mxu1 %v2394_v4  ;;  %v2355_v30 = vld [vmem:[%s2841_s16 + $0xf4] ss:$8 sps:$4 sm:$0xff]  }
  0xbd   : > { %718 = vmatprep.subr.bf16.mxu0 %v2307_v31  ;;  %v2357_v31 = vld [vmem:[%s2841_s16 + $0xf0] ss:$8 sps:$4 sm:$0xff]  }
  0xbf   : > { %2151 = vmatpush1.bf16.msra.mxu1 %v2396_v6 }
  0xc0   : > { %719 = vmatpush1.bf16.msra.mxu0 %v2309_v35  ;;  %2153 = vmatprep.subr.bf16.mxu1 %v2397_v7  ;;  %v356_v35 = vld [vmem:[%s3457_s2] sm:$0x3] }
  0xc1   : > { %v2896_v38 = vrot.slane %v356_v35, %v364_v36 }
  0xc3   : > { %721 = vmatmul.mubr.bf16.vlgmr.msra.gmra.mrb[0].mxu0 %v2310_v37  ;;  %2155 = vmatpush1.bf16.msra.mxu1 %v2399_v8  ;;  %v2892_v37 = vrot.slane %v356_v35, %v360_v34 }
  0xc4   : > { %730 = vmatprep.mubr.bf16.mxu0 %v2313_v39  ;;  %2157 = vmatprep.subr.bf16.mxu1 %v2400_v10 }
  0xc7   : > { %2159 = vmatpush1.bf16.msra.mxu1 %v2402_v20 }
  0xc8   : > { %2161 = vmatprep.subr.bf16.mxu1 %v2403_v22 }
  0xcb   : > { %731 = vmatmul.mubr.bf16.gmra.mrb[4].mxu0 %v2315_v43  ;;  %2163 = vmatpush1.bf16.msra.mxu1 %v2405_v24 }
  0xcc   : > { %740 = vmatprep.mubr.bf16.mxu0 %v2316_v45 }
  0xd3   : > { %741 = vmatmul.mubr.bf16.gmra.mrb[8].mxu0 %v2318_v49 }
  0xd4   : > { %750 = vmatprep.mubr.bf16.mxu0 %v2319_v51 }
  0xdb   : > { %751 = vmatmul.mubr.bf16.gmra.mrb[12].mxu0 %v2321_v55 }
  0xdc   : > { %760 = vmatprep.mubr.bf16.mxu0 %v2322_v57 }
  0xe3   : > { %761 = vmatmul.mubr.bf16.gmra.mrb[16].mxu0 %v2324_v61 }
  0xe4   : > { %770 = vmatprep.mubr.bf16.mxu0 %v2325_v63 }
  0xeb   : > { %771 = vmatmul.mubr.bf16.gmra.mrb[20].mxu0 %v2327_v3 }
  0xec   : > { %780 = vmatprep.mubr.bf16.mxu0 %v2328_v5 }
  0xf3   : > { %781 = vmatmul.mubr.bf16.gmra.mrb[24].mxu0 %v2330_v9 }
  0xf4   : > { %790 = vmatprep.mubr.bf16.mxu0 %v2331_v11 }
  0xfb   : > { %791 = vmatmul.mubr.bf16.gmra.mrb[28].mxu0 %v2333_v12 }
  0xfc   : > { %800 = vmatprep.mubr.bf16.mxu0 %v2334_v13 }
 0x103   : > { %801 = vmatmul.mubr.bf16.gmra.mrb[32].mxu0 %v2336_v14 }
 0x104   : > { %810 = vmatprep.mubr.bf16.mxu0 %v2337_v15 }
 0x10b   : > { %811 = vmatmul.mubr.bf16.gmra.mrb[36].mxu0 %v2339_v16 }
 0x10c   : > { %820 = vmatprep.mubr.bf16.mxu0 %v2340_v17 }
 0x113   : > { %821 = vmatmul.mubr.bf16.gmra.mrb[40].mxu0 %v2342_v18 }
 0x114   : > { %830 = vmatprep.mubr.bf16.mxu0 %v2343_v19 }
 0x11b   : > { %831 = vmatmul.mubr.bf16.gmra.mrb[44].mxu0 %v2345_v21 }
 0x11c   : > { %840 = vmatprep.mubr.bf16.mxu0 %v2346_v23 }
 0x123   : > { %841 = vmatmul.mubr.bf16.gmra.mrb[48].mxu0 %v2348_v25 }
 0x124   : > { %850 = vmatprep.mubr.bf16.mxu0 %v2349_v26 }
 0x12b   : > { %851 = vmatmul.mubr.bf16.gmra.mrb[52].mxu0 %v2351_v27 }
 0x12c   : > { %860 = vmatprep.mubr.bf16.mxu0 %v2352_v28 }
 0x133   : > { %861 = vmatmul.mubr.bf16.gmra.mrb[56].mxu0 %v2354_v29 }
 0x134   : > { %870 = vmatprep.mubr.bf16.mxu0 %v2355_v30 }
 0x13b   : > { %871 = vmatmul.mubr.bf16.gmra.mrb[60].mxu0 %v2357_v31 }
 0x196   : > { %v722_v39 = vpop.f32.mrb[0].mxu0 }
 0x197   : > { %v723_v40 = vadd.f32 %v722_v39, %v2892_v37  ;;  %v724_v41 = vpop.f32.mrb[1].mxu0 }
 0x198   : > { %v726_v42 = vpop.f32.mrb[2].mxu0  ;;  %v725_v43 = vadd.f32 %v724_v41, %v2896_v38 }
 0x199   : > { %v728_v44 = vpop.f32.mrb[3].mxu0  ;;  %v881_v47 = vmax.f32 %v723_v40, 0.0  ;;  %v727_v48 = vadd.f32 %v726_v42, %v2892_v37 }
 0x19a   : > { %v729_v45 = vadd.f32 %v728_v44, %v2896_v38  ;;  %v882_v46 = vmax.f32 %v725_v43, 0.0 }
 0x19b   : > { %v883_v51 = vmax.f32 %v727_v48, 0.0 }
 0x19c   : > { %v884_v49 = vmax.f32 %v729_v45, 0.0  ;;  %1117 = vmatprep.mubr.f32.mxu1 %v882_v46 }
 0x19d   : > { %1118 = vmatmul.mubr.f32.vlgmr.msra.gmra.mrb[0].mxu1 %v881_v47 }
 0x19e   : > { %v732_v50 = vpop.f32.mrb[4].mxu0  ;;  %1123 = vmatprep.mubr.f32.mxu1 %v884_v49 }
 0x19f   : > { %v733_v52 = vadd.f32 %v732_v50, %v2892_v37  ;;  %v734_v53 = vpop.f32.mrb[5].mxu0 }
 0x1a0   : > { %v735_v54 = vadd.f32 %v734_v53, %v2896_v38  ;;  %v736_v55 = vpop.f32.mrb[6].mxu0 }
 0x1a1   : > { %v738_v56 = vpop.f32.mrb[7].mxu0  ;;  %1124 = vmatmul.mubr.f32.gmra.mrb[2].mxu1 %v883_v51  ;;  %v885_v59 = vmax.f32 %v733_v52, 0.0  ;;  %v737_v60 = vadd.f32 %v736_v55, %v2892_v37 }
 0x1a2   : > { %v886_v57 = vmax.f32 %v735_v54, 0.0  ;;  %v739_v58 = vadd.f32 %v738_v56, %v2896_v38 }
 0x1a3   : > { %v887_v63 = vmax.f32 %v737_v60, 0.0 }
 0x1a4   : > { %v888_v61 = vmax.f32 %v739_v58, 0.0  ;;  %1129 = vmatprep.mubr.f32.mxu1 %v886_v57 }
 0x1a5   : > { %1130 = vmatmul.mubr.f32.gmra.mrb[4].mxu1 %v885_v59 }
 0x1a6   : > { %v742_v62 = vpop.f32.mrb[8].mxu0  ;;  %1135 = vmatprep.mubr.f32.mxu1 %v888_v61 }
 0x1a7   : > { %v743_v0 = vadd.f32 %v742_v62, %v2892_v37  ;;  %v744_v1 = vpop.f32.mrb[9].mxu0 }
 0x1a8   : > { %v745_v2 = vadd.f32 %v744_v1, %v2896_v38  ;;  %v746_v3 = vpop.f32.mrb[10].mxu0 }
 0x1a9   : > { %v748_v4 = vpop.f32.mrb[11].mxu0  ;;  %1136 = vmatmul.mubr.f32.gmra.mrb[6].mxu1 %v887_v63  ;;  %v889_v7 = vmax.f32 %v743_v0, 0.0  ;;  %v747_v8 = vadd.f32 %v746_v3, %v2892_v37 }
 0x1aa   : > { %v890_v5 = vmax.f32 %v745_v2, 0.0  ;;  %v749_v6 = vadd.f32 %v748_v4, %v2896_v38 }
 0x1ab   : > { %v891_v11 = vmax.f32 %v747_v8, 0.0 }
 0x1ac   : > { %v892_v9 = vmax.f32 %v749_v6, 0.0  ;;  %1141 = vmatprep.mubr.f32.mxu1 %v890_v5 }
 0x1ad   : > { %1142 = vmatmul.mubr.f32.gmra.mrb[8].mxu1 %v889_v7 }
 0x1ae   : > { %v752_v10 = vpop.f32.mrb[12].mxu0  ;;  %1147 = vmatprep.mubr.f32.mxu1 %v892_v9 }
 0x1af   : > { %v753_v12 = vadd.f32 %v752_v10, %v2892_v37  ;;  %v754_v13 = vpop.f32.mrb[13].mxu0 }
 0x1b0   : > { %v755_v14 = vadd.f32 %v754_v13, %v2896_v38  ;;  %v756_v15 = vpop.f32.mrb[14].mxu0 }
 0x1b1   : > { %v758_v16 = vpop.f32.mrb[15].mxu0  ;;  %1148 = vmatmul.mubr.f32.gmra.mrb[10].mxu1 %v891_v11  ;;  %v893_v19 = vmax.f32 %v753_v12, 0.0  ;;  %v757_v20 = vadd.f32 %v756_v15, %v2892_v37 }
 0x1b2   : > { %v894_v17 = vmax.f32 %v755_v14, 0.0  ;;  %v759_v18 = vadd.f32 %v758_v16, %v2896_v38 }
 0x1b3   : > { %v895_v23 = vmax.f32 %v757_v20, 0.0 }
 0x1b4   : > { %v896_v21 = vmax.f32 %v759_v18, 0.0  ;;  %1153 = vmatprep.mubr.f32.mxu1 %v894_v17 }
 0x1b5   : > { %1154 = vmatmul.mubr.f32.gmra.mrb[12].mxu1 %v893_v19 }
 0x1b6   : > { %v762_v22 = vpop.f32.mrb[16].mxu0  ;;  %1159 = vmatprep.mubr.f32.mxu1 %v896_v21 }
 0x1b7   : > { %v763_v24 = vadd.f32 %v762_v22, %v2892_v37  ;;  %v764_v25 = vpop.f32.mrb[17].mxu0 }
 0x1b8   : > { %v765_v26 = vadd.f32 %v764_v25, %v2896_v38  ;;  %v766_v27 = vpop.f32.mrb[18].mxu0 }
 0x1b9   : > { %v768_v28 = vpop.f32.mrb[19].mxu0  ;;  %1160 = vmatmul.mubr.f32.gmra.mrb[14].mxu1 %v895_v23  ;;  %v897_v31 = vmax.f32 %v763_v24, 0.0  ;;  %v767_v32 = vadd.f32 %v766_v27, %v2892_v37 }
 0x1ba   : > { %v898_v29 = vmax.f32 %v765_v26, 0.0  ;;  %v769_v30 = vadd.f32 %v768_v28, %v2896_v38 }
 0x1bb   : > { %v899_v40 = vmax.f32 %v767_v32, 0.0 }
 0x1bc   : > { %v900_v35 = vmax.f32 %v769_v30, 0.0  ;;  %1165 = vmatprep.mubr.f32.mxu1 %v898_v29 }
 0x1bd   : > { %1166 = vmatmul.mubr.f32.gmra.mrb[16].mxu1 %v897_v31 }
 0x1be   : > { %v772_v39 = vpop.f32.mrb[20].mxu0  ;;  %1171 = vmatprep.mubr.f32.mxu1 %v900_v35 }
 0x1bf   : > { %v773_v41 = vadd.f32 %v772_v39, %v2892_v37  ;;  %v774_v42 = vpop.f32.mrb[21].mxu0 }
 0x1c0   : > { %v775_v43 = vadd.f32 %v774_v42, %v2896_v38  ;;  %v776_v44 = vpop.f32.mrb[22].mxu0 }
 0x1c1   : > { %v778_v45 = vpop.f32.mrb[23].mxu0  ;;  %1172 = vmatmul.mubr.f32.gmra.mrb[18].mxu1 %v899_v40  ;;  %v901_v48 = vmax.f32 %v773_v41, 0.0  ;;  %v777_v49 = vadd.f32 %v776_v44, %v2892_v37 }
 0x1c2   : > { %v902_v46 = vmax.f32 %v775_v43, 0.0  ;;  %v779_v47 = vadd.f32 %v778_v45, %v2896_v38 }
 0x1c3   : > { %v903_v52 = vmax.f32 %v777_v49, 0.0 }
 0x1c4   : > { %v904_v50 = vmax.f32 %v779_v47, 0.0  ;;  %1177 = vmatprep.mubr.f32.mxu1 %v902_v46 }
 0x1c5   : > { %1178 = vmatmul.mubr.f32.gmra.mrb[20].mxu1 %v901_v48 }
 0x1c6   : > { %v782_v51 = vpop.f32.mrb[24].mxu0  ;;  %1183 = vmatprep.mubr.f32.mxu1 %v904_v50 }
 0x1c7   : > { %v783_v53 = vadd.f32 %v782_v51, %v2892_v37  ;;  %v784_v54 = vpop.f32.mrb[25].mxu0 }
 0x1c8   : > { %v785_v55 = vadd.f32 %v784_v54, %v2896_v38  ;;  %v786_v56 = vpop.f32.mrb[26].mxu0 }
 0x1c9   : > { %v788_v57 = vpop.f32.mrb[27].mxu0  ;;  %1184 = vmatmul.mubr.f32.gmra.mrb[22].mxu1 %v903_v52  ;;  %v905_v60 = vmax.f32 %v783_v53, 0.0  ;;  %v787_v61 = vadd.f32 %v786_v56, %v2892_v37 }
 0x1ca   : > { %v906_v58 = vmax.f32 %v785_v55, 0.0  ;;  %v789_v59 = vadd.f32 %v788_v57, %v2896_v38 }
 0x1cb   : > { %v907_v0 = vmax.f32 %v787_v61, 0.0 }
 0x1cc   : > { %v908_v62 = vmax.f32 %v789_v59, 0.0  ;;  %1189 = vmatprep.mubr.f32.mxu1 %v906_v58 }
 0x1cd   : > { %1190 = vmatmul.mubr.f32.gmra.mrb[24].mxu1 %v905_v60 }
 0x1ce   : > { %v792_v63 = vpop.f32.mrb[28].mxu0  ;;  %1195 = vmatprep.mubr.f32.mxu1 %v908_v62 }
 0x1cf   : > { %v793_v1 = vadd.f32 %v792_v63, %v2892_v37  ;;  %v794_v2 = vpop.f32.mrb[29].mxu0 }
 0x1d0   : > { %v795_v3 = vadd.f32 %v794_v2, %v2896_v38  ;;  %v796_v4 = vpop.f32.mrb[30].mxu0 }
 0x1d1   : > { %v798_v5 = vpop.f32.mrb[31].mxu0  ;;  %1196 = vmatmul.mubr.f32.gmra.mrb[26].mxu1 %v907_v0  ;;  %v909_v8 = vmax.f32 %v793_v1, 0.0  ;;  %v797_v9 = vadd.f32 %v796_v4, %v2892_v37 }
 0x1d2   : > { %v910_v6 = vmax.f32 %v795_v3, 0.0  ;;  %v799_v7 = vadd.f32 %v798_v5, %v2896_v38 }
 0x1d3   : > { %v911_v12 = vmax.f32 %v797_v9, 0.0 }
 0x1d4   : > { %v912_v10 = vmax.f32 %v799_v7, 0.0  ;;  %1201 = vmatprep.mubr.f32.mxu1 %v910_v6 }
 0x1d5   : > { %1202 = vmatmul.mubr.f32.gmra.mrb[28].mxu1 %v909_v8 }
 0x1d6   : > { %v802_v11 = vpop.f32.mrb[32].mxu0  ;;  %1207 = vmatprep.mubr.f32.mxu1 %v912_v10 }
 0x1d7   : > { %v803_v13 = vadd.f32 %v802_v11, %v2892_v37  ;;  %v804_v14 = vpop.f32.mrb[33].mxu0 }
 0x1d8   : > { %v805_v15 = vadd.f32 %v804_v14, %v2896_v38  ;;  %v806_v16 = vpop.f32.mrb[34].mxu0 }
 0x1d9   : > { %v808_v17 = vpop.f32.mrb[35].mxu0  ;;  %1208 = vmatmul.mubr.f32.gmra.mrb[30].mxu1 %v911_v12  ;;  %v913_v20 = vmax.f32 %v803_v13, 0.0  ;;  %v807_v21 = vadd.f32 %v806_v16, %v2892_v37 }
 0x1da   : > { %v914_v18 = vmax.f32 %v805_v15, 0.0  ;;  %v809_v19 = vadd.f32 %v808_v17, %v2896_v38 }
 0x1db   : > { %v915_v24 = vmax.f32 %v807_v21, 0.0 }
 0x1dc   : > { %v916_v22 = vmax.f32 %v809_v19, 0.0  ;;  %1213 = vmatprep.mubr.f32.mxu1 %v914_v18 }
 0x1dd   : > { %1214 = vmatmul.mubr.f32.gmra.mrb[32].mxu1 %v913_v20 }
 0x1de   : > { %v812_v23 = vpop.f32.mrb[36].mxu0  ;;  %1219 = vmatprep.mubr.f32.mxu1 %v916_v22 }
 0x1df   : > { %v813_v25 = vadd.f32 %v812_v23, %v2892_v37  ;;  %v814_v26 = vpop.f32.mrb[37].mxu0 }
 0x1e0   : > { %v815_v27 = vadd.f32 %v814_v26, %v2896_v38  ;;  %v816_v28 = vpop.f32.mrb[38].mxu0 }
 0x1e1   : > { %v818_v29 = vpop.f32.mrb[39].mxu0  ;;  %1220 = vmatmul.mubr.f32.gmra.mrb[34].mxu1 %v915_v24  ;;  %v917_v32 = vmax.f32 %v813_v25, 0.0  ;;  %v817_v35 = vadd.f32 %v816_v28, %v2892_v37 }
 0x1e2   : > { %v918_v30 = vmax.f32 %v815_v27, 0.0  ;;  %v819_v31 = vadd.f32 %v818_v29, %v2896_v38 }
 0x1e3   : > { %v919_v41 = vmax.f32 %v817_v35, 0.0 }
 0x1e4   : > { %v920_v39 = vmax.f32 %v819_v31, 0.0  ;;  %1225 = vmatprep.mubr.f32.mxu1 %v918_v30 }
 0x1e5   : > { %1226 = vmatmul.mubr.f32.gmra.mrb[36].mxu1 %v917_v32 }
 0x1e6   : > { %v822_v40 = vpop.f32.mrb[40].mxu0  ;;  %1231 = vmatprep.mubr.f32.mxu1 %v920_v39 }
 0x1e7   : > { %v823_v42 = vadd.f32 %v822_v40, %v2892_v37  ;;  %v824_v43 = vpop.f32.mrb[41].mxu0 }
 0x1e8   : > { %v825_v44 = vadd.f32 %v824_v43, %v2896_v38  ;;  %v826_v45 = vpop.f32.mrb[42].mxu0 }
 0x1e9   : > { %v828_v46 = vpop.f32.mrb[43].mxu0  ;;  %1232 = vmatmul.mubr.f32.gmra.mrb[38].mxu1 %v919_v41  ;;  %v921_v49 = vmax.f32 %v823_v42, 0.0  ;;  %v827_v50 = vadd.f32 %v826_v45, %v2892_v37 }
 0x1ea   : > { %v922_v47 = vmax.f32 %v825_v44, 0.0  ;;  %v829_v48 = vadd.f32 %v828_v46, %v2896_v38 }
 0x1eb   : > { %v923_v53 = vmax.f32 %v827_v50, 0.0 }
 0x1ec   : > { %v924_v51 = vmax.f32 %v829_v48, 0.0  ;;  %1237 = vmatprep.mubr.f32.mxu1 %v922_v47 }
 0x1ed   : > { %1238 = vmatmul.mubr.f32.gmra.mrb[40].mxu1 %v921_v49 }
 0x1ee   : > { %v832_v52 = vpop.f32.mrb[44].mxu0  ;;  %1243 = vmatprep.mubr.f32.mxu1 %v924_v51 }
 0x1ef   : > { %v833_v54 = vadd.f32 %v832_v52, %v2892_v37  ;;  %v834_v55 = vpop.f32.mrb[45].mxu0 }
 0x1f0   : > { %v835_v56 = vadd.f32 %v834_v55, %v2896_v38  ;;  %v836_v57 = vpop.f32.mrb[46].mxu0 }
 0x1f1   : > { %v838_v58 = vpop.f32.mrb[47].mxu0  ;;  %1244 = vmatmul.mubr.f32.gmra.mrb[42].mxu1 %v923_v53  ;;  %v925_v61 = vmax.f32 %v833_v54, 0.0  ;;  %v837_v62 = vadd.f32 %v836_v57, %v2892_v37  ;;  %v1041_v54 = vld [vmem:[%s3459_s4] sm:$0x3] }
 0x1f2   : > { %v926_v59 = vmax.f32 %v835_v56, 0.0  ;;  %v839_v60 = vadd.f32 %v838_v58, %v2896_v38  ;;  %v2967_v55 = vrot.slane %v1041_v54, %v360_v34 }
 0x1f3   : > { %v927_v1 = vmax.f32 %v837_v62, 0.0 }
 0x1f4   : > { %v928_v63 = vmax.f32 %v839_v60, 0.0  ;;  %1249 = vmatprep.mubr.f32.mxu1 %v926_v59 }
 0x1f5   : > { %1250 = vmatmul.mubr.f32.gmra.mrb[44].mxu1 %v925_v61 }
 0x1f6   : > { %v842_v0 = vpop.f32.mrb[48].mxu0  ;;  %1255 = vmatprep.mubr.f32.mxu1 %v928_v63 }
 0x1f7   : > { %v843_v2 = vadd.f32 %v842_v0, %v2892_v37  ;;  %v844_v3 = vpop.f32.mrb[49].mxu0 }
 0x1f8   : > { %v845_v4 = vadd.f32 %v844_v3, %v2896_v38  ;;  %v846_v5 = vpop.f32.mrb[50].mxu0 }
 0x1f9   : > { %v848_v6 = vpop.f32.mrb[51].mxu0  ;;  %1256 = vmatmul.mubr.f32.gmra.mrb[46].mxu1 %v927_v1  ;;  %v929_v9 = vmax.f32 %v843_v2, 0.0  ;;  %v847_v10 = vadd.f32 %v846_v5, %v2892_v37 }
 0x1fa   : > { %v930_v7 = vmax.f32 %v845_v4, 0.0  ;;  %v849_v8 = vadd.f32 %v848_v6, %v2896_v38 }
 0x1fb   : > { %v931_v13 = vmax.f32 %v847_v10, 0.0 }
 0x1fc   : > { %v932_v11 = vmax.f32 %v849_v8, 0.0  ;;  %1261 = vmatprep.mubr.f32.mxu1 %v930_v7 }
 0x1fd   : > { %1262 = vmatmul.mubr.f32.gmra.mrb[48].mxu1 %v929_v9 }
 0x1fe   : > { %v852_v12 = vpop.f32.mrb[52].mxu0  ;;  %1267 = vmatprep.mubr.f32.mxu1 %v932_v11 }
 0x1ff   : > { %v853_v14 = vadd.f32 %v852_v12, %v2892_v37  ;;  %v854_v15 = vpop.f32.mrb[53].mxu0 }
 0x200   : > { %v855_v16 = vadd.f32 %v854_v15, %v2896_v38  ;;  %v856_v17 = vpop.f32.mrb[54].mxu0 }
 0x201   : > { %v858_v18 = vpop.f32.mrb[55].mxu0  ;;  %1268 = vmatmul.mubr.f32.gmra.mrb[50].mxu1 %v931_v13  ;;  %v933_v21 = vmax.f32 %v853_v14, 0.0  ;;  %v857_v22 = vadd.f32 %v856_v17, %v2892_v37 }
 0x202   : > { %v934_v19 = vmax.f32 %v855_v16, 0.0  ;;  %v859_v20 = vadd.f32 %v858_v18, %v2896_v38 }
 0x203   : > { %v935_v25 = vmax.f32 %v857_v22, 0.0 }
 0x204   : > { %v936_v23 = vmax.f32 %v859_v20, 0.0  ;;  %1273 = vmatprep.mubr.f32.mxu1 %v934_v19 }
 0x205   : > { %1274 = vmatmul.mubr.f32.gmra.mrb[52].mxu1 %v933_v21 }
 0x206   : > { %v862_v24 = vpop.f32.mrb[56].mxu0  ;;  %1279 = vmatprep.mubr.f32.mxu1 %v936_v23 }
 0x207   : > { %v863_v26 = vadd.f32 %v862_v24, %v2892_v37  ;;  %v864_v27 = vpop.f32.mrb[57].mxu0 }
 0x208   : > { %v865_v28 = vadd.f32 %v864_v27, %v2896_v38  ;;  %v866_v29 = vpop.f32.mrb[58].mxu0 }
 0x209   : > { %v868_v30 = vpop.f32.mrb[59].mxu0  ;;  %1280 = vmatmul.mubr.f32.gmra.mrb[54].mxu1 %v935_v25  ;;  %v937_v35 = vmax.f32 %v863_v26, 0.0  ;;  %v867_v39 = vadd.f32 %v866_v29, %v2892_v37 }
 0x20a   : > { %v938_v31 = vmax.f32 %v865_v28, 0.0  ;;  %v869_v32 = vadd.f32 %v868_v30, %v2896_v38 }
 0x20b   : > { %v939_v42 = vmax.f32 %v867_v39, 0.0 }
 0x20c   : > { %v940_v40 = vmax.f32 %v869_v32, 0.0  ;;  %1285 = vmatprep.mubr.f32.mxu1 %v938_v31 }
 0x20d   : > { %1286 = vmatmul.mubr.f32.gmra.mrb[56].mxu1 %v937_v35 }
 0x20e   : > { %v872_v41 = vpop.f32.mrb[60].mxu0  ;;  %1291 = vmatprep.mubr.f32.mxu1 %v940_v40 }
 0x20f   : > { %v873_v43 = vadd.f32 %v872_v41, %v2892_v37  ;;  %v874_v44 = vpop.f32.mrb[61].mxu0 }
 0x210   : > { %v875_v45 = vadd.f32 %v874_v44, %v2896_v38  ;;  %v876_v46 = vpop.f32.mrb[62].mxu0 }
 0x211   : > { %v878_v47 = vpop.f32.mrb[63].mxu0  ;;  %1292 = vmatmul.mubr.f32.gmra.mrb[58].mxu1 %v939_v42  ;;  %v941_v50 = vmax.f32 %v873_v43, 0.0  ;;  %v877_v51 = vadd.f32 %v876_v46, %v2892_v37 }
 0x212   : > { %v942_v48 = vmax.f32 %v875_v45, 0.0  ;;  %v879_v49 = vadd.f32 %v878_v47, %v2896_v38  ;;  %v2971_v38 = vrot.slane %v1041_v54, %v364_v36 }
 0x213   : > { %v943_v53 = vmax.f32 %v877_v51, 0.0 }
 0x214   : > { %v944_v52 = vmax.f32 %v879_v49, 0.0  ;;  %1297 = vmatprep.mubr.f32.mxu1 %v942_v48 }
 0x215   : > { %1298 = vmatmul.mubr.f32.gmra.mrb[60].mxu1 %v941_v50 }
 0x216   : > { %1303 = vmatprep.mubr.f32.mxu1 %v944_v52 }
 0x219   : > { %1304 = vmatmul.mubr.f32.gmra.mrb[62].mxu1 %v943_v53 }
 0x270   : > { %v1119_v56 = vpop.f32.mrb[0].mxu1 }
 0x271   : > { %v2974_v37 = vadd.f32 %v1119_v56, %v2967_v55  ;;  %v1121_v57 = vpop.f32.mrb[1].mxu1 }
 0x272   : > { %v2977_v58 = vadd.f32 %v1121_v57, %v2971_v38 }
 0x273   : > { %v1310_v59 = vmul.f32 %v2974_v37, %v2974_v37 }
 0x274   : > { %v1125_v60 = vpop.f32.mrb[2].mxu1  ;;  %v1311_v34 = vmul.f32 %v2977_v58, %v2977_v58 }
 0x275   : > { %v2984_v61 = vadd.f32 %v1125_v60, %v2967_v55  ;;  %v1127_v33 = vpop.f32.mrb[3].mxu1 }
 0x276   : > { %v2987_v36 = vadd.f32 %v1127_v33, %v2971_v38  ;;  %v1374_v62 = vadd.f32 %v1311_v34, %v1310_v59 }
 0x277   : > { %v1312_v63 = vmul.f32 %v2984_v61, %v2984_v61 }
 0x278   : > { %v1313_v0 = vmul.f32 %v2987_v36, %v2987_v36  ;;  %v1131_v1 = vpop.f32.mrb[4].mxu1  ;;  %1375 = vadd.xlane.f32.xlu0 %v1374_v62 }
 0x279   : > { %v2994_v2 = vadd.f32 %v1131_v1, %v2967_v55  ;;  %v1133_v3 = vpop.f32.mrb[5].mxu1 }
 0x27a   : > { %v2997_v4 = vadd.f32 %v1133_v3, %v2971_v38  ;;  %v1377_v5 = vadd.f32 %v1313_v0, %v1312_v63 }
 0x27b   : > { %v1314_v6 = vmul.f32 %v2994_v2, %v2994_v2 }
 0x27c   : > { %v1137_v7 = vpop.f32.mrb[6].mxu1  ;;  %1378 = vadd.xlane.f32.xlu0 %v1377_v5  ;;  %v1315_v8 = vmul.f32 %v2997_v4, %v2997_v4 }
 0x27d   : > { %v3004_v9 = vadd.f32 %v1137_v7, %v2967_v55  ;;  %v1139_v10 = vpop.f32.mrb[7].mxu1 }
 0x27e   : > { %v3007_v11 = vadd.f32 %v1139_v10, %v2971_v38  ;;  %v1380_v12 = vadd.f32 %v1315_v8, %v1314_v6 }
 0x27f   : > { %v1316_v13 = vmul.f32 %v3004_v9, %v3004_v9 }
 0x280   : > { %v1317_v14 = vmul.f32 %v3007_v11, %v3007_v11  ;;  %v1143_v15 = vpop.f32.mrb[8].mxu1  ;;  %1381 = vadd.xlane.f32.xlu1 %v1380_v12 }
 0x281   : > { %v3014_v16 = vadd.f32 %v1143_v15, %v2967_v55  ;;  %v1145_v17 = vpop.f32.mrb[9].mxu1 }
 0x282   : > { %v3017_v18 = vadd.f32 %v1145_v17, %v2971_v38  ;;  %v1383_v19 = vadd.f32 %v1317_v14, %v1316_v13 }
 0x283   : > { %v1318_v20 = vmul.f32 %v3014_v16, %v3014_v16 }
 0x284   : > { %v1319_v21 = vmul.f32 %v3017_v18, %v3017_v18  ;;  %v1149_v22 = vpop.f32.mrb[10].mxu1  ;;  %1384 = vadd.xlane.f32.xlu1 %v1383_v19 }
 0x285   : > { %v3024_v23 = vadd.f32 %v1149_v22, %v2967_v55  ;;  %v1151_v24 = vpop.f32.mrb[11].mxu1 }
 0x286   : > { %v3027_v25 = vadd.f32 %v1151_v24, %v2971_v38  ;;  %v1386_v26 = vadd.f32 %v1319_v21, %v1318_v20 }
 0x287   : > { %v1320_v27 = vmul.f32 %v3024_v23, %v3024_v23 }
 0x288   : > { %v1321_v28 = vmul.f32 %v3027_v25, %v3027_v25  ;;  %v1155_v29 = vpop.f32.mrb[12].mxu1  ;;  %1387 = vadd.xlane.f32.xlu0 %v1386_v26 }
 0x289   : > { %v3034_v30 = vadd.f32 %v1155_v29, %v2967_v55  ;;  %v1157_v31 = vpop.f32.mrb[13].mxu1 }
 0x28a   : > { %v3037_v32 = vadd.f32 %v1157_v31, %v2971_v38  ;;  %v1389_v35 = vadd.f32 %v1321_v28, %v1320_v27 }
 0x28b   : > { %v1322_v39 = vmul.f32 %v3034_v30, %v3034_v30 }
 0x28c   : > { %v1323_v40 = vmul.f32 %v3037_v32, %v3037_v32  ;;  %v1161_v41 = vpop.f32.mrb[14].mxu1  ;;  %1390 = vadd.xlane.f32.xlu1 %v1389_v35 }
 0x28d   : > { %v3044_v42 = vadd.f32 %v1161_v41, %v2967_v55  ;;  %v1163_v43 = vpop.f32.mrb[15].mxu1 }
 0x28e   : > { %v3047_v44 = vadd.f32 %v1163_v43, %v2971_v38  ;;  %v1392_v45 = vadd.f32 %v1323_v40, %v1322_v39 }
 0x28f   : > { %v1324_v46 = vmul.f32 %v3044_v42, %v3044_v42 }
 0x290   : > { %v1325_v47 = vmul.f32 %v3047_v44, %v3047_v44  ;;  %v1167_v48 = vpop.f32.mrb[16].mxu1  ;;  %1393 = vadd.xlane.f32.xlu0 %v1392_v45 }
 0x291   : > { %v3054_v49 = vadd.f32 %v1167_v48, %v2967_v55  ;;  %v1169_v50 = vpop.f32.mrb[17].mxu1 }
 0x292   : > { %v3057_v51 = vadd.f32 %v1169_v50, %v2971_v38  ;;  %v1395_v52 = vadd.f32 %v1325_v47, %v1324_v46 }
 0x293   : > { %v1326_v53 = vmul.f32 %v3054_v49, %v3054_v49 }
 0x294   : > { %v1327_v54 = vmul.f32 %v3057_v51, %v3057_v51  ;;  %v1173_v56 = vpop.f32.mrb[18].mxu1  ;;  %1396 = vadd.xlane.f32.xlu1 %v1395_v52 }
 0x295   : > { %v3064_v57 = vadd.f32 %v1173_v56, %v2967_v55  ;;  %v1175_v59 = vpop.f32.mrb[19].mxu1 }
 0x296   : > { %v3067_v60 = vadd.f32 %v1175_v59, %v2971_v38  ;;  %v1398_v34 = vadd.f32 %v1327_v54, %v1326_v53 }
 0x297   : > { %v1328_v33 = vmul.f32 %v3064_v57, %v3064_v57 }
 0x298   : > { %v1329_v62 = vmul.f32 %v3067_v60, %v3067_v60  ;;  %v1179_v63 = vpop.f32.mrb[20].mxu1  ;;  %1399 = vadd.xlane.f32.xlu0 %v1398_v34 }
 0x299   : > { %v3074_v0 = vadd.f32 %v1179_v63, %v2967_v55  ;;  %v1181_v1 = vpop.f32.mrb[21].mxu1 }
 0x29a   : > { %v3077_v3 = vadd.f32 %v1181_v1, %v2971_v38  ;;  %v1401_v5 = vadd.f32 %v1329_v62, %v1328_v33 }
 0x29b   : > { %v1330_v6 = vmul.f32 %v3074_v0, %v3074_v0 }
 0x29c   : > { %v1331_v7 = vmul.f32 %v3077_v3, %v3077_v3  ;;  %v1185_v8 = vpop.f32.mrb[22].mxu1  ;;  %1402 = vadd.xlane.f32.xlu1 %v1401_v5 }
 0x29d   : > { %v3084_v10 = vadd.f32 %v1185_v8, %v2967_v55  ;;  %v1187_v12 = vpop.f32.mrb[23].mxu1 }
 0x29e   : > { %v3087_v13 = vadd.f32 %v1187_v12, %v2971_v38  ;;  %v1404_v14 = vadd.f32 %v1331_v7, %v1330_v6 }
 0x29f   : > { %v1332_v15 = vmul.f32 %v3084_v10, %v3084_v10 }
 0x2a0   : > { %v1333_v17 = vmul.f32 %v3087_v13, %v3087_v13  ;;  %v1191_v19 = vpop.f32.mrb[24].mxu1  ;;  %1405 = vadd.xlane.f32.xlu0 %v1404_v14 }
 0x2a1   : > { %v3094_v20 = vadd.f32 %v1191_v19, %v2967_v55  ;;  %v1193_v21 = vpop.f32.mrb[25].mxu1 }
 0x2a2   : > { %v3097_v22 = vadd.f32 %v1193_v21, %v2971_v38  ;;  %v1407_v24 = vadd.f32 %v1333_v17, %v1332_v15 }
 0x2a3   : > { %v1334_v26 = vmul.f32 %v3094_v20, %v3094_v20 }
 0x2a4   : > { %v1335_v27 = vmul.f32 %v3097_v22, %v3097_v22  ;;  %v1197_v28 = vpop.f32.mrb[26].mxu1  ;;  %1408 = vadd.xlane.f32.xlu1 %v1407_v24 }
 0x2a5   : > { %v3104_v29 = vadd.f32 %v1197_v28, %v2967_v55  ;;  %v1199_v31 = vpop.f32.mrb[27].mxu1 }
 0x2a6   : > { %v3107_v35 = vadd.f32 %v1199_v31, %v2971_v38  ;;  %v1410_v39 = vadd.f32 %v1335_v27, %v1334_v26 }
 0x2a7   : > { %v1336_v40 = vmul.f32 %v3104_v29, %v3104_v29 }
 0x2a8   : > { %v1337_v41 = vmul.f32 %v3107_v35, %v3107_v35  ;;  %v1203_v43 = vpop.f32.mrb[28].mxu1  ;;  %1411 = vadd.xlane.f32.xlu0 %v1410_v39 }
 0x2a9   : > { %v3114_v45 = vadd.f32 %v1203_v43, %v2967_v55  ;;  %v1205_v46 = vpop.f32.mrb[29].mxu1 }
 0x2aa   : > { %v3117_v47 = vadd.f32 %v1205_v46, %v2971_v38  ;;  %v1413_v48 = vadd.f32 %v1337_v41, %v1336_v40 }
 0x2ab   : > { %v1338_v50 = vmul.f32 %v3114_v45, %v3114_v45 }
 0x2ac   : > { %v1339_v52 = vmul.f32 %v3117_v47, %v3117_v47  ;;  %v1209_v53 = vpop.f32.mrb[30].mxu1  ;;  %1414 = vadd.xlane.f32.xlu1 %v1413_v48 }
 0x2ad   : > { %v3124_v54 = vadd.f32 %v1209_v53, %v2967_v55  ;;  %v1211_v56 = vpop.f32.mrb[31].mxu1 }
 0x2ae   : > { %v3127_v59 = vadd.f32 %v1211_v56, %v2971_v38  ;;  %v1416_v34 = vadd.f32 %v1339_v52, %v1338_v50 }
 0x2af   : > { %v1340_v33 = vmul.f32 %v3124_v54, %v3124_v54 }
 0x2b0   : > { %v1341_v62 = vmul.f32 %v3127_v59, %v3127_v59  ;;  %v1215_v63 = vpop.f32.mrb[32].mxu1  ;;  %1417 = vadd.xlane.f32.xlu0 %v1416_v34 }
 0x2b1   : > { %v3134_v1 = vadd.f32 %v1215_v63, %v2967_v55  ;;  %v1217_v5 = vpop.f32.mrb[33].mxu1 }
 0x2b2   : > { %v3137_v6 = vadd.f32 %v1217_v5, %v2971_v38  ;;  %v1419_v7 = vadd.f32 %v1341_v62, %v1340_v33 }
 0x2b3   : > { %v1342_v8 = vmul.f32 %v3134_v1, %v3134_v1 }
 0x2b4   : > { %v1343_v12 = vmul.f32 %v3137_v6, %v3137_v6  ;;  %v1221_v14 = vpop.f32.mrb[34].mxu1  ;;  %1420 = vadd.xlane.f32.xlu1 %v1419_v7 }
 0x2b5   : > { %v3144_v15 = vadd.f32 %v1221_v14, %v2967_v55  ;;  %v1223_v17 = vpop.f32.mrb[35].mxu1 }
 0x2b6   : > { %v3147_v19 = vadd.f32 %v1223_v17, %v2971_v38  ;;  %v1422_v21 = vadd.f32 %v1343_v12, %v1342_v8 }
 0x2b7   : > { %v1344_v24 = vmul.f32 %v3144_v15, %v3144_v15 }
 0x2b8   : > { %v1345_v26 = vmul.f32 %v3147_v19, %v3147_v19  ;;  %v1227_v27 = vpop.f32.mrb[36].mxu1  ;;  %1423 = vadd.xlane.f32.xlu0 %v1422_v21 }
 0x2b9   : > { %v3154_v28 = vadd.f32 %v1227_v27, %v2967_v55  ;;  %v1229_v31 = vpop.f32.mrb[37].mxu1 }
 0x2ba   : > { %v3157_v39 = vadd.f32 %v1229_v31, %v2971_v38  ;;  %v1425_v40 = vadd.f32 %v1345_v26, %v1344_v24 }
 0x2bb   : > { %v1346_v41 = vmul.f32 %v3154_v28, %v3154_v28 }
 0x2bc   : > { %v1347_v43 = vmul.f32 %v3157_v39, %v3157_v39  ;;  %v1233_v46 = vpop.f32.mrb[38].mxu1  ;;  %1426 = vadd.xlane.f32.xlu1 %v1425_v40 }
 0x2bd   : > { %v3164_v48 = vadd.f32 %v1233_v46, %v2967_v55  ;;  %v1235_v50 = vpop.f32.mrb[39].mxu1 }
 0x2be   : > { %v3167_v52 = vadd.f32 %v1235_v50, %v2971_v38  ;;  %v1428_v53 = vadd.f32 %v1347_v43, %v1346_v41 }
 0x2bf   : > { %v1348_v56 = vmul.f32 %v3164_v48, %v3164_v48 }
 0x2c0   : > { %v1349_v34 = vmul.f32 %v3167_v52, %v3167_v52  ;;  %v1239_v33 = vpop.f32.mrb[40].mxu1  ;;  %1429 = vadd.xlane.f32.xlu0 %v1428_v53 }
 0x2c1   : > { %v3174_v62 = vadd.f32 %v1239_v33, %v2967_v55  ;;  %v1241_v63 = vpop.f32.mrb[41].mxu1 }
 0x2c2   : > { %v3177_v5 = vadd.f32 %v1241_v63, %v2971_v38  ;;  %v1431_v7 = vadd.f32 %v1349_v34, %v1348_v56 }
 0x2c3   : > { %v1350_v8 = vmul.f32 %v3174_v62, %v3174_v62 }
 0x2c4   : > { %v1351_v12 = vmul.f32 %v3177_v5, %v3177_v5  ;;  %v1245_v14 = vpop.f32.mrb[42].mxu1  ;;  %1432 = vadd.xlane.f32.xlu1 %v1431_v7 }
 0x2c5   : > { %v3184_v17 = vadd.f32 %v1245_v14, %v2967_v55  ;;  %v1247_v21 = vpop.f32.mrb[43].mxu1 }
 0x2c6   : > { %v3187_v24 = vadd.f32 %v1247_v21, %v2971_v38  ;;  %v1434_v26 = vadd.f32 %v1351_v12, %v1350_v8 }
 0x2c7   : > { %v1352_v27 = vmul.f32 %v3184_v17, %v3184_v17 }
 0x2c8   : > { %v1353_v31 = vmul.f32 %v3187_v24, %v3187_v24  ;;  %v1251_v40 = vpop.f32.mrb[44].mxu1  ;;  %1435 = vadd.xlane.f32.xlu0 %v1434_v26 }
 0x2c9   : > { %v3194_v41 = vadd.f32 %v1251_v40, %v2967_v55  ;;  %v1253_v43 = vpop.f32.mrb[45].mxu1 }
 0x2ca   : > { %v3197_v46 = vadd.f32 %v1253_v43, %v2971_v38  ;;  %v1437_v50 = vadd.f32 %v1353_v31, %v1352_v27 }
 0x2cb   : > { %v1354_v53 = vmul.f32 %v3194_v41, %v3194_v41 }
 0x2cc   : > { %v1355_v56 = vmul.f32 %v3197_v46, %v3197_v46  ;;  %v1257_v34 = vpop.f32.mrb[46].mxu1  ;;  %1438 = vadd.xlane.f32.xlu1 %v1437_v50 }
 0x2cd   : > { %v3204_v33 = vadd.f32 %v1257_v34, %v2967_v55  ;;  %v1259_v63 = vpop.f32.mrb[47].mxu1 }
 0x2ce   : > { %v3207_v7 = vadd.f32 %v1259_v63, %v2971_v38  ;;  %v1440_v8 = vadd.f32 %v1355_v56, %v1354_v53 }
 0x2cf   : > { %v1356_v12 = vmul.f32 %v3204_v33, %v3204_v33 }
 0x2d0   : > { %v1357_v14 = vmul.f32 %v3207_v7, %v3207_v7  ;;  %v1263_v21 = vpop.f32.mrb[48].mxu1  ;;  %1441 = vadd.xlane.f32.xlu0 %v1440_v8 }
 0x2d1   : > { %v3214_v26 = vadd.f32 %v1263_v21, %v2967_v55  ;;  %v1265_v27 = vpop.f32.mrb[49].mxu1 }
 0x2d2   : > { %v3217_v31 = vadd.f32 %v1265_v27, %v2971_v38  ;;  %v1443_v40 = vadd.f32 %v1357_v14, %v1356_v12 }
 0x2d3   : > { %v1358_v43 = vmul.f32 %v3214_v26, %v3214_v26 }
 0x2d4   : > { %3491 = vst [vmem:[#allocation13_spill] sm:$0xff] %v3217_v31  ;;  %v1359_v50 = vmul.f32 %v3217_v31, %v3217_v31  ;;  %v1269_v53 = vpop.f32.mrb[50].mxu1  ;;  %1444 = vadd.xlane.f32.xlu1 %v1443_v40 }
 0x2d5   : > { %v3224_v56 = vadd.f32 %v1269_v53, %v2967_v55  ;;  %v1271_v34 = vpop.f32.mrb[51].mxu1 }
 0x2d6   : > { %v3227_v63 = vadd.f32 %v1271_v34, %v2971_v38  ;;  %v1446_v8 = vadd.f32 %v1359_v50, %v1358_v43 }
 0x2d7   : > { %3492 = vst [vmem:[#allocation14_spill] sm:$0xff] %v3224_v56  ;;  %v1360_v21 = vmul.f32 %v3224_v56, %v3224_v56 }
 0x2d8   : > { %3493 = vst [vmem:[#allocation15_spill] sm:$0xff] %v3227_v63  ;;  %v1361_v12 = vmul.f32 %v3227_v63, %v3227_v63  ;;  %v1275_v14 = vpop.f32.mrb[52].mxu1  ;;  %1447 = vadd.xlane.f32.xlu0 %v1446_v8 }
 0x2d9   : > { %v3234_v27 = vadd.f32 %v1275_v14, %v2967_v55  ;;  %v1277_v40 = vpop.f32.mrb[53].mxu1 }
 0x2da   : > { %v3237_v53 = vadd.f32 %v1277_v40, %v2971_v38  ;;  %v1449_v31 = vadd.f32 %v1361_v12, %v1360_v21 }
 0x2db   : > { %3494 = vst [vmem:[#allocation16_spill] sm:$0xff] %v3234_v27  ;;  %v1362_v34 = vmul.f32 %v3234_v27, %v3234_v27 }
 0x2dc   : > { %3495 = vst [vmem:[#allocation17_spill] sm:$0xff] %v3237_v53  ;;  %v1363_v43 = vmul.f32 %v3237_v53, %v3237_v53  ;;  %v1281_v50 = vpop.f32.mrb[54].mxu1  ;;  %1450 = vadd.xlane.f32.xlu1 %v1449_v31 }
 0x2dd   : > { %v3244_v63 = vadd.f32 %v1281_v50, %v2967_v55  ;;  %v1283_v8 = vpop.f32.mrb[55].mxu1 }
 0x2de   : > { %v3247_v14 = vadd.f32 %v1283_v8, %v2971_v38  ;;  %v1452_v56 = vadd.f32 %v1363_v43, %v1362_v34 }
 0x2df   : > { %3496 = vst [vmem:[#allocation18_spill] sm:$0xff] %v3244_v63  ;;  %v1364_v40 = vmul.f32 %v3244_v63, %v3244_v63 }
 0x2e0   : > { %3497 = vst [vmem:[#allocation19_spill] sm:$0xff] %v3247_v14  ;;  %v1365_v21 = vmul.f32 %v3247_v14, %v3247_v14  ;;  %v1287_v12 = vpop.f32.mrb[56].mxu1  ;;  %1453 = vadd.xlane.f32.xlu0 %v1452_v56 }
 0x2e1   : > { %v3254_v53 = vadd.f32 %v1287_v12, %v2967_v55  ;;  %v1289_v31 = vpop.f32.mrb[57].mxu1 }
 0x2e2   : > { %v3257_v50 = vadd.f32 %v1289_v31, %v2971_v38  ;;  %v1455_v27 = vadd.f32 %v1365_v21, %v1364_v40 }
 0x2e3   : > { %3498 = vst [vmem:[#allocation20_spill] sm:$0xff] %v3254_v53  ;;  %v1366_v8 = vmul.f32 %v3254_v53, %v3254_v53 }
 0x2e4   : > { %3499 = vst [vmem:[#allocation21_spill] sm:$0xff] %v3257_v50  ;;  %v1367_v34 = vmul.f32 %v3257_v50, %v3257_v50  ;;  %v1293_v43 = vpop.f32.mrb[58].mxu1  ;;  %1456 = vadd.xlane.f32.xlu1 %v1455_v27 }
 0x2e5   : > { %v3264_v14 = vadd.f32 %v1293_v43, %v2967_v55  ;;  %v1295_v56 = vpop.f32.mrb[59].mxu1 }
 0x2e6   : > { %v3267_v12 = vadd.f32 %v1295_v56, %v2971_v38  ;;  %v1458_v63 = vadd.f32 %v1367_v34, %v1366_v8 }
 0x2e7   : > { %3500 = vst [vmem:[#allocation22_spill] sm:$0xff] %v3264_v14  ;;  %v1368_v31 = vmul.f32 %v3264_v14, %v3264_v14 }
 0x2e8   : > { %3501 = vst [vmem:[#allocation23_spill] sm:$0xff] %v3267_v12  ;;  %v1369_v40 = vmul.f32 %v3267_v12, %v3267_v12  ;;  %v1299_v21 = vpop.f32.mrb[60].mxu1  ;;  %1459 = vadd.xlane.f32.xlu0 %v1458_v63 }
 0x2e9   : > { %v3274_v50 = vadd.f32 %v1299_v21, %v2967_v55  ;;  %v1301_v27 = vpop.f32.mrb[61].mxu1 }
 0x2ea   : > { %v3277_v43 = vadd.f32 %v1301_v27, %v2971_v38  ;;  %v1461_v53 = vadd.f32 %v1369_v40, %v1368_v31 }
 0x2eb   : > { %3502 = vst [vmem:[#allocation24_spill] sm:$0xff] %v3274_v50  ;;  %v1370_v56 = vmul.f32 %v3274_v50, %v3274_v50 }
 0x2ec   : > { %3503 = vst [vmem:[#allocation25_spill] sm:$0xff] %v3277_v43  ;;  %v1371_v8 = vmul.f32 %v3277_v43, %v3277_v43  ;;  %v1305_v34 = vpop.f32.mrb[62].mxu1  ;;  %1462 = vadd.xlane.f32.xlu1 %v1461_v53 }
 0x2ed   : > { %v3284_v12 = vadd.f32 %v1305_v34, %v2967_v55  ;;  %v1307_v63 = vpop.f32.mrb[63].mxu1 }
 0x2ee   : > { %v3287_v21 = vadd.f32 %v1307_v63, %v2971_v38  ;;  %v1464_v14 = vadd.f32 %v1371_v8, %v1370_v56 }
 0x2ef   : > { %3504 = vst [vmem:[#allocation26_spill] sm:$0xff] %v3284_v12  ;;  %v1372_v27 = vmul.f32 %v3284_v12, %v3284_v12 }
 0x2f0   : > { %3505 = vst [vmem:[#allocation27_spill] sm:$0xff] %v3287_v21  ;;  %v1373_v31 = vmul.f32 %v3287_v21, %v3287_v21  ;;  %1465 = vadd.xlane.f32.xlu0 %v1464_v14 }
 0x2f2   : > { %v1467_v40 = vadd.f32 %v1373_v31, %v1372_v27 }
 0x2f4   : > { %1468 = vadd.xlane.f32.xlu1 %v1467_v40 }
 0x305   : > { %v1376_v43 = vpop.xlane.xlu0 %1375 }
 0x306   : > { %v1470_v50 = vmax.f32 %v1376_v43, 1e-24 }
 0x308   : > { %2406 = vrsqrt.f32 %v1470_v50 }
 0x309   : > { %v1379_v53 = vpop.xlane.xlu0 %1378 }
 0x30a   : > { %v1471_v55 = vmax.f32 %v1379_v53, 1e-24 }
 0x30c   : > { %2408 = vrsqrt.f32 %v1471_v55 }
 0x30d   : > { %v1382_v34 = vpop.xlane.xlu1 %1381 }
 0x30e   : > { %v1472_v38 = vmax.f32 %v1382_v34, 1e-24 }
 0x310   : > { %2410 = vrsqrt.f32 %v1472_v38 }
 0x311   : > { %v1385_v56 = vpop.xlane.xlu1 %1384 }
 0x312   : > { %v2407_v8 = vpop.eup %2406  ;;  %v1473_v63 = vmax.f32 %v1385_v56, 1e-24 }
 0x313   : > { %v1534_v12 = vmul.f32 %v2407_v8, %v2974_v37  ;;  %v1535_v21 = vmul.f32 %v2407_v8, %v2977_v58 }
 0x314   : > { %2412 = vrsqrt.f32 %v1473_v63 }
 0x315   : > { %v2065_v14 = vpack.c.bf16 %v1535_v21, %v1534_v12  ;;  %v1388_v27 = vpop.xlane.xlu0 %1387 }
 0x316   : > { %v2409_v31 = vpop.eup %2408  ;;  %v1474_v43 = vmax.f32 %v1388_v27, 1e-24 }
 0x317   : > { %1790 = vst [vmem:[%s3297_s26] sm:$0xff] %v2065_v14  ;;  %v1536_v50 = vmul.f32 %v2409_v31, %v2984_v61  ;;  %v1537_v40 = vmul.f32 %v2409_v31, %v2987_v36 }
 0x318   : > { %2414 = vrsqrt.f32 %v1474_v43 }
 0x319   : > { %v2066_v37 = vpack.c.bf16 %v1537_v40, %v1536_v50  ;;  %v1391_v53 = vpop.xlane.xlu1 %1390 }
 0x31a   : > { %v2411_v58 = vpop.eup %2410  ;;  %v1475_v55 = vmax.f32 %v1391_v53, 1e-24 }
 0x31b   : > { %1791 = vst [vmem:[%s3297_s26 + $0x8] sm:$0xff] %v2066_v37  ;;  %v1538_v12 = vmul.f32 %v2411_v58, %v2994_v2  ;;  %v1539_v21 = vmul.f32 %v2411_v58, %v2997_v4 }
 0x31c   : > { %2416 = vrsqrt.f32 %v1475_v55 }
 0x31d   : > { %v2067_v34 = vpack.c.bf16 %v1539_v21, %v1538_v12  ;;  %v1394_v38 = vpop.xlane.xlu0 %1393 }
 0x31e   : > { %v2413_v56 = vpop.eup %2412  ;;  %v1476_v8 = vmax.f32 %v1394_v38, 1e-24 }
 0x31f   : > { %1792 = vst [vmem:[%s3297_s26 + $0x10] sm:$0xff] %v2067_v34  ;;  %v1540_v61 = vmul.f32 %v2413_v56, %v3004_v9  ;;  %v1541_v36 = vmul.f32 %v2413_v56, %v3007_v11 }
 0x320   : > { %2418 = vrsqrt.f32 %v1476_v8 }
 0x321   : > { %v2068_v63 = vpack.c.bf16 %v1541_v36, %v1540_v61  ;;  %v1397_v14 = vpop.xlane.xlu1 %1396 }
 0x322   : > { %v2415_v27 = vpop.eup %2414  ;;  %v1477_v31 = vmax.f32 %v1397_v14, 1e-24 }
 0x323   : > { %1793 = vst [vmem:[%s3297_s26 + $0x18] sm:$0xff] %v2068_v63  ;;  %v1542_v2 = vmul.f32 %v2415_v27, %v3014_v16  ;;  %v1543_v4 = vmul.f32 %v2415_v27, %v3017_v18 }
 0x324   : > { %2420 = vrsqrt.f32 %v1477_v31 }
 0x325   : > { %v2069_v43 = vpack.c.bf16 %v1543_v4, %v1542_v2  ;;  %v1400_v50 = vpop.xlane.xlu0 %1399 }
 0x326   : > { %v2417_v40 = vpop.eup %2416  ;;  %v1478_v37 = vmax.f32 %v1400_v50, 1e-24 }
 0x327   : > { %1794 = vst [vmem:[%s3297_s26 + $0x20] sm:$0xff] %v2069_v43  ;;  %v1544_v9 = vmul.f32 %v2417_v40, %v3024_v23  ;;  %v1545_v11 = vmul.f32 %v2417_v40, %v3027_v25 }
 0x328   : > { %2422 = vrsqrt.f32 %v1478_v37 }
 0x329   : > { %v2070_v53 = vpack.c.bf16 %v1545_v11, %v1544_v9  ;;  %v1403_v58 = vpop.xlane.xlu1 %1402 }
 0x32a   : > { %v2419_v55 = vpop.eup %2418  ;;  %v1479_v12 = vmax.f32 %v1403_v58, 1e-24 }
 0x32b   : > { %1795 = vst [vmem:[%s3297_s26 + $0x28] sm:$0xff] %v2070_v53  ;;  %v1546_v16 = vmul.f32 %v2419_v55, %v3034_v30  ;;  %v1547_v18 = vmul.f32 %v2419_v55, %v3037_v32 }
 0x32c   : > { %2424 = vrsqrt.f32 %v1479_v12 }
 0x32d   : > { %v2071_v21 = vpack.c.bf16 %v1547_v18, %v1546_v16  ;;  %v1406_v34 = vpop.xlane.xlu0 %1405 }
 0x32e   : > { %v2421_v38 = vpop.eup %2420  ;;  %v1480_v56 = vmax.f32 %v1406_v34, 1e-24 }
 0x32f   : > { %1796 = vst [vmem:[%s3297_s26 + $0x30] sm:$0xff] %v2071_v21  ;;  %v1548_v23 = vmul.f32 %v2421_v38, %v3044_v42  ;;  %v1549_v25 = vmul.f32 %v2421_v38, %v3047_v44 }
 0x330   : > { %2426 = vrsqrt.f32 %v1480_v56 }
 0x331   : > { %v2072_v8 = vpack.c.bf16 %v1549_v25, %v1548_v23  ;;  %v1409_v61 = vpop.xlane.xlu1 %1408 }
 0x332   : > { %v2423_v36 = vpop.eup %2422  ;;  %v1481_v63 = vmax.f32 %v1409_v61, 1e-24 }
 0x333   : > { %1797 = vst [vmem:[%s3297_s26 + $0x38] sm:$0xff] %v2072_v8  ;;  %v1550_v30 = vmul.f32 %v2423_v36, %v3054_v49  ;;  %v1551_v32 = vmul.f32 %v2423_v36, %v3057_v51 }
 0x334   : > { %2428 = vrsqrt.f32 %v1481_v63 }
 0x335   : > { %v2073_v14 = vpack.c.bf16 %v1551_v32, %v1550_v30  ;;  %v1412_v27 = vpop.xlane.xlu0 %1411 }
 0x336   : > { %v2425_v31 = vpop.eup %2424  ;;  %v1482_v2 = vmax.f32 %v1412_v27, 1e-24 }
 0x337   : > { %1798 = vst [vmem:[%s3297_s26 + $0x40] sm:$0xff] %v2073_v14  ;;  %v1552_v42 = vmul.f32 %v2425_v31, %v3064_v57  ;;  %v1553_v44 = vmul.f32 %v2425_v31, %v3067_v60 }
 0x338   : > { %2430 = vrsqrt.f32 %v1482_v2 }
 0x339   : > { %v2074_v4 = vpack.c.bf16 %v1553_v44, %v1552_v42  ;;  %v1415_v43 = vpop.xlane.xlu1 %1414 }
 0x33a   : > { %v2427_v50 = vpop.eup %2426  ;;  %v1483_v40 = vmax.f32 %v1415_v43, 1e-24 }
 0x33b   : > { %1799 = vst [vmem:[%s3297_s26 + $0x48] sm:$0xff] %v2074_v4  ;;  %v1554_v49 = vmul.f32 %v2427_v50, %v3074_v0  ;;  %v1555_v51 = vmul.f32 %v2427_v50, %v3077_v3 }
 0x33c   : > { %2432 = vrsqrt.f32 %v1483_v40 }
 0x33d   : > { %v2075_v37 = vpack.c.bf16 %v1555_v51, %v1554_v49  ;;  %v1418_v9 = vpop.xlane.xlu0 %1417 }
 0x33e   : > { %v2429_v11 = vpop.eup %2428  ;;  %v1484_v53 = vmax.f32 %v1418_v9, 1e-24 }
 0x33f   : > { %1800 = vst [vmem:[%s3297_s26 + $0x50] sm:$0xff] %v2075_v37  ;;  %v1556_v57 = vmul.f32 %v2429_v11, %v3084_v10  ;;  %v1557_v60 = vmul.f32 %v2429_v11, %v3087_v13 }
 0x340   : > { %2434 = vrsqrt.f32 %v1484_v53 }
 0x341   : > { %v2076_v58 = vpack.c.bf16 %v1557_v60, %v1556_v57  ;;  %v1421_v55 = vpop.xlane.xlu1 %1420 }
 0x342   : > { %v2431_v12 = vpop.eup %2430  ;;  %v1485_v16 = vmax.f32 %v1421_v55, 1e-24 }
 0x343   : > { %1801 = vst [vmem:[%s3297_s26 + $0x58] sm:$0xff] %v2076_v58  ;;  %v1558_v0 = vmul.f32 %v2431_v12, %v3094_v20  ;;  %v1559_v3 = vmul.f32 %v2431_v12, %v3097_v22 }
 0x344   : > { %2436 = vrsqrt.f32 %v1485_v16 }
 0x345   : > { %v2077_v18 = vpack.c.bf16 %v1559_v3, %v1558_v0  ;;  %v1424_v21 = vpop.xlane.xlu0 %1423 }
 0x346   : > { %v2433_v34 = vpop.eup %2432  ;;  %v1486_v38 = vmax.f32 %v1424_v21, 1e-24 }
 0x347   : > { %1802 = vst [vmem:[%s3297_s26 + $0x60] sm:$0xff] %v2077_v18  ;;  %v1560_v10 = vmul.f32 %v2433_v34, %v3104_v29  ;;  %v1561_v13 = vmul.f32 %v2433_v34, %v3107_v35 }
 0x348   : > { %2438 = vrsqrt.f32 %v1486_v38 }
 0x349   : > { %v2078_v56 = vpack.c.bf16 %v1561_v13, %v1560_v10  ;;  %v1427_v23 = vpop.xlane.xlu1 %1426 }
 0x34a   : > { %v2435_v25 = vpop.eup %2434  ;;  %v1487_v8 = vmax.f32 %v1427_v23, 1e-24 }
 0x34b   : > { %1803 = vst [vmem:[%s3297_s26 + $0x68] sm:$0xff] %v2078_v56  ;;  %v1562_v20 = vmul.f32 %v2435_v25, %v3114_v45  ;;  %v1563_v22 = vmul.f32 %v2435_v25, %v3117_v47 }
 0x34c   : > { %2440 = vrsqrt.f32 %v1487_v8 }
 0x34d   : > { %v2079_v61 = vpack.c.bf16 %v1563_v22, %v1562_v20  ;;  %v1430_v36 = vpop.xlane.xlu0 %1429 }
 0x34e   : > { %v2437_v63 = vpop.eup %2436  ;;  %v1488_v30 = vmax.f32 %v1430_v36, 1e-24 }
 0x34f   : > { %1804 = vst [vmem:[%s3297_s26 + $0x70] sm:$0xff] %v2079_v61  ;;  %v1564_v29 = vmul.f32 %v2437_v63, %v3124_v54  ;;  %v1565_v35 = vmul.f32 %v2437_v63, %v3127_v59 }
 0x350   : > { %2442 = vrsqrt.f32 %v1488_v30 }
 0x351   : > { %v2080_v32 = vpack.c.bf16 %v1565_v35, %v1564_v29  ;;  %v1433_v14 = vpop.xlane.xlu1 %1432  ;;  %v3508_v29 = vld [vmem:[#allocation15_spill] sm:$0xff] }
 0x352   : > { %v2439_v27 = vpop.eup %2438  ;;  %v1489_v31 = vmax.f32 %v1433_v14, 1e-24 }
 0x353   : > { %1805 = vst [vmem:[%s3297_s26 + $0x78] sm:$0xff] %v2080_v32  ;;  %v1566_v45 = vmul.f32 %v2439_v27, %v3134_v1  ;;  %v1567_v47 = vmul.f32 %v2439_v27, %v3137_v6 }
 0x354   : > { %2444 = vrsqrt.f32 %v1489_v31 }
 0x355   : > { %v2081_v2 = vpack.c.bf16 %v1567_v47, %v1566_v45  ;;  %v1436_v42 = vpop.xlane.xlu0 %1435  ;;  %v3510_v47 = vld [vmem:[#allocation17_spill] sm:$0xff] }
 0x356   : > { %v2441_v44 = vpop.eup %2440  ;;  %v1490_v4 = vmax.f32 %v1436_v42, 1e-24 }
 0x357   : > { %1806 = vst [vmem:[%s3297_s26 + $0x80] sm:$0xff] %v2081_v2  ;;  %v1568_v54 = vmul.f32 %v2441_v44, %v3144_v15  ;;  %v1569_v59 = vmul.f32 %v2441_v44, %v3147_v19 }
 0x358   : > { %2446 = vrsqrt.f32 %v1490_v4 }
 0x359   : > { %v2082_v43 = vpack.c.bf16 %v1569_v59, %v1568_v54  ;;  %v1439_v50 = vpop.xlane.xlu1 %1438  ;;  %v3511_v59 = vld [vmem:[#allocation18_spill] sm:$0xff] }
 0x35a   : > { %v2443_v40 = vpop.eup %2442  ;;  %v1491_v49 = vmax.f32 %v1439_v50, 1e-24  ;;  %v3512_v50 = vld [vmem:[#allocation19_spill] sm:$0xff] }
 0x35b   : > { %1807 = vst [vmem:[%s3297_s26 + $0x88] sm:$0xff] %v2082_v43  ;;  %v1570_v1 = vmul.f32 %v2443_v40, %v3154_v28  ;;  %v1571_v6 = vmul.f32 %v2443_v40, %v3157_v39 }
 0x35c   : > { %2448 = vrsqrt.f32 %v1491_v49 }
 0x35d   : > { %v2083_v51 = vpack.c.bf16 %v1571_v6, %v1570_v1  ;;  %v1442_v37 = vpop.xlane.xlu0 %1441 }
 0x35e   : > { %v2445_v9 = vpop.eup %2444  ;;  %v1492_v11 = vmax.f32 %v1442_v37, 1e-24  ;;  %v3513_v37 = vld [vmem:[#allocation20_spill] sm:$0xff] }
 0x35f   : > { %1808 = vst [vmem:[%s3297_s26 + $0x90] sm:$0xff] %v2083_v51  ;;  %v1572_v15 = vmul.f32 %v2445_v9, %v3164_v48  ;;  %v1573_v19 = vmul.f32 %v2445_v9, %v3167_v52 }
 0x360   : > { %2450 = vrsqrt.f32 %v1492_v11  ;;  %v3514_v11 = vld [vmem:[#allocation21_spill] sm:$0xff] }
 0x361   : > { %v2084_v53 = vpack.c.bf16 %v1573_v19, %v1572_v15  ;;  %v1445_v57 = vpop.xlane.xlu1 %1444 }
 0x362   : > { %v2447_v60 = vpop.eup %2446  ;;  %v1493_v58 = vmax.f32 %v1445_v57, 1e-24  ;;  %v3515_v57 = vld [vmem:[#allocation22_spill] sm:$0xff] }
 0x363   : > { %1809 = vst [vmem:[%s3297_s26 + $0x98] sm:$0xff] %v2084_v53  ;;  %v1574_v28 = vmul.f32 %v2447_v60, %v3174_v62  ;;  %v1575_v39 = vmul.f32 %v2447_v60, %v3177_v5 }
 0x364   : > { %2452 = vrsqrt.f32 %v1493_v58  ;;  %v3516_v58 = vld [vmem:[#allocation23_spill] sm:$0xff] }
 0x365   : > { %v2085_v55 = vpack.c.bf16 %v1575_v39, %v1574_v28  ;;  %v1448_v12 = vpop.xlane.xlu0 %1447 }
 0x366   : > { %v2449_v16 = vpop.eup %2448  ;;  %v1494_v0 = vmax.f32 %v1448_v12, 1e-24  ;;  %v3517_v12 = vld [vmem:[#allocation24_spill] sm:$0xff] }
 0x367   : > { %1810 = vst [vmem:[%s3297_s26 + $0xa0] sm:$0xff] %v2085_v55  ;;  %v1576_v48 = vmul.f32 %v2449_v16, %v3184_v17  ;;  %v1577_v52 = vmul.f32 %v2449_v16, %v3187_v24 }
 0x368   : > { %2454 = vrsqrt.f32 %v1494_v0  ;;  %v3518_v0 = vld [vmem:[#allocation25_spill] sm:$0xff] }
 0x369   : > { %v2086_v3 = vpack.c.bf16 %v1577_v52, %v1576_v48  ;;  %v1451_v18 = vpop.xlane.xlu1 %1450 }
 0x36a   : > { %v2451_v21 = vpop.eup %2450  ;;  %v1495_v34 = vmax.f32 %v1451_v18, 1e-24  ;;  %v3519_v18 = vld [vmem:[#allocation26_spill] sm:$0xff] }
 0x36b   : > { %1811 = vst [vmem:[%s3297_s26 + $0xa8] sm:$0xff] %v2086_v3  ;;  %v1578_v62 = vmul.f32 %v2451_v21, %v3194_v41  ;;  %v1579_v5 = vmul.f32 %v2451_v21, %v3197_v46  ;;  %v3506_v46 = vld [vmem:[#allocation13_spill] sm:$0xff] }
 0x36c   : > { %2456 = vrsqrt.f32 %v1495_v34  ;;  %v3520_v34 = vld [vmem:[#allocation27_spill] sm:$0xff] }
 0x36d   : > { %v2087_v38 = vpack.c.bf16 %v1579_v5, %v1578_v62  ;;  %v1454_v10 = vpop.xlane.xlu0 %1453 }
 0x36e   : > { %v2453_v13 = vpop.eup %2452  ;;  %v1496_v56 = vmax.f32 %v1454_v10, 1e-24 }
 0x36f   : > { %1812 = vst [vmem:[%s3297_s26 + $0xb0] sm:$0xff] %v2087_v38  ;;  %v1580_v17 = vmul.f32 %v2453_v13, %v3204_v33  ;;  %v1581_v24 = vmul.f32 %v2453_v13, %v3207_v7  ;;  %v3507_v33 = vld [vmem:[#allocation14_spill] sm:$0xff] }
 0x370   : > { %2458 = vrsqrt.f32 %v1496_v56 }
 0x371   : > { %v2088_v23 = vpack.c.bf16 %v1581_v24, %v1580_v17  ;;  %v1457_v25 = vpop.xlane.xlu1 %1456 }
 0x372   : > { %v2455_v8 = vpop.eup %2454  ;;  %v1497_v20 = vmax.f32 %v1457_v25, 1e-24 }
 0x373   : > { %1813 = vst [vmem:[%s3297_s26 + $0xb8] sm:$0xff] %v2088_v23  ;;  %v1582_v41 = vmul.f32 %v2455_v8, %v3214_v26  ;;  %v1583_v22 = vmul.f32 %v2455_v8, %v3506_v46  ;;  %v3509_v26 = vld [vmem:[#allocation16_spill] sm:$0xff] }
 0x374   : > { %2460 = vrsqrt.f32 %v1497_v20 }
 0x375   : > { %v2089_v61 = vpack.c.bf16 %v1583_v22, %v1582_v41  ;;  %v1460_v36 = vpop.xlane.xlu0 %1459 }
 0x376   : > { %v2457_v63 = vpop.eup %2456  ;;  %v1498_v30 = vmax.f32 %v1460_v36, 1e-24 }
 0x377   : > { %1814 = vst [vmem:[%s3297_s26 + $0xc0] sm:$0xff] %v2089_v61  ;;  %v1584_v7 = vmul.f32 %v2457_v63, %v3507_v33  ;;  %v1585_v35 = vmul.f32 %v2457_v63, %v3508_v29 }
 0x378   : > { %2462 = vrsqrt.f32 %v1498_v30 }
 0x379   : > { %v2090_v32 = vpack.c.bf16 %v1585_v35, %v1584_v7  ;;  %v1463_v14 = vpop.xlane.xlu1 %1462 }
 0x37a   : > { %v2459_v27 = vpop.eup %2458  ;;  %v1499_v31 = vmax.f32 %v1463_v14, 1e-24 }
 0x37b   : > { %1815 = vst [vmem:[%s3297_s26 + $0xc8] sm:$0xff] %v2090_v32  ;;  %v1586_v45 = vmul.f32 %v2459_v27, %v3509_v26  ;;  %v1587_v2 = vmul.f32 %v2459_v27, %v3510_v47 }
 0x37c   : > { %2464 = vrsqrt.f32 %v1499_v31 }
 0x37d   : > { %v2091_v42 = vpack.c.bf16 %v1587_v2, %v1586_v45  ;;  %v1466_v44 = vpop.xlane.xlu0 %1465 }
 0x37e   : > { %v2461_v4 = vpop.eup %2460  ;;  %v1500_v54 = vmax.f32 %v1466_v44, 1e-24 }
 0x37f   : > { %1816 = vst [vmem:[%s3297_s26 + $0xd0] sm:$0xff] %v2091_v42  ;;  %v1588_v43 = vmul.f32 %v2461_v4, %v3511_v59  ;;  %v1589_v40 = vmul.f32 %v2461_v4, %v3512_v50 }
 0x380   : > { %2466 = vrsqrt.f32 %v1500_v54 }
 0x381   : > { %v2092_v49 = vpack.c.bf16 %v1589_v40, %v1588_v43  ;;  %v1469_v1 = vpop.xlane.xlu1 %1468 }
 0x382   : > { %v2463_v6 = vpop.eup %2462  ;;  %v1501_v51 = vmax.f32 %v1469_v1, 1e-24 }
 0x383   : > { %1817 = vst [vmem:[%s3297_s26 + $0xd8] sm:$0xff] %v2092_v49  ;;  %v1590_v9 = vmul.f32 %v2463_v6, %v3513_v37  ;;  %v1591_v15 = vmul.f32 %v2463_v6, %v3514_v11 }
 0x384   : > { %2468 = vrsqrt.f32 %v1501_v51 }
 0x385   : > { %v2093_v19 = vpack.c.bf16 %v1591_v15, %v1590_v9 }
 0x386   : > { %v2465_v53 = vpop.eup %2464 }
 0x387   : > { %1818 = vst [vmem:[%s3297_s26 + $0xe0] sm:$0xff] %v2093_v19  ;;  %v1592_v60 = vmul.f32 %v2465_v53, %v3515_v57  ;;  %v1593_v28 = vmul.f32 %v2465_v53, %v3516_v58 }
 0x389   : > { %v2094_v39 = vpack.c.bf16 %v1593_v28, %v1592_v60 }
 0x38a   : > { %v2467_v55 = vpop.eup %2466 }
 0x38b   : > { %1819 = vst [vmem:[%s3297_s26 + $0xe8] sm:$0xff] %v2094_v39  ;;  %v1594_v16 = vmul.f32 %v2467_v55, %v3517_v12  ;;  %v1595_v48 = vmul.f32 %v2467_v55, %v3518_v0 }
 0x38d   : > { %v2095_v52 = vpack.c.bf16 %v1595_v48, %v1594_v16  ;;  %1829 = sbr.rel (!%p3521_p8) target bundleno = 944 (0x3b0), region = 56 }
 0x38e   : > { %v2469_v3 = vpop.eup %2468 }
 0x38f   : > { %1820 = vst [vmem:[%s3297_s26 + $0xf0] sm:$0xff] %v2095_v52  ;;  %v1596_v21 = vmul.f32 %v2469_v3, %v3519_v18  ;;  %v1597_v62 = vmul.f32 %v2469_v3, %v3520_v34 }
 0x391   : > { %v2096_v5 = vpack.c.bf16 %v1597_v62, %v1596_v21 }
 0x393   : > { %1821 = vst [vmem:[%s3297_s26 + $0xf8] sm:$0xff] %v2096_v5 }
 0x394   : > { %s3531_s23 = smov (!%p1832_p9, %s1831_s23), 32 }
 0x395   : > { %s3397_s12 = sshll.u32 %s3531_s23, 7 }
 0x396   : > { %s1837_s28 = ssub.s32 4096, %s3397_s12 }
 0x397   : > { %1838 = vsyncadd %s1823_s9, %s1837_s28  ;;  %p2055_p10 = scmp.ne.s32.totalorder %s3397_s12, 0  ;;  %s2099_s30 = sshll.u32 %s2687_s22, 12 }
 0x398   : > { %s3407_s27 = scalar_lea.hbm %s3460_s5, %s2099_s30  ;;  %s1844_s14 = sshll.u32 %s3297_s26, 4  ;;  %s3410_s14 = int_to_ptr.vmem [resolvable:$true] %s1844_s14 }
 0x399   : > { %s2554_s15 = scalar_lea.vmem %s3410_s14, %s3397_s12  ;;  %s2633_s16 = smov [#allocation8]  }
 0x39a   : > { %p2555_p1 = scmp.ne.s32.totalorder %s3410_s14, %s2554_s15  ;;  %s2558_s29 = sshll.u32 %s2633_s16, 4  ;;  %s2559_s29 = int_to_ptr.vmem [resolvable:$false] %s2558_s29 }
 0x39b   : > { %s2560_s22 = scalar_lea.vmem %s2559_s29, 8192  ;;  %p2561_p3 = scmp.lt.s32.totalorder %s3410_s14, %s2559_s29 }
 0x39c   : > { %p2556_p4 = pnand %p2555_p1, %p2055_p10  ;;  %p2562_p6 = scmp.lt.s32.totalorder %s2560_s22, %s2554_s15 }
 0x39e   : > { %p2557_p5 = pneg %p2556_p4  ;;  %p2563_p11 = por %p2562_p6, %p2561_p3 }
 0x3a0   : > { %p2564_p13 = pnand %p2563_p11, %p2557_p5 }
 0x3a2   : > { %2567 = shalt.err (!%p2564_p13)
}
 0x3a3   : > { %s2568_s7 = scalar_lea.hbm %s3407_s27, %s3397_s12  ;;  %s2572_s26 = scalar_lea.hbm %s3460_s5, 8320 }
 0x3a4   : > { %p2569_p12 = scmp.ne.s32.totalorder %s3407_s27, %s2568_s7  ;;  %p2573_p7 = scmp.lt.u32.totalorder %s3407_s27, %s3460_s5 }
 0x3a5   : > { %p2574_p8 = scmp.lt.u32.totalorder %s2572_s26, %s2568_s7  ;;  %p2576_p1 = scmp.lt.u32.totalorder %s2568_s7, %s3407_s27 }
 0x3a6   : > { %p2570_p0 = pnand %p2569_p12, %p2055_p10 }
 0x3a7   : > { %p2575_p9 = por %p2574_p8, %p2573_p7 }
 0x3a8   : > { %p2571_p2 = pneg %p2570_p0 }
 0x3a9   : > { %p2577_p4 = por %p2576_p1, %p2575_p9 }
 0x3ab   : > { %p2578_p5 = pnand %p2577_p4, %p2571_p2 }
 0x3ad   : > { %2581 = shalt.err (!%p2578_p5)
}
 0x3ae   : > { %s2634_s28 = smov 128   ;;  %s2635_s30 = smov 8  }
 0x3af   : > { %1850 = dma.vmem_to_hbm [thread:$0]  (%p2055_p10), %s3410_s14, %s3397_s12, %s3407_s27, %s1823_s9, %s2634_s28, %s2634_s28, %s2635_s30  }
 0x3b0 PF: > { %p2221_p3 = scmp.ge.s32.totalorder %s2624_s21, 2  ;;  %s1859_s8 = sand.u32 1, %s2612_s18  }
 0x3b1   : > { %p3522_p6 = scmp.ne.s32.totalorder %s3483_s6, 0  ;;  %s1860_s11 = scalar_lea.sflag [#allocation4], %s1859_s8 }
 0x3b3   : > { %p2214_p11 = pnand %p2221_p3, %p3522_p6 }
 0x3b5   : > { %2607 = dma.done.wait (!%p2214_p11), %s1860_s11, 4096  }
 0x3b6   : > { %2609 = vsyncadd (!%p2214_p11), %s1860_s11, 4294963200  ;;  %s3523_s15 = sld [smem:[#allocation12_spill]]  ;;  %p19_p13 = scmp.ge.s32.totalorder %s2691_s24, 5  }
 0x3b7   : > { %s3524_s18 = smov %s2616_s19  ;;  %s3525_s19 = smov %s2620_s20 }
 0x3b8   : > { %s3527_s21 = smov %s2691_s24  ;;  %21 = sbr.rel (!%p19_p13) target bundleno = 6 (0x6), region = 93 }
 0x3bc   : > { %s3526_s20 = smov %s3523_s15 }
 0x3bf   :  { %1865 = vsyncpa [#allocation3], 1 }
 0x3c0   :  { %1867 = vsyncpa [#allocation3 + $0x1], 1 }
 0x3c1   :  { %1868 = vsyncpa [#allocation6], 1 }
 0x3c2   :  { %1869 = vsyncpa [#allocation4], 1 }
 0x3c3   :  { %1871 = vsyncpa [#allocation4 + $0x1], 1 }

</bundles_post_ra>
